<compile_context>
chip_gen: v7x
topology: tpu7x:2x2x1
jax: 0.10.0
libtpu: 0.0.40
codegen_flags: <defaults>
</compile_context>

<pallas_src>
import functools

import jax
import jax.numpy as jnp
from jax.experimental import pallas as pl
from jax.experimental.pallas import tpu as pltpu


def _round_up(x, m):
    return (x + m - 1) // m * m


def lstm_kernel(maxlen_ref, len_ref, gin_ref, whh_ref, hn_ref, c_sc, *,
                tchunk, hidden, unroll):
    """One grid step = one (batch-tile, time-chunk); timesteps loop in-kernel.

    maxlen_ref: (1,)             int32 SMEM (scalar prefetch) -- max(lengths)
    len_ref:    (Bt, 1)          int32 VMEM, resident (sequence lengths)
    gin_ref:    (tchunk, Bt, 4H) VMEM, per-chunk gate inputs (X @ W_ih^T + bias)
    whh_ref:    (H, 4H)          VMEM, resident (W_hh^T)
    hn_ref:     (Bt, H)          f32 output block, resident accumulator == h state
    c_sc:       (Bt, H)          f32 VMEM scratch == c state
    """
    chunk = pl.program_id(1)

    @pl.when(chunk == 0)
    def _():
        hn_ref[...] = jnp.zeros_like(hn_ref)
        c_sc[...] = jnp.zeros_like(c_sc)

    t0 = chunk * tchunk

    # Skip whole chunks past the longest sequence in the batch.
    @pl.when(t0 < maxlen_ref[0])
    def _():
        H = hidden
        lengths = len_ref[...]                 # (Bt, 1) int32
        whh = whh_ref[...]                     # (H, 4H), f32 (or bf16 option)
        bt = lengths.shape[0]
        half = bt // 2                         # two independent batch streams
        len_a, len_b = lengths[:half], lengths[half:]

        def cell(g_in, h_prev, c_prev, lens, t):
            # Recurrent MXU matmul (f32 accumulate) + hoisted input projection.
            gates = jnp.dot(h_prev.astype(whh.dtype), whh,
                            preferred_element_type=jnp.float32)
            gates = gates + g_in.astype(jnp.float32)
            # H is a multiple of 128 -> every slice below is lane-aligned.
            i_g = jax.nn.sigmoid(gates[:, 0 * H:1 * H])
            f_g = jax.nn.sigmoid(gates[:, 1 * H:2 * H])
            g_g = jnp.tanh(gates[:, 2 * H:3 * H])
            o_g = jax.nn.sigmoid(gates[:, 3 * H:4 * H])
            c_new = f_g * c_prev + i_g * g_g
            h_new = o_g * jnp.tanh(c_new)
            # Packed-sequence semantics: freeze state once t >= length[b].
            valid = t < lens                   # (half, 1) bool, broadcast over H
            return (jnp.where(valid, h_new, h_prev),
                    jnp.where(valid, c_new, c_prev))

        def step(i, carry):
            # Two independent batch halves: their MXU push -> pop -> EUP chains
            # interleave and hide each other's latency in this latency-bound loop.
            ha, ca, hb, cb = carry
            t = t0 + i
            g_all = gin_ref[i]                 # (Bt, 4H)
            ha, ca = cell(g_all[:half], ha, ca, len_a, t)
            hb, cb = cell(g_all[half:], hb, cb, len_b, t)
            return ha, ca, hb, cb

        h0 = hn_ref[...]
        c0 = c_sc[...]
        ha, ca, hb, cb = jax.lax.fori_loop(
            0, tchunk, step,
            (h0[:half], c0[:half], h0[half:], c0[half:]),
            unroll=unroll)
        hn_ref[:half, :] = ha
        hn_ref[half:, :] = hb
        c_sc[:half, :] = ca
        c_sc[half:, :] = cb


def _pad_gate_axis(w, h, h_pad):
    """Zero-pad each of the 4 PyTorch gate blocks ([i,f,g,o]) along the 4*h axis."""
    if h_pad == h:
        return w
    parts = []
    for k in range(4):
        g = w[k * h:(k + 1) * h]
        pad = [(0, h_pad - h)] + [(0, 0)] * (g.ndim - 1)
        parts.append(jnp.pad(g, pad))
    return jnp.concatenate(parts, axis=0)


@functools.partial(jax.jit, static_argnames=("n_hidden", "use_bf16_gates"))
def lstm_embedder_forward(input_ids, lengths, vectors, w_ih, w_hh, b_ih, b_hh,
                          n_hidden, use_bf16_gates=False):
    """Pallas implementation of LSTMEmbedder.forward.

    input_ids: (B, T) int32;  lengths: (B,) int32;  vectors: (V, E) f32 (frozen)
    w_ih: (4H, E), w_hh: (4H, H), b_ih/b_hh: (4H,)  (PyTorch nn.LSTM layout)
    returns: (B, H) f32  == hn.squeeze(0)
    """
    B, T = input_ids.shape
    E = vectors.shape[1]
    H = n_hidden

    # Lane/sublane-dense layout. Padded hidden units / batch rows stay exactly 0
    # (zero weights & bias -> g = tanh(0) = 0, c stays 0, h stays 0), so they never
    # contaminate real units and are sliced off at the end.
    H_pad = _round_up(H, 128)
    B_pad = _round_up(B, 16)
    # Two batch tiles -> v7x's two TensorCores each run half the batch (no effect
    # on single-core v5e/v6e beyond one extra grid step).
    num_b_tiles = 2 if (B_pad >= 32 and B_pad % 32 == 0) else 1
    b_tile = B_pad // num_b_tiles

    # bf16 gate stream (v6e/v7x): halves HBM/VMEM for the only T-scaling stream.
    # Kept off by default to preserve the 1e-5 tolerance; h/c state is always f32.
    gates_dtype = jnp.bfloat16 if use_bf16_gates else jnp.float32

    # ---- Glue in plain JAX ------------------------------------------------
    # Per-gate zero padding of the weights (PyTorch [i,f,g,o] order preserved).
    w_ih_p = _pad_gate_axis(w_ih, H, H_pad)                    # (4Hp, E)
    b_p = _pad_gate_axis(b_ih + b_hh, H, H_pad)                # (4Hp,)
    w_hh_p = _pad_gate_axis(w_hh, H, H_pad)                    # (4Hp, H)
    if H_pad != H:
        w_hh_p = jnp.pad(w_hh_p, ((0, 0), (0, H_pad - H)))     # (4Hp, Hp)
    whh_t = w_hh_p.T.astype(gates_dtype)                       # (Hp, 4Hp)
    # TODO(synk): for n_hidden >= ~1024 on v7x, single-buffer / tile the resident
    # W_hh^T slab (pipeline_mode=pl.Buffered(1) or 4H-axis tiling) to fit 64 MiB VMEM.

    # Time-major embedding gather: reindex the (cheap) int32 id matrix instead of
    # transposing the big (B,T,E) float slab.
    emb_tbe = jnp.take(vectors, input_ids.T, axis=0)           # (T, B, E)

    # Hoisted input projection: one batched matmul for all timesteps.
    gate_in = jnp.dot(emb_tbe.reshape(T * B, E), w_ih_p.T) + b_p[None, :]
    gate_in = gate_in.reshape(T, B, 4 * H_pad).astype(gates_dtype)

    lengths_i32 = lengths.astype(jnp.int32)
    max_len = jnp.max(lengths_i32).reshape(1)                  # scalar prefetch
    lengths_2d = jnp.pad(lengths_i32, (0, B_pad - B)).reshape(B_pad, 1)

    # ---- VMEM-budget-derived time chunking ---------------------------------
    itemsize = jnp.dtype(gates_dtype).itemsize
    gate_row_bytes = b_tile * 4 * H_pad * itemsize
    tchunk = int(max(8, min(T, (16 * 1024 * 1024) // (2 * gate_row_bytes), 512)))
    num_chunks = pl.cdiv(T, tchunk)
    T_grid = num_chunks * tchunk

    if T_grid != T or B_pad != B:
        # Padded timesteps/rows have t >= length -> state frozen, values inert.
        gate_in = jnp.pad(gate_in, ((0, T_grid - T), (0, B_pad - B), (0, 0)))

    vmem_needed = (2 * tchunk * gate_row_bytes                 # gate_in (dbl-buffered)
                   + 2 * H_pad * 4 * H_pad * itemsize          # W_hh^T
                   + 4 * b_tile * H_pad * 4                    # hn out + c scratch
                   + 4 * B_pad)                                # lengths
    vmem_limit = int(min(max(2 * vmem_needed, 32 * 1024 * 1024),
                         64 * 1024 * 1024))                    # v7x-safe ceiling

    kernel = functools.partial(lstm_kernel, tchunk=tchunk, hidden=H_pad,
                               unroll=min(tchunk, 8))

    hn = pl.pallas_call(
        kernel,
        out_shape=jax.ShapeDtypeStruct((B_pad, H_pad), jnp.float32),
        grid_spec=pltpu.PrefetchScalarGridSpec(
            num_scalar_prefetch=1,                             # max_len -> SMEM
            grid=(num_b_tiles, num_chunks),
            in_specs=[
                pl.BlockSpec((b_tile, 1), lambda b, c, ml: (b, 0)),          # lengths
                pl.BlockSpec((tchunk, b_tile, 4 * H_pad),
                             lambda b, c, ml: (c, b, 0)),                    # gate inputs
                pl.BlockSpec((H_pad, 4 * H_pad), lambda b, c, ml: (0, 0)),   # W_hh^T
            ],
            out_specs=pl.BlockSpec((b_tile, H_pad), lambda b, c, ml: (b, 0)),  # hn == h
            scratch_shapes=[pltpu.VMEM((b_tile, H_pad), jnp.float32)],         # c state
        ),
        compiler_params=pltpu.CompilerParams(
            # batch tiles independent -> parallel (v7x megacore); time is serial.
            dimension_semantics=("parallel", "arbitrary"),
            vmem_limit_bytes=vmem_limit),
    )(max_len, lengths_2d, gate_in, whh_t)

    return hn[:B, :H]


def reference_forward(input_ids, lengths, vectors, w_ih, w_hh, b_ih, b_hh, n_hidden):
    """Pure-JAX reference matching PyTorch packed-LSTM hn semantics."""
    B, T = input_ids.shape
    H = n_hidden
    emb = jnp.take(vectors, input_ids, axis=0)          # (B, T, E)

    def step(carry, t):
        h, c = carry
        x_t = emb[:, t, :]
        gates = x_t @ w_ih.T + h @ w_hh.T + b_ih + b_hh
        i_g = jax.nn.sigmoid(gates[:, 0 * H:1 * H])
        f_g = jax.nn.sigmoid(gates[:, 1 * H:2 * H])
        g_g = jnp.tanh(gates[:, 2 * H:3 * H])
        o_g = jax.nn.sigmoid(gates[:, 3 * H:4 * H])
        c_new = f_g * c + i_g * g_g
        h_new = o_g * jnp.tanh(c_new)
        m = (t < lengths).astype(jnp.float32)[:, None]
        h = m * h_new + (1.0 - m) * h
        c = m * c_new + (1.0 - m) * c
        return (h, c), None

    init = (jnp.zeros((B, H), jnp.float32), jnp.zeros((B, H), jnp.float32))
    (h, _), _ = jax.lax.scan(step, init, jnp.arange(T))
    return h


if __name__ == "__main__":
    # Small, deterministic setup consistent with the module:
    # vocab=20, embedding_dim=16, n_hidden=32, batch=2, seq=8.
    V, E, H = 20, 16, 32
    B, T = 2, 8

    key = jax.random.PRNGKey(0)
    k_vec, k_wih, k_whh, k_bih, k_bhh, k_ids = jax.random.split(key, 6)

    vectors = jax.random.normal(k_vec, (V, E), dtype=jnp.float32)
    scale = 1.0 / jnp.sqrt(jnp.float32(H))
    w_ih = jax.random.uniform(k_wih, (4 * H, E), jnp.float32, -scale, scale)
    w_hh = jax.random.uniform(k_whh, (4 * H, H), jnp.float32, -scale, scale)
    b_ih = jax.random.uniform(k_bih, (4 * H,), jnp.float32, -scale, scale)
    b_hh = jax.random.uniform(k_bhh, (4 * H,), jnp.float32, -scale, scale)

    input_ids = jax.random.randint(k_ids, (B, T), 0, V, dtype=jnp.int32)
    lengths = jnp.array([T, 5], dtype=jnp.int32)   # variable lengths (packed semantics)

    hn = lstm_embedder_forward(input_ids, lengths, vectors, w_ih, w_hh, b_ih, b_hh,
                               n_hidden=H)
    hn = jax.block_until_ready(hn)

    hn_ref = reference_forward(input_ids, lengths, vectors, w_ih, w_hh, b_ih, b_hh, H)
    assert hn.shape == (B, H)
    assert jnp.allclose(hn, hn_ref, atol=1e-5, rtol=1e-5), "mismatch vs reference"

    print("KERNEL_OK")
</pallas_src>

<mosaic_0001>
module attributes {stable_mosaic.version = 11 : i64} {
  func.func @lstm_kernel(%arg0: i32, %arg1: i32, %arg2: memref<1xi32, #tpu.memory_space<smem>>, %arg3: memref<16x1xi32, #tpu.memory_space<vmem>>, %arg4: memref<8x16x512xf32, #tpu.memory_space<vmem>>, %arg5: memref<128x512xf32, #tpu.memory_space<vmem>>, %arg6: memref<16x128xf32, #tpu.memory_space<vmem>>, %arg7: memref<16x128xf32, #tpu.memory_space<vmem>>) attributes {dimension_semantics = [#tpu.dimension_semantics<parallel>, #tpu.dimension_semantics<arbitrary>], iteration_bounds = array<i64: 1, 1>, scalar_prefetch = 1 : i64, scratch_operands = 1 : i64, tpu.core_type = #tpu.core_type<tc>, window_params = [{transform_indices = @transform_0, window_bounds = array<i64: 16, 1>}, {transform_indices = @transform_1, window_bounds = array<i64: 8, 16, 512>}, {pipeline_mode = #tpu.pipeline_mode<synchronous>, transform_indices = @transform_2, window_bounds = array<i64: 128, 512>}, {transform_indices = @transform_3, window_bounds = array<i64: 16, 128>}]} {
    %c0_i32 = arith.constant 0 : i32
    %0 = arith.cmpi eq, %arg1, %c0_i32 : i32
    %1 = arith.extui %0 : i1 to i32
    %c0_i32_0 = arith.constant 0 : i32
    %2 = arith.cmpi ne, %1, %c0_i32_0 : i32
    scf.if %2 {
      %cst = arith.constant 0.000000e+00 : f32
      %8 = vector.broadcast %cst : f32 to vector<16x128xf32>
      %c0_2 = arith.constant 0 : index
      %c0_3 = arith.constant 0 : index
      %9 = vector.load %arg6[%c0_2, %c0_3] : memref<16x128xf32, #tpu.memory_space<vmem>>, vector<16x128xf32>
      tpu.vector_store %arg6[%c0_2, %c0_3], %8 {strides = array<i32>} : memref<16x128xf32, #tpu.memory_space<vmem>>, vector<16x128xf32>,
      %cst_4 = arith.constant 0.000000e+00 : f32
      %10 = vector.broadcast %cst_4 : f32 to vector<16x128xf32>
      %c0_5 = arith.constant 0 : index
      %c0_6 = arith.constant 0 : index
      %11 = vector.load %arg7[%c0_5, %c0_6] : memref<16x128xf32, #tpu.memory_space<vmem>>, vector<16x128xf32>
      tpu.vector_store %arg7[%c0_5, %c0_6], %10 {strides = array<i32>} : memref<16x128xf32, #tpu.memory_space<vmem>>, vector<16x128xf32>,
    } else {
    }
    %c8_i32 = arith.constant 8 : i32
    %3 = arith.muli %arg1, %c8_i32 : i32
    %c0 = arith.constant 0 : index
    %4 = memref.load %arg2[%c0] : memref<1xi32, #tpu.memory_space<smem>>
    %5 = arith.cmpi slt, %3, %4 : i32
    %6 = arith.extui %5 : i1 to i32
    %c0_i32_1 = arith.constant 0 : i32
    %7 = arith.cmpi ne, %6, %c0_i32_1 : i32
    scf.if %7 {
      %c0_2 = arith.constant 0 : index
      %c0_3 = arith.constant 0 : index
      %8 = vector.load %arg3[%c0_2, %c0_3] : memref<16x1xi32, #tpu.memory_space<vmem>>, vector<16x1xi32>
      %c0_4 = arith.constant 0 : index
      %c0_5 = arith.constant 0 : index
      %9 = vector.load %arg5[%c0_4, %c0_5] : memref<128x512xf32, #tpu.memory_space<vmem>>, vector<128x512xf32>
      %10 = vector.extract_strided_slice %8 {offsets = [0, 0], sizes = [8, 1], strides = [1, 1]} : vector<16x1xi32> to vector<8x1xi32>
      %11 = vector.extract_strided_slice %8 {offsets = [8, 0], sizes = [8, 1], strides = [1, 1]} : vector<16x1xi32> to vector<8x1xi32>
      %c0_6 = arith.constant 0 : index
      %c0_7 = arith.constant 0 : index
      %12 = vector.load %arg6[%c0_6, %c0_7] : memref<16x128xf32, #tpu.memory_space<vmem>>, vector<16x128xf32>
      %c0_8 = arith.constant 0 : index
      %c0_9 = arith.constant 0 : index
      %13 = vector.load %arg7[%c0_8, %c0_9] : memref<16x128xf32, #tpu.memory_space<vmem>>, vector<16x128xf32>
      %14 = vector.extract_strided_slice %12 {offsets = [0, 0], sizes = [8, 128], strides = [1, 1]} : vector<16x128xf32> to vector<8x128xf32>
      %15 = vector.extract_strided_slice %13 {offsets = [0, 0], sizes = [8, 128], strides = [1, 1]} : vector<16x128xf32> to vector<8x128xf32>
      %16 = vector.extract_strided_slice %12 {offsets = [8, 0], sizes = [8, 128], strides = [1, 1]} : vector<16x128xf32> to vector<8x128xf32>
      %17 = vector.extract_strided_slice %13 {offsets = [8, 0], sizes = [8, 128], strides = [1, 1]} : vector<16x128xf32> to vector<8x128xf32>
      %c0_i32_10 = arith.constant 0 : i32
      %18 = arith.addi %3, %c0_i32_10 : i32
      %19 = arith.index_cast %c0_i32_10 : i32 to index
      %c0_11 = arith.constant 0 : index
      %c0_12 = arith.constant 0 : index
      %20 = vector.load %arg4[%19, %c0_11, %c0_12] : memref<8x16x512xf32, #tpu.memory_space<vmem>>, vector<1x16x512xf32>
      %21 = vector.shape_cast %20 : vector<1x16x512xf32> to vector<16x512xf32>
      %22 = vector.extract_strided_slice %21 {offsets = [0, 0], sizes = [8, 512], strides = [1, 1]} : vector<16x512xf32> to vector<8x512xf32>
      %cst = arith.constant dense<0.000000e+00> : vector<8x512xf32>
      %23 = tpu.matmul %14, %9, %cst {dimension_numbers = #tpu.dot_dimension_numbers<[1], [0], [0], [1], [0, 0, 1, 1], [], []>} : vector<8x128xf32>, vector<128x512xf32>, vector<8x512xf32> -> vector<8x512xf32>
      %24 = arith.addf %23, %22 : vector<8x512xf32>
      %25 = vector.extract_strided_slice %24 {offsets = [0, 0], sizes = [8, 128], strides = [1, 1]} : vector<8x512xf32> to vector<8x128xf32>
      %26 = arith.negf %25 : vector<8x128xf32>
      %27 = math.exp %26 : vector<8x128xf32>
      %cst_13 = arith.constant 1.000000e+00 : f32
      %28 = vector.broadcast %cst_13 : f32 to vector<8x128xf32>
      %29 = arith.addf %28, %27 : vector<8x128xf32>
      %30 = arith.divf %28, %29 : vector<8x128xf32>
      %31 = vector.extract_strided_slice %24 {offsets = [0, 128], sizes = [8, 128], strides = [1, 1]} : vector<8x512xf32> to vector<8x128xf32>
      %32 = arith.negf %31 : vector<8x128xf32>
      %33 = math.exp %32 : vector<8x128xf32>
      %cst_14 = arith.constant 1.000000e+00 : f32
      %34 = vector.broadcast %cst_14 : f32 to vector<8x128xf32>
      %35 = arith.addf %34, %33 : vector<8x128xf32>
      %36 = arith.divf %34, %35 : vector<8x128xf32>
      %37 = vector.extract_strided_slice %24 {offsets = [0, 256], sizes = [8, 128], strides = [1, 1]} : vector<8x512xf32> to vector<8x128xf32>
      %38 = math.tanh %37 : vector<8x128xf32>
      %39 = vector.extract_strided_slice %24 {offsets = [0, 384], sizes = [8, 128], strides = [1, 1]} : vector<8x512xf32> to vector<8x128xf32>
      %40 = arith.negf %39 : vector<8x128xf32>
      %41 = math.exp %40 : vector<8x128xf32>
      %cst_15 = arith.constant 1.000000e+00 : f32
      %42 = vector.broadcast %cst_15 : f32 to vector<8x128xf32>
      %43 = arith.addf %42, %41 : vector<8x128xf32>
      %44 = arith.divf %42, %43 : vector<8x128xf32>
      %45 = arith.mulf %36, %15 : vector<8x128xf32>
      %46 = arith.mulf %30, %38 : vector<8x128xf32>
      %47 = arith.addf %45, %46 : vector<8x128xf32>
      %48 = math.tanh %47 : vector<8x128xf32>
      %49 = arith.mulf %44, %48 : vector<8x128xf32>
      %50 = vector.broadcast %18 : i32 to vector<8x1xi32>
      %51 = arith.cmpi slt, %50, %10 : vector<8x1xi32>
      %52 = vector.shape_cast %51 : vector<8x1xi1> to vector<8x1xi1>
      %53 = vector.broadcast %52 : vector<8x1xi1> to vector<8x128xi1>
      %54 = arith.select %53, %49, %14 : vector<8x128xi1>, vector<8x128xf32>
      %55 = vector.shape_cast %51 : vector<8x1xi1> to vector<8x1xi1>
      %56 = vector.broadcast %55 : vector<8x1xi1> to vector<8x128xi1>
      %57 = arith.select %56, %47, %15 : vector<8x128xi1>, vector<8x128xf32>
      %58 = vector.extract_strided_slice %21 {offsets = [8, 0], sizes = [8, 512], strides = [1, 1]} : vector<16x512xf32> to vector<8x512xf32>
      %cst_16 = arith.constant dense<0.000000e+00> : vector<8x512xf32>
      %59 = tpu.matmul %16, %9, %cst_16 {dimension_numbers = #tpu.dot_dimension_numbers<[1], [0], [0], [1], [0, 0, 1, 1], [], []>} : vector<8x128xf32>, vector<128x512xf32>, vector<8x512xf32> -> vector<8x512xf32>
      %60 = arith.addf %59, %58 : vector<8x512xf32>
      %61 = vector.extract_strided_slice %60 {offsets = [0, 0], sizes = [8, 128], strides = [1, 1]} : vector<8x512xf32> to vector<8x128xf32>
      %62 = arith.negf %61 : vector<8x128xf32>
      %63 = math.exp %62 : vector<8x128xf32>
      %cst_17 = arith.constant 1.000000e+00 : f32
      %64 = vector.broadcast %cst_17 : f32 to vector<8x128xf32>
      %65 = arith.addf %64, %63 : vector<8x128xf32>
      %66 = arith.divf %64, %65 : vector<8x128xf32>
      %67 = vector.extract_strided_slice %60 {offsets = [0, 128], sizes = [8, 128], strides = [1, 1]} : vector<8x512xf32> to vector<8x128xf32>
      %68 = arith.negf %67 : vector<8x128xf32>
      %69 = math.exp %68 : vector<8x128xf32>
      %cst_18 = arith.constant 1.000000e+00 : f32
      %70 = vector.broadcast %cst_18 : f32 to vector<8x128xf32>
      %71 = arith.addf %70, %69 : vector<8x128xf32>
      %72 = arith.divf %70, %71 : vector<8x128xf32>
      %73 = vector.extract_strided_slice %60 {offsets = [0, 256], sizes = [8, 128], strides = [1, 1]} : vector<8x512xf32> to vector<8x128xf32>
      %74 = math.tanh %73 : vector<8x128xf32>
      %75 = vector.extract_strided_slice %60 {offsets = [0, 384], sizes = [8, 128], strides = [1, 1]} : vector<8x512xf32> to vector<8x128xf32>
      %76 = arith.negf %75 : vector<8x128xf32>
      %77 = math.exp %76 : vector<8x128xf32>
      %cst_19 = arith.constant 1.000000e+00 : f32
      %78 = vector.broadcast %cst_19 : f32 to vector<8x128xf32>
      %79 = arith.addf %78, %77 : vector<8x128xf32>
      %80 = arith.divf %78, %79 : vector<8x128xf32>
      %81 = arith.mulf %72, %17 : vector<8x128xf32>
      %82 = arith.mulf %66, %74 : vector<8x128xf32>
      %83 = arith.addf %81, %82 : vector<8x128xf32>
      %84 = math.tanh %83 : vector<8x128xf32>
      %85 = arith.mulf %80, %84 : vector<8x128xf32>
      %86 = vector.broadcast %18 : i32 to vector<8x1xi32>
      %87 = arith.cmpi slt, %86, %11 : vector<8x1xi32>
      %88 = vector.shape_cast %87 : vector<8x1xi1> to vector<8x1xi1>
      %89 = vector.broadcast %88 : vector<8x1xi1> to vector<8x128xi1>
      %90 = arith.select %89, %85, %16 : vector<8x128xi1>, vector<8x128xf32>
      %91 = vector.shape_cast %87 : vector<8x1xi1> to vector<8x1xi1>
      %92 = vector.broadcast %91 : vector<8x1xi1> to vector<8x128xi1>
      %93 = arith.select %92, %83, %17 : vector<8x128xi1>, vector<8x128xf32>
      %c1_i32 = arith.constant 1 : i32
      %94 = arith.addi %3, %c1_i32 : i32
      %95 = arith.index_cast %c1_i32 : i32 to index
      %c0_20 = arith.constant 0 : index
      %c0_21 = arith.constant 0 : index
      %96 = vector.load %arg4[%95, %c0_20, %c0_21] : memref<8x16x512xf32, #tpu.memory_space<vmem>>, vector<1x16x512xf32>
      %97 = vector.shape_cast %96 : vector<1x16x512xf32> to vector<16x512xf32>
      %98 = vector.extract_strided_slice %97 {offsets = [0, 0], sizes = [8, 512], strides = [1, 1]} : vector<16x512xf32> to vector<8x512xf32>
      %cst_22 = arith.constant dense<0.000000e+00> : vector<8x512xf32>
      %99 = tpu.matmul %54, %9, %cst_22 {dimension_numbers = #tpu.dot_dimension_numbers<[1], [0], [0], [1], [0, 0, 1, 1], [], []>} : vector<8x128xf32>, vector<128x512xf32>, vector<8x512xf32> -> vector<8x512xf32>
      %100 = arith.addf %99, %98 : vector<8x512xf32>
      %101 = vector.extract_strided_slice %100 {offsets = [0, 0], sizes = [8, 128], strides = [1, 1]} : vector<8x512xf32> to vector<8x128xf32>
      %102 = arith.negf %101 : vector<8x128xf32>
      %103 = math.exp %102 : vector<8x128xf32>
      %cst_23 = arith.constant 1.000000e+00 : f32
      %104 = vector.broadcast %cst_23 : f32 to vector<8x128xf32>
      %105 = arith.addf %104, %103 : vector<8x128xf32>
      %106 = arith.divf %104, %105 : vector<8x128xf32>
      %107 = vector.extract_strided_slice %100 {offsets = [0, 128], sizes = [8, 128], strides = [1, 1]} : vector<8x512xf32> to vector<8x128xf32>
      %108 = arith.negf %107 : vector<8x128xf32>
      %109 = math.exp %108 : vector<8x128xf32>
      %cst_24 = arith.constant 1.000000e+00 : f32
      %110 = vector.broadcast %cst_24 : f32 to vector<8x128xf32>
      %111 = arith.addf %110, %109 : vector<8x128xf32>
      %112 = arith.divf %110, %111 : vector<8x128xf32>
      %113 = vector.extract_strided_slice %100 {offsets = [0, 256], sizes = [8, 128], strides = [1, 1]} : vector<8x512xf32> to vector<8x128xf32>
      %114 = math.tanh %113 : vector<8x128xf32>
      %115 = vector.extract_strided_slice %100 {offsets = [0, 384], sizes = [8, 128], strides = [1, 1]} : vector<8x512xf32> to vector<8x128xf32>
      %116 = arith.negf %115 : vector<8x128xf32>
      %117 = math.exp %116 : vector<8x128xf32>
      %cst_25 = arith.constant 1.000000e+00 : f32
      %118 = vector.broadcast %cst_25 : f32 to vector<8x128xf32>
      %119 = arith.addf %118, %117 : vector<8x128xf32>
      %120 = arith.divf %118, %119 : vector<8x128xf32>
      %121 = arith.mulf %112, %57 : vector<8x128xf32>
      %122 = arith.mulf %106, %114 : vector<8x128xf32>
      %123 = arith.addf %121, %122 : vector<8x128xf32>
      %124 = math.tanh %123 : vector<8x128xf32>
      %125 = arith.mulf %120, %124 : vector<8x128xf32>
      %126 = vector.broadcast %94 : i32 to vector<8x1xi32>
      %127 = arith.cmpi slt, %126, %10 : vector<8x1xi32>
      %128 = vector.shape_cast %127 : vector<8x1xi1> to vector<8x1xi1>
      %129 = vector.broadcast %128 : vector<8x1xi1> to vector<8x128xi1>
      %130 = arith.select %129, %125, %54 : vector<8x128xi1>, vector<8x128xf32>
      %131 = vector.shape_cast %127 : vector<8x1xi1> to vector<8x1xi1>
      %132 = vector.broadcast %131 : vector<8x1xi1> to vector<8x128xi1>
      %133 = arith.select %132, %123, %57 : vector<8x128xi1>, vector<8x128xf32>
      %134 = vector.extract_strided_slice %97 {offsets = [8, 0], sizes = [8, 512], strides = [1, 1]} : vector<16x512xf32> to vector<8x512xf32>
      %cst_26 = arith.constant dense<0.000000e+00> : vector<8x512xf32>
      %135 = tpu.matmul %90, %9, %cst_26 {dimension_numbers = #tpu.dot_dimension_numbers<[1], [0], [0], [1], [0, 0, 1, 1], [], []>} : vector<8x128xf32>, vector<128x512xf32>, vector<8x512xf32> -> vector<8x512xf32>
      %136 = arith.addf %135, %134 : vector<8x512xf32>
      %137 = vector.extract_strided_slice %136 {offsets = [0, 0], sizes = [8, 128], strides = [1, 1]} : vector<8x512xf32> to vector<8x128xf32>
      %138 = arith.negf %137 : vector<8x128xf32>
      %139 = math.exp %138 : vector<8x128xf32>
      %cst_27 = arith.constant 1.000000e+00 : f32
      %140 = vector.broadcast %cst_27 : f32 to vector<8x128xf32>
      %141 = arith.addf %140, %139 : vector<8x128xf32>
      %142 = arith.divf %140, %141 : vector<8x128xf32>
      %143 = vector.extract_strided_slice %136 {offsets = [0, 128], sizes = [8, 128], strides = [1, 1]} : vector<8x512xf32> to vector<8x128xf32>
      %144 = arith.negf %143 : vector<8x128xf32>
      %145 = math.exp %144 : vector<8x128xf32>
      %cst_28 = arith.constant 1.000000e+00 : f32
      %146 = vector.broadcast %cst_28 : f32 to vector<8x128xf32>
      %147 = arith.addf %146, %145 : vector<8x128xf32>
      %148 = arith.divf %146, %147 : vector<8x128xf32>
      %149 = vector.extract_strided_slice %136 {offsets = [0, 256], sizes = [8, 128], strides = [1, 1]} : vector<8x512xf32> to vector<8x128xf32>
      %150 = math.tanh %149 : vector<8x128xf32>
      %151 = vector.extract_strided_slice %136 {offsets = [0, 384], sizes = [8, 128], strides = [1, 1]} : vector<8x512xf32> to vector<8x128xf32>
      %152 = arith.negf %151 : vector<8x128xf32>
      %153 = math.exp %152 : vector<8x128xf32>
      %cst_29 = arith.constant 1.000000e+00 : f32
      %154 = vector.broadcast %cst_29 : f32 to vector<8x128xf32>
      %155 = arith.addf %154, %153 : vector<8x128xf32>
      %156 = arith.divf %154, %155 : vector<8x128xf32>
      %157 = arith.mulf %148, %93 : vector<8x128xf32>
      %158 = arith.mulf %142, %150 : vector<8x128xf32>
      %159 = arith.addf %157, %158 : vector<8x128xf32>
      %160 = math.tanh %159 : vector<8x128xf32>
      %161 = arith.mulf %156, %160 : vector<8x128xf32>
      %162 = vector.broadcast %94 : i32 to vector<8x1xi32>
      %163 = arith.cmpi slt, %162, %11 : vector<8x1xi32>
      %164 = vector.shape_cast %163 : vector<8x1xi1> to vector<8x1xi1>
      %165 = vector.broadcast %164 : vector<8x1xi1> to vector<8x128xi1>
      %166 = arith.select %165, %161, %90 : vector<8x128xi1>, vector<8x128xf32>
      %167 = vector.shape_cast %163 : vector<8x1xi1> to vector<8x1xi1>
      %168 = vector.broadcast %167 : vector<8x1xi1> to vector<8x128xi1>
      %169 = arith.select %168, %159, %93 : vector<8x128xi1>, vector<8x128xf32>
      %c2_i32 = arith.constant 2 : i32
      %170 = arith.addi %3, %c2_i32 : i32
      %171 = arith.index_cast %c2_i32 : i32 to index
      %c0_30 = arith.constant 0 : index
      %c0_31 = arith.constant 0 : index
      %172 = vector.load %arg4[%171, %c0_30, %c0_31] : memref<8x16x512xf32, #tpu.memory_space<vmem>>, vector<1x16x512xf32>
      %173 = vector.shape_cast %172 : vector<1x16x512xf32> to vector<16x512xf32>
      %174 = vector.extract_strided_slice %173 {offsets = [0, 0], sizes = [8, 512], strides = [1, 1]} : vector<16x512xf32> to vector<8x512xf32>
      %cst_32 = arith.constant dense<0.000000e+00> : vector<8x512xf32>
      %175 = tpu.matmul %130, %9, %cst_32 {dimension_numbers = #tpu.dot_dimension_numbers<[1], [0], [0], [1], [0, 0, 1, 1], [], []>} : vector<8x128xf32>, vector<128x512xf32>, vector<8x512xf32> -> vector<8x512xf32>
      %176 = arith.addf %175, %174 : vector<8x512xf32>
      %177 = vector.extract_strided_slice %176 {offsets = [0, 0], sizes = [8, 128], strides = [1, 1]} : vector<8x512xf32> to vector<8x128xf32>
      %178 = arith.negf %177 : vector<8x128xf32>
      %179 = math.exp %178 : vector<8x128xf32>
      %cst_33 = arith.constant 1.000000e+00 : f32
      %180 = vector.broadcast %cst_33 : f32 to vector<8x128xf32>
      %181 = arith.addf %180, %179 : vector<8x128xf32>
      %182 = arith.divf %180, %181 : vector<8x128xf32>
      %183 = vector.extract_strided_slice %176 {offsets = [0, 128], sizes = [8, 128], strides = [1, 1]} : vector<8x512xf32> to vector<8x128xf32>
      %184 = arith.negf %183 : vector<8x128xf32>
      %185 = math.exp %184 : vector<8x128xf32>
      %cst_34 = arith.constant 1.000000e+00 : f32
      %186 = vector.broadcast %cst_34 : f32 to vector<8x128xf32>
      %187 = arith.addf %186, %185 : vector<8x128xf32>
      %188 = arith.divf %186, %187 : vector<8x128xf32>
      %189 = vector.extract_strided_slice %176 {offsets = [0, 256], sizes = [8, 128], strides = [1, 1]} : vector<8x512xf32> to vector<8x128xf32>
      %190 = math.tanh %189 : vector<8x128xf32>
      %191 = vector.extract_strided_slice %176 {offsets = [0, 384], sizes = [8, 128], strides = [1, 1]} : vector<8x512xf32> to vector<8x128xf32>
      %192 = arith.negf %191 : vector<8x128xf32>
      %193 = math.exp %192 : vector<8x128xf32>
      %cst_35 = arith.constant 1.000000e+00 : f32
      %194 = vector.broadcast %cst_35 : f32 to vector<8x128xf32>
      %195 = arith.addf %194, %193 : vector<8x128xf32>
      %196 = arith.divf %194, %195 : vector<8x128xf32>
      %197 = arith.mulf %188, %133 : vector<8x128xf32>
      %198 = arith.mulf %182, %190 : vector<8x128xf32>
      %199 = arith.addf %197, %198 : vector<8x128xf32>
      %200 = math.tanh %199 : vector<8x128xf32>
      %201 = arith.mulf %196, %200 : vector<8x128xf32>
      %202 = vector.broadcast %170 : i32 to vector<8x1xi32>
      %203 = arith.cmpi slt, %202, %10 : vector<8x1xi32>
      %204 = vector.shape_cast %203 : vector<8x1xi1> to vector<8x1xi1>
      %205 = vector.broadcast %204 : vector<8x1xi1> to vector<8x128xi1>
      %206 = arith.select %205, %201, %130 : vector<8x128xi1>, vector<8x128xf32>
      %207 = vector.shape_cast %203 : vector<8x1xi1> to vector<8x1xi1>
      %208 = vector.broadcast %207 : vector<8x1xi1> to vector<8x128xi1>
      %209 = arith.select %208, %199, %133 : vector<8x128xi1>, vector<8x128xf32>
      %210 = vector.extract_strided_slice %173 {offsets = [8, 0], sizes = [8, 512], strides = [1, 1]} : vector<16x512xf32> to vector<8x512xf32>
      %cst_36 = arith.constant dense<0.000000e+00> : vector<8x512xf32>
      %211 = tpu.matmul %166, %9, %cst_36 {dimension_numbers = #tpu.dot_dimension_numbers<[1], [0], [0], [1], [0, 0, 1, 1], [], []>} : vector<8x128xf32>, vector<128x512xf32>, vector<8x512xf32> -> vector<8x512xf32>
      %212 = arith.addf %211, %210 : vector<8x512xf32>
      %213 = vector.extract_strided_slice %212 {offsets = [0, 0], sizes = [8, 128], strides = [1, 1]} : vector<8x512xf32> to vector<8x128xf32>
      %214 = arith.negf %213 : vector<8x128xf32>
      %215 = math.exp %214 : vector<8x128xf32>
      %cst_37 = arith.constant 1.000000e+00 : f32
      %216 = vector.broadcast %cst_37 : f32 to vector<8x128xf32>
      %217 = arith.addf %216, %215 : vector<8x128xf32>
      %218 = arith.divf %216, %217 : vector<8x128xf32>
      %219 = vector.extract_strided_slice %212 {offsets = [0, 128], sizes = [8, 128], strides = [1, 1]} : vector<8x512xf32> to vector<8x128xf32>
      %220 = arith.negf %219 : vector<8x128xf32>
      %221 = math.exp %220 : vector<8x128xf32>
      %cst_38 = arith.constant 1.000000e+00 : f32
      %222 = vector.broadcast %cst_38 : f32 to vector<8x128xf32>
      %223 = arith.addf %222, %221 : vector<8x128xf32>
      %224 = arith.divf %222, %223 : vector<8x128xf32>
      %225 = vector.extract_strided_slice %212 {offsets = [0, 256], sizes = [8, 128], strides = [1, 1]} : vector<8x512xf32> to vector<8x128xf32>
      %226 = math.tanh %225 : vector<8x128xf32>
      %227 = vector.extract_strided_slice %212 {offsets = [0, 384], sizes = [8, 128], strides = [1, 1]} : vector<8x512xf32> to vector<8x128xf32>
      %228 = arith.negf %227 : vector<8x128xf32>
      %229 = math.exp %228 : vector<8x128xf32>
      %cst_39 = arith.constant 1.000000e+00 : f32
      %230 = vector.broadcast %cst_39 : f32 to vector<8x128xf32>
      %231 = arith.addf %230, %229 : vector<8x128xf32>
      %232 = arith.divf %230, %231 : vector<8x128xf32>
      %233 = arith.mulf %224, %169 : vector<8x128xf32>
      %234 = arith.mulf %218, %226 : vector<8x128xf32>
      %235 = arith.addf %233, %234 : vector<8x128xf32>
      %236 = math.tanh %235 : vector<8x128xf32>
      %237 = arith.mulf %232, %236 : vector<8x128xf32>
      %238 = vector.broadcast %170 : i32 to vector<8x1xi32>
      %239 = arith.cmpi slt, %238, %11 : vector<8x1xi32>
      %240 = vector.shape_cast %239 : vector<8x1xi1> to vector<8x1xi1>
      %241 = vector.broadcast %240 : vector<8x1xi1> to vector<8x128xi1>
      %242 = arith.select %241, %237, %166 : vector<8x128xi1>, vector<8x128xf32>
      %243 = vector.shape_cast %239 : vector<8x1xi1> to vector<8x1xi1>
      %244 = vector.broadcast %243 : vector<8x1xi1> to vector<8x128xi1>
      %245 = arith.select %244, %235, %169 : vector<8x128xi1>, vector<8x128xf32>
      %c3_i32 = arith.constant 3 : i32
      %246 = arith.addi %3, %c3_i32 : i32
      %247 = arith.index_cast %c3_i32 : i32 to index
      %c0_40 = arith.constant 0 : index
      %c0_41 = arith.constant 0 : index
      %248 = vector.load %arg4[%247, %c0_40, %c0_41] : memref<8x16x512xf32, #tpu.memory_space<vmem>>, vector<1x16x512xf32>
      %249 = vector.shape_cast %248 : vector<1x16x512xf32> to vector<16x512xf32>
      %250 = vector.extract_strided_slice %249 {offsets = [0, 0], sizes = [8, 512], strides = [1, 1]} : vector<16x512xf32> to vector<8x512xf32>
      %cst_42 = arith.constant dense<0.000000e+00> : vector<8x512xf32>
      %251 = tpu.matmul %206, %9, %cst_42 {dimension_numbers = #tpu.dot_dimension_numbers<[1], [0], [0], [1], [0, 0, 1, 1], [], []>} : vector<8x128xf32>, vector<128x512xf32>, vector<8x512xf32> -> vector<8x512xf32>
      %252 = arith.addf %251, %250 : vector<8x512xf32>
      %253 = vector.extract_strided_slice %252 {offsets = [0, 0], sizes = [8, 128], strides = [1, 1]} : vector<8x512xf32> to vector<8x128xf32>
      %254 = arith.negf %253 : vector<8x128xf32>
      %255 = math.exp %254 : vector<8x128xf32>
      %cst_43 = arith.constant 1.000000e+00 : f32
      %256 = vector.broadcast %cst_43 : f32 to vector<8x128xf32>
      %257 = arith.addf %256, %255 : vector<8x128xf32>
      %258 = arith.divf %256, %257 : vector<8x128xf32>
      %259 = vector.extract_strided_slice %252 {offsets = [0, 128], sizes = [8, 128], strides = [1, 1]} : vector<8x512xf32> to vector<8x128xf32>
      %260 = arith.negf %259 : vector<8x128xf32>
      %261 = math.exp %260 : vector<8x128xf32>
      %cst_44 = arith.constant 1.000000e+00 : f32
      %262 = vector.broadcast %cst_44 : f32 to vector<8x128xf32>
      %263 = arith.addf %262, %261 : vector<8x128xf32>
      %264 = arith.divf %262, %263 : vector<8x128xf32>
      %265 = vector.extract_strided_slice %252 {offsets = [0, 256], sizes = [8, 128], strides = [1, 1]} : vector<8x512xf32> to vector<8x128xf32>
      %266 = math.tanh %265 : vector<8x128xf32>
      %267 = vector.extract_strided_slice %252 {offsets = [0, 384], sizes = [8, 128], strides = [1, 1]} : vector<8x512xf32> to vector<8x128xf32>
      %268 = arith.negf %267 : vector<8x128xf32>
      %269 = math.exp %268 : vector<8x128xf32>
      %cst_45 = arith.constant 1.000000e+00 : f32
      %270 = vector.broadcast %cst_45 : f32 to vector<8x128xf32>
      %271 = arith.addf %270, %269 : vector<8x128xf32>
      %272 = arith.divf %270, %271 : vector<8x128xf32>
      %273 = arith.mulf %264, %209 : vector<8x128xf32>
      %274 = arith.mulf %258, %266 : vector<8x128xf32>
      %275 = arith.addf %273, %274 : vector<8x128xf32>
      %276 = math.tanh %275 : vector<8x128xf32>
      %277 = arith.mulf %272, %276 : vector<8x128xf32>
      %278 = vector.broadcast %246 : i32 to vector<8x1xi32>
      %279 = arith.cmpi slt, %278, %10 : vector<8x1xi32>
      %280 = vector.shape_cast %279 : vector<8x1xi1> to vector<8x1xi1>
      %281 = vector.broadcast %280 : vector<8x1xi1> to vector<8x128xi1>
      %282 = arith.select %281, %277, %206 : vector<8x128xi1>, vector<8x128xf32>
      %283 = vector.shape_cast %279 : vector<8x1xi1> to vector<8x1xi1>
      %284 = vector.broadcast %283 : vector<8x1xi1> to vector<8x128xi1>
      %285 = arith.select %284, %275, %209 : vector<8x128xi1>, vector<8x128xf32>
      %286 = vector.extract_strided_slice %249 {offsets = [8, 0], sizes = [8, 512], strides = [1, 1]} : vector<16x512xf32> to vector<8x512xf32>
      %cst_46 = arith.constant dense<0.000000e+00> : vector<8x512xf32>
      %287 = tpu.matmul %242, %9, %cst_46 {dimension_numbers = #tpu.dot_dimension_numbers<[1], [0], [0], [1], [0, 0, 1, 1], [], []>} : vector<8x128xf32>, vector<128x512xf32>, vector<8x512xf32> -> vector<8x512xf32>
      %288 = arith.addf %287, %286 : vector<8x512xf32>
      %289 = vector.extract_strided_slice %288 {offsets = [0, 0], sizes = [8, 128], strides = [1, 1]} : vector<8x512xf32> to vector<8x128xf32>
      %290 = arith.negf %289 : vector<8x128xf32>
      %291 = math.exp %290 : vector<8x128xf32>
      %cst_47 = arith.constant 1.000000e+00 : f32
      %292 = vector.broadcast %cst_47 : f32 to vector<8x128xf32>
      %293 = arith.addf %292, %291 : vector<8x128xf32>
      %294 = arith.divf %292, %293 : vector<8x128xf32>
      %295 = vector.extract_strided_slice %288 {offsets = [0, 128], sizes = [8, 128], strides = [1, 1]} : vector<8x512xf32> to vector<8x128xf32>
      %296 = arith.negf %295 : vector<8x128xf32>
      %297 = math.exp %296 : vector<8x128xf32>
      %cst_48 = arith.constant 1.000000e+00 : f32
      %298 = vector.broadcast %cst_48 : f32 to vector<8x128xf32>
      %299 = arith.addf %298, %297 : vector<8x128xf32>
      %300 = arith.divf %298, %299 : vector<8x128xf32>
      %301 = vector.extract_strided_slice %288 {offsets = [0, 256], sizes = [8, 128], strides = [1, 1]} : vector<8x512xf32> to vector<8x128xf32>
      %302 = math.tanh %301 : vector<8x128xf32>
      %303 = vector.extract_strided_slice %288 {offsets = [0, 384], sizes = [8, 128], strides = [1, 1]} : vector<8x512xf32> to vector<8x128xf32>
      %304 = arith.negf %303 : vector<8x128xf32>
      %305 = math.exp %304 : vector<8x128xf32>
      %cst_49 = arith.constant 1.000000e+00 : f32
      %306 = vector.broadcast %cst_49 : f32 to vector<8x128xf32>
      %307 = arith.addf %306, %305 : vector<8x128xf32>
      %308 = arith.divf %306, %307 : vector<8x128xf32>
      %309 = arith.mulf %300, %245 : vector<8x128xf32>
      %310 = arith.mulf %294, %302 : vector<8x128xf32>
      %311 = arith.addf %309, %310 : vector<8x128xf32>
      %312 = math.tanh %311 : vector<8x128xf32>
      %313 = arith.mulf %308, %312 : vector<8x128xf32>
      %314 = vector.broadcast %246 : i32 to vector<8x1xi32>
      %315 = arith.cmpi slt, %314, %11 : vector<8x1xi32>
      %316 = vector.shape_cast %315 : vector<8x1xi1> to vector<8x1xi1>
      %317 = vector.broadcast %316 : vector<8x1xi1> to vector<8x128xi1>
      %318 = arith.select %317, %313, %242 : vector<8x128xi1>, vector<8x128xf32>
      %319 = vector.shape_cast %315 : vector<8x1xi1> to vector<8x1xi1>
      %320 = vector.broadcast %319 : vector<8x1xi1> to vector<8x128xi1>
      %321 = arith.select %320, %311, %245 : vector<8x128xi1>, vector<8x128xf32>
      %c4_i32 = arith.constant 4 : i32
      %322 = arith.addi %3, %c4_i32 : i32
      %323 = arith.index_cast %c4_i32 : i32 to index
      %c0_50 = arith.constant 0 : index
      %c0_51 = arith.constant 0 : index
      %324 = vector.load %arg4[%323, %c0_50, %c0_51] : memref<8x16x512xf32, #tpu.memory_space<vmem>>, vector<1x16x512xf32>
      %325 = vector.shape_cast %324 : vector<1x16x512xf32> to vector<16x512xf32>
      %326 = vector.extract_strided_slice %325 {offsets = [0, 0], sizes = [8, 512], strides = [1, 1]} : vector<16x512xf32> to vector<8x512xf32>
      %cst_52 = arith.constant dense<0.000000e+00> : vector<8x512xf32>
      %327 = tpu.matmul %282, %9, %cst_52 {dimension_numbers = #tpu.dot_dimension_numbers<[1], [0], [0], [1], [0, 0, 1, 1], [], []>} : vector<8x128xf32>, vector<128x512xf32>, vector<8x512xf32> -> vector<8x512xf32>
      %328 = arith.addf %327, %326 : vector<8x512xf32>
      %329 = vector.extract_strided_slice %328 {offsets = [0, 0], sizes = [8, 128], strides = [1, 1]} : vector<8x512xf32> to vector<8x128xf32>
      %330 = arith.negf %329 : vector<8x128xf32>
      %331 = math.exp %330 : vector<8x128xf32>
      %cst_53 = arith.constant 1.000000e+00 : f32
      %332 = vector.broadcast %cst_53 : f32 to vector<8x128xf32>
      %333 = arith.addf %332, %331 : vector<8x128xf32>
      %334 = arith.divf %332, %333 : vector<8x128xf32>
      %335 = vector.extract_strided_slice %328 {offsets = [0, 128], sizes = [8, 128], strides = [1, 1]} : vector<8x512xf32> to vector<8x128xf32>
      %336 = arith.negf %335 : vector<8x128xf32>
      %337 = math.exp %336 : vector<8x128xf32>
      %cst_54 = arith.constant 1.000000e+00 : f32
      %338 = vector.broadcast %cst_54 : f32 to vector<8x128xf32>
      %339 = arith.addf %338, %337 : vector<8x128xf32>
      %340 = arith.divf %338, %339 : vector<8x128xf32>
      %341 = vector.extract_strided_slice %328 {offsets = [0, 256], sizes = [8, 128], strides = [1, 1]} : vector<8x512xf32> to vector<8x128xf32>
      %342 = math.tanh %341 : vector<8x128xf32>
      %343 = vector.extract_strided_slice %328 {offsets = [0, 384], sizes = [8, 128], strides = [1, 1]} : vector<8x512xf32> to vector<8x128xf32>
      %344 = arith.negf %343 : vector<8x128xf32>
      %345 = math.exp %344 : vector<8x128xf32>
      %cst_55 = arith.constant 1.000000e+00 : f32
      %346 = vector.broadcast %cst_55 : f32 to vector<8x128xf32>
      %347 = arith.addf %346, %345 : vector<8x128xf32>
      %348 = arith.divf %346, %347 : vector<8x128xf32>
      %349 = arith.mulf %340, %285 : vector<8x128xf32>
      %350 = arith.mulf %334, %342 : vector<8x128xf32>
      %351 = arith.addf %349, %350 : vector<8x128xf32>
      %352 = math.tanh %351 : vector<8x128xf32>
      %353 = arith.mulf %348, %352 : vector<8x128xf32>
      %354 = vector.broadcast %322 : i32 to vector<8x1xi32>
      %355 = arith.cmpi slt, %354, %10 : vector<8x1xi32>
      %356 = vector.shape_cast %355 : vector<8x1xi1> to vector<8x1xi1>
      %357 = vector.broadcast %356 : vector<8x1xi1> to vector<8x128xi1>
      %358 = arith.select %357, %353, %282 : vector<8x128xi1>, vector<8x128xf32>
      %359 = vector.shape_cast %355 : vector<8x1xi1> to vector<8x1xi1>
      %360 = vector.broadcast %359 : vector<8x1xi1> to vector<8x128xi1>
      %361 = arith.select %360, %351, %285 : vector<8x128xi1>, vector<8x128xf32>
      %362 = vector.extract_strided_slice %325 {offsets = [8, 0], sizes = [8, 512], strides = [1, 1]} : vector<16x512xf32> to vector<8x512xf32>
      %cst_56 = arith.constant dense<0.000000e+00> : vector<8x512xf32>
      %363 = tpu.matmul %318, %9, %cst_56 {dimension_numbers = #tpu.dot_dimension_numbers<[1], [0], [0], [1], [0, 0, 1, 1], [], []>} : vector<8x128xf32>, vector<128x512xf32>, vector<8x512xf32> -> vector<8x512xf32>
      %364 = arith.addf %363, %362 : vector<8x512xf32>
      %365 = vector.extract_strided_slice %364 {offsets = [0, 0], sizes = [8, 128], strides = [1, 1]} : vector<8x512xf32> to vector<8x128xf32>
      %366 = arith.negf %365 : vector<8x128xf32>
      %367 = math.exp %366 : vector<8x128xf32>
      %cst_57 = arith.constant 1.000000e+00 : f32
      %368 = vector.broadcast %cst_57 : f32 to vector<8x128xf32>
      %369 = arith.addf %368, %367 : vector<8x128xf32>
      %370 = arith.divf %368, %369 : vector<8x128xf32>
      %371 = vector.extract_strided_slice %364 {offsets = [0, 128], sizes = [8, 128], strides = [1, 1]} : vector<8x512xf32> to vector<8x128xf32>
      %372 = arith.negf %371 : vector<8x128xf32>
      %373 = math.exp %372 : vector<8x128xf32>
      %cst_58 = arith.constant 1.000000e+00 : f32
      %374 = vector.broadcast %cst_58 : f32 to vector<8x128xf32>
      %375 = arith.addf %374, %373 : vector<8x128xf32>
      %376 = arith.divf %374, %375 : vector<8x128xf32>
      %377 = vector.extract_strided_slice %364 {offsets = [0, 256], sizes = [8, 128], strides = [1, 1]} : vector<8x512xf32> to vector<8x128xf32>
      %378 = math.tanh %377 : vector<8x128xf32>
      %379 = vector.extract_strided_slice %364 {offsets = [0, 384], sizes = [8, 128], strides = [1, 1]} : vector<8x512xf32> to vector<8x128xf32>
      %380 = arith.negf %379 : vector<8x128xf32>
      %381 = math.exp %380 : vector<8x128xf32>
      %cst_59 = arith.constant 1.000000e+00 : f32
      %382 = vector.broadcast %cst_59 : f32 to vector<8x128xf32>
      %383 = arith.addf %382, %381 : vector<8x128xf32>
      %384 = arith.divf %382, %383 : vector<8x128xf32>
      %385 = arith.mulf %376, %321 : vector<8x128xf32>
      %386 = arith.mulf %370, %378 : vector<8x128xf32>
      %387 = arith.addf %385, %386 : vector<8x128xf32>
      %388 = math.tanh %387 : vector<8x128xf32>
      %389 = arith.mulf %384, %388 : vector<8x128xf32>
      %390 = vector.broadcast %322 : i32 to vector<8x1xi32>
      %391 = arith.cmpi slt, %390, %11 : vector<8x1xi32>
      %392 = vector.shape_cast %391 : vector<8x1xi1> to vector<8x1xi1>
      %393 = vector.broadcast %392 : vector<8x1xi1> to vector<8x128xi1>
      %394 = arith.select %393, %389, %318 : vector<8x128xi1>, vector<8x128xf32>
      %395 = vector.shape_cast %391 : vector<8x1xi1> to vector<8x1xi1>
      %396 = vector.broadcast %395 : vector<8x1xi1> to vector<8x128xi1>
      %397 = arith.select %396, %387, %321 : vector<8x128xi1>, vector<8x128xf32>
      %c5_i32 = arith.constant 5 : i32
      %398 = arith.addi %3, %c5_i32 : i32
      %399 = arith.index_cast %c5_i32 : i32 to index
      %c0_60 = arith.constant 0 : index
      %c0_61 = arith.constant 0 : index
      %400 = vector.load %arg4[%399, %c0_60, %c0_61] : memref<8x16x512xf32, #tpu.memory_space<vmem>>, vector<1x16x512xf32>
      %401 = vector.shape_cast %400 : vector<1x16x512xf32> to vector<16x512xf32>
      %402 = vector.extract_strided_slice %401 {offsets = [0, 0], sizes = [8, 512], strides = [1, 1]} : vector<16x512xf32> to vector<8x512xf32>
      %cst_62 = arith.constant dense<0.000000e+00> : vector<8x512xf32>
      %403 = tpu.matmul %358, %9, %cst_62 {dimension_numbers = #tpu.dot_dimension_numbers<[1], [0], [0], [1], [0, 0, 1, 1], [], []>} : vector<8x128xf32>, vector<128x512xf32>, vector<8x512xf32> -> vector<8x512xf32>
      %404 = arith.addf %403, %402 : vector<8x512xf32>
      %405 = vector.extract_strided_slice %404 {offsets = [0, 0], sizes = [8, 128], strides = [1, 1]} : vector<8x512xf32> to vector<8x128xf32>
      %406 = arith.negf %405 : vector<8x128xf32>
      %407 = math.exp %406 : vector<8x128xf32>
      %cst_63 = arith.constant 1.000000e+00 : f32
      %408 = vector.broadcast %cst_63 : f32 to vector<8x128xf32>
      %409 = arith.addf %408, %407 : vector<8x128xf32>
      %410 = arith.divf %408, %409 : vector<8x128xf32>
      %411 = vector.extract_strided_slice %404 {offsets = [0, 128], sizes = [8, 128], strides = [1, 1]} : vector<8x512xf32> to vector<8x128xf32>
      %412 = arith.negf %411 : vector<8x128xf32>
      %413 = math.exp %412 : vector<8x128xf32>
      %cst_64 = arith.constant 1.000000e+00 : f32
      %414 = vector.broadcast %cst_64 : f32 to vector<8x128xf32>
      %415 = arith.addf %414, %413 : vector<8x128xf32>
      %416 = arith.divf %414, %415 : vector<8x128xf32>
      %417 = vector.extract_strided_slice %404 {offsets = [0, 256], sizes = [8, 128], strides = [1, 1]} : vector<8x512xf32> to vector<8x128xf32>
      %418 = math.tanh %417 : vector<8x128xf32>
      %419 = vector.extract_strided_slice %404 {offsets = [0, 384], sizes = [8, 128], strides = [1, 1]} : vector<8x512xf32> to vector<8x128xf32>
      %420 = arith.negf %419 : vector<8x128xf32>
      %421 = math.exp %420 : vector<8x128xf32>
      %cst_65 = arith.constant 1.000000e+00 : f32
      %422 = vector.broadcast %cst_65 : f32 to vector<8x128xf32>
      %423 = arith.addf %422, %421 : vector<8x128xf32>
      %424 = arith.divf %422, %423 : vector<8x128xf32>
      %425 = arith.mulf %416, %361 : vector<8x128xf32>
      %426 = arith.mulf %410, %418 : vector<8x128xf32>
      %427 = arith.addf %425, %426 : vector<8x128xf32>
      %428 = math.tanh %427 : vector<8x128xf32>
      %429 = arith.mulf %424, %428 : vector<8x128xf32>
      %430 = vector.broadcast %398 : i32 to vector<8x1xi32>
      %431 = arith.cmpi slt, %430, %10 : vector<8x1xi32>
      %432 = vector.shape_cast %431 : vector<8x1xi1> to vector<8x1xi1>
      %433 = vector.broadcast %432 : vector<8x1xi1> to vector<8x128xi1>
      %434 = arith.select %433, %429, %358 : vector<8x128xi1>, vector<8x128xf32>
      %435 = vector.shape_cast %431 : vector<8x1xi1> to vector<8x1xi1>
      %436 = vector.broadcast %435 : vector<8x1xi1> to vector<8x128xi1>
      %437 = arith.select %436, %427, %361 : vector<8x128xi1>, vector<8x128xf32>
      %438 = vector.extract_strided_slice %401 {offsets = [8, 0], sizes = [8, 512], strides = [1, 1]} : vector<16x512xf32> to vector<8x512xf32>
      %cst_66 = arith.constant dense<0.000000e+00> : vector<8x512xf32>
      %439 = tpu.matmul %394, %9, %cst_66 {dimension_numbers = #tpu.dot_dimension_numbers<[1], [0], [0], [1], [0, 0, 1, 1], [], []>} : vector<8x128xf32>, vector<128x512xf32>, vector<8x512xf32> -> vector<8x512xf32>
      %440 = arith.addf %439, %438 : vector<8x512xf32>
      %441 = vector.extract_strided_slice %440 {offsets = [0, 0], sizes = [8, 128], strides = [1, 1]} : vector<8x512xf32> to vector<8x128xf32>
      %442 = arith.negf %441 : vector<8x128xf32>
      %443 = math.exp %442 : vector<8x128xf32>
      %cst_67 = arith.constant 1.000000e+00 : f32
      %444 = vector.broadcast %cst_67 : f32 to vector<8x128xf32>
      %445 = arith.addf %444, %443 : vector<8x128xf32>
      %446 = arith.divf %444, %445 : vector<8x128xf32>
      %447 = vector.extract_strided_slice %440 {offsets = [0, 128], sizes = [8, 128], strides = [1, 1]} : vector<8x512xf32> to vector<8x128xf32>
      %448 = arith.negf %447 : vector<8x128xf32>
      %449 = math.exp %448 : vector<8x128xf32>
      %cst_68 = arith.constant 1.000000e+00 : f32
      %450 = vector.broadcast %cst_68 : f32 to vector<8x128xf32>
      %451 = arith.addf %450, %449 : vector<8x128xf32>
      %452 = arith.divf %450, %451 : vector<8x128xf32>
      %453 = vector.extract_strided_slice %440 {offsets = [0, 256], sizes = [8, 128], strides = [1, 1]} : vector<8x512xf32> to vector<8x128xf32>
      %454 = math.tanh %453 : vector<8x128xf32>
      %455 = vector.extract_strided_slice %440 {offsets = [0, 384], sizes = [8, 128], strides = [1, 1]} : vector<8x512xf32> to vector<8x128xf32>
      %456 = arith.negf %455 : vector<8x128xf32>
      %457 = math.exp %456 : vector<8x128xf32>
      %cst_69 = arith.constant 1.000000e+00 : f32
      %458 = vector.broadcast %cst_69 : f32 to vector<8x128xf32>
      %459 = arith.addf %458, %457 : vector<8x128xf32>
      %460 = arith.divf %458, %459 : vector<8x128xf32>
      %461 = arith.mulf %452, %397 : vector<8x128xf32>
      %462 = arith.mulf %446, %454 : vector<8x128xf32>
      %463 = arith.addf %461, %462 : vector<8x128xf32>
      %464 = math.tanh %463 : vector<8x128xf32>
      %465 = arith.mulf %460, %464 : vector<8x128xf32>
      %466 = vector.broadcast %398 : i32 to vector<8x1xi32>
      %467 = arith.cmpi slt, %466, %11 : vector<8x1xi32>
      %468 = vector.shape_cast %467 : vector<8x1xi1> to vector<8x1xi1>
      %469 = vector.broadcast %468 : vector<8x1xi1> to vector<8x128xi1>
      %470 = arith.select %469, %465, %394 : vector<8x128xi1>, vector<8x128xf32>
      %471 = vector.shape_cast %467 : vector<8x1xi1> to vector<8x1xi1>
      %472 = vector.broadcast %471 : vector<8x1xi1> to vector<8x128xi1>
      %473 = arith.select %472, %463, %397 : vector<8x128xi1>, vector<8x128xf32>
      %c6_i32 = arith.constant 6 : i32
      %474 = arith.addi %3, %c6_i32 : i32
      %475 = arith.index_cast %c6_i32 : i32 to index
      %c0_70 = arith.constant 0 : index
      %c0_71 = arith.constant 0 : index
      %476 = vector.load %arg4[%475, %c0_70, %c0_71] : memref<8x16x512xf32, #tpu.memory_space<vmem>>, vector<1x16x512xf32>
      %477 = vector.shape_cast %476 : vector<1x16x512xf32> to vector<16x512xf32>
      %478 = vector.extract_strided_slice %477 {offsets = [0, 0], sizes = [8, 512], strides = [1, 1]} : vector<16x512xf32> to vector<8x512xf32>
      %cst_72 = arith.constant dense<0.000000e+00> : vector<8x512xf32>
      %479 = tpu.matmul %434, %9, %cst_72 {dimension_numbers = #tpu.dot_dimension_numbers<[1], [0], [0], [1], [0, 0, 1, 1], [], []>} : vector<8x128xf32>, vector<128x512xf32>, vector<8x512xf32> -> vector<8x512xf32>
      %480 = arith.addf %479, %478 : vector<8x512xf32>
      %481 = vector.extract_strided_slice %480 {offsets = [0, 0], sizes = [8, 128], strides = [1, 1]} : vector<8x512xf32> to vector<8x128xf32>
      %482 = arith.negf %481 : vector<8x128xf32>
      %483 = math.exp %482 : vector<8x128xf32>
      %cst_73 = arith.constant 1.000000e+00 : f32
      %484 = vector.broadcast %cst_73 : f32 to vector<8x128xf32>
      %485 = arith.addf %484, %483 : vector<8x128xf32>
      %486 = arith.divf %484, %485 : vector<8x128xf32>
      %487 = vector.extract_strided_slice %480 {offsets = [0, 128], sizes = [8, 128], strides = [1, 1]} : vector<8x512xf32> to vector<8x128xf32>
      %488 = arith.negf %487 : vector<8x128xf32>
      %489 = math.exp %488 : vector<8x128xf32>
      %cst_74 = arith.constant 1.000000e+00 : f32
      %490 = vector.broadcast %cst_74 : f32 to vector<8x128xf32>
      %491 = arith.addf %490, %489 : vector<8x128xf32>
      %492 = arith.divf %490, %491 : vector<8x128xf32>
      %493 = vector.extract_strided_slice %480 {offsets = [0, 256], sizes = [8, 128], strides = [1, 1]} : vector<8x512xf32> to vector<8x128xf32>
      %494 = math.tanh %493 : vector<8x128xf32>
      %495 = vector.extract_strided_slice %480 {offsets = [0, 384], sizes = [8, 128], strides = [1, 1]} : vector<8x512xf32> to vector<8x128xf32>
      %496 = arith.negf %495 : vector<8x128xf32>
      %497 = math.exp %496 : vector<8x128xf32>
      %cst_75 = arith.constant 1.000000e+00 : f32
      %498 = vector.broadcast %cst_75 : f32 to vector<8x128xf32>
      %499 = arith.addf %498, %497 : vector<8x128xf32>
      %500 = arith.divf %498, %499 : vector<8x128xf32>
      %501 = arith.mulf %492, %437 : vector<8x128xf32>
      %502 = arith.mulf %486, %494 : vector<8x128xf32>
      %503 = arith.addf %501, %502 : vector<8x128xf32>
      %504 = math.tanh %503 : vector<8x128xf32>
      %505 = arith.mulf %500, %504 : vector<8x128xf32>
      %506 = vector.broadcast %474 : i32 to vector<8x1xi32>
      %507 = arith.cmpi slt, %506, %10 : vector<8x1xi32>
      %508 = vector.shape_cast %507 : vector<8x1xi1> to vector<8x1xi1>
      %509 = vector.broadcast %508 : vector<8x1xi1> to vector<8x128xi1>
      %510 = arith.select %509, %505, %434 : vector<8x128xi1>, vector<8x128xf32>
      %511 = vector.shape_cast %507 : vector<8x1xi1> to vector<8x1xi1>
      %512 = vector.broadcast %511 : vector<8x1xi1> to vector<8x128xi1>
      %513 = arith.select %512, %503, %437 : vector<8x128xi1>, vector<8x128xf32>
      %514 = vector.extract_strided_slice %477 {offsets = [8, 0], sizes = [8, 512], strides = [1, 1]} : vector<16x512xf32> to vector<8x512xf32>
      %cst_76 = arith.constant dense<0.000000e+00> : vector<8x512xf32>
      %515 = tpu.matmul %470, %9, %cst_76 {dimension_numbers = #tpu.dot_dimension_numbers<[1], [0], [0], [1], [0, 0, 1, 1], [], []>} : vector<8x128xf32>, vector<128x512xf32>, vector<8x512xf32> -> vector<8x512xf32>
      %516 = arith.addf %515, %514 : vector<8x512xf32>
      %517 = vector.extract_strided_slice %516 {offsets = [0, 0], sizes = [8, 128], strides = [1, 1]} : vector<8x512xf32> to vector<8x128xf32>
      %518 = arith.negf %517 : vector<8x128xf32>
      %519 = math.exp %518 : vector<8x128xf32>
      %cst_77 = arith.constant 1.000000e+00 : f32
      %520 = vector.broadcast %cst_77 : f32 to vector<8x128xf32>
      %521 = arith.addf %520, %519 : vector<8x128xf32>
      %522 = arith.divf %520, %521 : vector<8x128xf32>
      %523 = vector.extract_strided_slice %516 {offsets = [0, 128], sizes = [8, 128], strides = [1, 1]} : vector<8x512xf32> to vector<8x128xf32>
      %524 = arith.negf %523 : vector<8x128xf32>
      %525 = math.exp %524 : vector<8x128xf32>
      %cst_78 = arith.constant 1.000000e+00 : f32
      %526 = vector.broadcast %cst_78 : f32 to vector<8x128xf32>
      %527 = arith.addf %526, %525 : vector<8x128xf32>
      %528 = arith.divf %526, %527 : vector<8x128xf32>
      %529 = vector.extract_strided_slice %516 {offsets = [0, 256], sizes = [8, 128], strides = [1, 1]} : vector<8x512xf32> to vector<8x128xf32>
      %530 = math.tanh %529 : vector<8x128xf32>
      %531 = vector.extract_strided_slice %516 {offsets = [0, 384], sizes = [8, 128], strides = [1, 1]} : vector<8x512xf32> to vector<8x128xf32>
      %532 = arith.negf %531 : vector<8x128xf32>
      %533 = math.exp %532 : vector<8x128xf32>
      %cst_79 = arith.constant 1.000000e+00 : f32
      %534 = vector.broadcast %cst_79 : f32 to vector<8x128xf32>
      %535 = arith.addf %534, %533 : vector<8x128xf32>
      %536 = arith.divf %534, %535 : vector<8x128xf32>
      %537 = arith.mulf %528, %473 : vector<8x128xf32>
      %538 = arith.mulf %522, %530 : vector<8x128xf32>
      %539 = arith.addf %537, %538 : vector<8x128xf32>
      %540 = math.tanh %539 : vector<8x128xf32>
      %541 = arith.mulf %536, %540 : vector<8x128xf32>
      %542 = vector.broadcast %474 : i32 to vector<8x1xi32>
      %543 = arith.cmpi slt, %542, %11 : vector<8x1xi32>
      %544 = vector.shape_cast %543 : vector<8x1xi1> to vector<8x1xi1>
      %545 = vector.broadcast %544 : vector<8x1xi1> to vector<8x128xi1>
      %546 = arith.select %545, %541, %470 : vector<8x128xi1>, vector<8x128xf32>
      %547 = vector.shape_cast %543 : vector<8x1xi1> to vector<8x1xi1>
      %548 = vector.broadcast %547 : vector<8x1xi1> to vector<8x128xi1>
      %549 = arith.select %548, %539, %473 : vector<8x128xi1>, vector<8x128xf32>
      %c7_i32 = arith.constant 7 : i32
      %550 = arith.addi %3, %c7_i32 : i32
      %551 = arith.index_cast %c7_i32 : i32 to index
      %c0_80 = arith.constant 0 : index
      %c0_81 = arith.constant 0 : index
      %552 = vector.load %arg4[%551, %c0_80, %c0_81] : memref<8x16x512xf32, #tpu.memory_space<vmem>>, vector<1x16x512xf32>
      %553 = vector.shape_cast %552 : vector<1x16x512xf32> to vector<16x512xf32>
      %554 = vector.extract_strided_slice %553 {offsets = [0, 0], sizes = [8, 512], strides = [1, 1]} : vector<16x512xf32> to vector<8x512xf32>
      %cst_82 = arith.constant dense<0.000000e+00> : vector<8x512xf32>
      %555 = tpu.matmul %510, %9, %cst_82 {dimension_numbers = #tpu.dot_dimension_numbers<[1], [0], [0], [1], [0, 0, 1, 1], [], []>} : vector<8x128xf32>, vector<128x512xf32>, vector<8x512xf32> -> vector<8x512xf32>
      %556 = arith.addf %555, %554 : vector<8x512xf32>
      %557 = vector.extract_strided_slice %556 {offsets = [0, 0], sizes = [8, 128], strides = [1, 1]} : vector<8x512xf32> to vector<8x128xf32>
      %558 = arith.negf %557 : vector<8x128xf32>
      %559 = math.exp %558 : vector<8x128xf32>
      %cst_83 = arith.constant 1.000000e+00 : f32
      %560 = vector.broadcast %cst_83 : f32 to vector<8x128xf32>
      %561 = arith.addf %560, %559 : vector<8x128xf32>
      %562 = arith.divf %560, %561 : vector<8x128xf32>
      %563 = vector.extract_strided_slice %556 {offsets = [0, 128], sizes = [8, 128], strides = [1, 1]} : vector<8x512xf32> to vector<8x128xf32>
      %564 = arith.negf %563 : vector<8x128xf32>
      %565 = math.exp %564 : vector<8x128xf32>
      %cst_84 = arith.constant 1.000000e+00 : f32
      %566 = vector.broadcast %cst_84 : f32 to vector<8x128xf32>
      %567 = arith.addf %566, %565 : vector<8x128xf32>
      %568 = arith.divf %566, %567 : vector<8x128xf32>
      %569 = vector.extract_strided_slice %556 {offsets = [0, 256], sizes = [8, 128], strides = [1, 1]} : vector<8x512xf32> to vector<8x128xf32>
      %570 = math.tanh %569 : vector<8x128xf32>
      %571 = vector.extract_strided_slice %556 {offsets = [0, 384], sizes = [8, 128], strides = [1, 1]} : vector<8x512xf32> to vector<8x128xf32>
      %572 = arith.negf %571 : vector<8x128xf32>
      %573 = math.exp %572 : vector<8x128xf32>
      %cst_85 = arith.constant 1.000000e+00 : f32
      %574 = vector.broadcast %cst_85 : f32 to vector<8x128xf32>
      %575 = arith.addf %574, %573 : vector<8x128xf32>
      %576 = arith.divf %574, %575 : vector<8x128xf32>
      %577 = arith.mulf %568, %513 : vector<8x128xf32>
      %578 = arith.mulf %562, %570 : vector<8x128xf32>
      %579 = arith.addf %577, %578 : vector<8x128xf32>
      %580 = math.tanh %579 : vector<8x128xf32>
      %581 = arith.mulf %576, %580 : vector<8x128xf32>
      %582 = vector.broadcast %550 : i32 to vector<8x1xi32>
      %583 = arith.cmpi slt, %582, %10 : vector<8x1xi32>
      %584 = vector.shape_cast %583 : vector<8x1xi1> to vector<8x1xi1>
      %585 = vector.broadcast %584 : vector<8x1xi1> to vector<8x128xi1>
      %586 = arith.select %585, %581, %510 : vector<8x128xi1>, vector<8x128xf32>
      %587 = vector.shape_cast %583 : vector<8x1xi1> to vector<8x1xi1>
      %588 = vector.broadcast %587 : vector<8x1xi1> to vector<8x128xi1>
      %589 = arith.select %588, %579, %513 : vector<8x128xi1>, vector<8x128xf32>
      %590 = vector.extract_strided_slice %553 {offsets = [8, 0], sizes = [8, 512], strides = [1, 1]} : vector<16x512xf32> to vector<8x512xf32>
      %cst_86 = arith.constant dense<0.000000e+00> : vector<8x512xf32>
      %591 = tpu.matmul %546, %9, %cst_86 {dimension_numbers = #tpu.dot_dimension_numbers<[1], [0], [0], [1], [0, 0, 1, 1], [], []>} : vector<8x128xf32>, vector<128x512xf32>, vector<8x512xf32> -> vector<8x512xf32>
      %592 = arith.addf %591, %590 : vector<8x512xf32>
      %593 = vector.extract_strided_slice %592 {offsets = [0, 0], sizes = [8, 128], strides = [1, 1]} : vector<8x512xf32> to vector<8x128xf32>
      %594 = arith.negf %593 : vector<8x128xf32>
      %595 = math.exp %594 : vector<8x128xf32>
      %cst_87 = arith.constant 1.000000e+00 : f32
      %596 = vector.broadcast %cst_87 : f32 to vector<8x128xf32>
      %597 = arith.addf %596, %595 : vector<8x128xf32>
      %598 = arith.divf %596, %597 : vector<8x128xf32>
      %599 = vector.extract_strided_slice %592 {offsets = [0, 128], sizes = [8, 128], strides = [1, 1]} : vector<8x512xf32> to vector<8x128xf32>
      %600 = arith.negf %599 : vector<8x128xf32>
      %601 = math.exp %600 : vector<8x128xf32>
      %cst_88 = arith.constant 1.000000e+00 : f32
      %602 = vector.broadcast %cst_88 : f32 to vector<8x128xf32>
      %603 = arith.addf %602, %601 : vector<8x128xf32>
      %604 = arith.divf %602, %603 : vector<8x128xf32>
      %605 = vector.extract_strided_slice %592 {offsets = [0, 256], sizes = [8, 128], strides = [1, 1]} : vector<8x512xf32> to vector<8x128xf32>
      %606 = math.tanh %605 : vector<8x128xf32>
      %607 = vector.extract_strided_slice %592 {offsets = [0, 384], sizes = [8, 128], strides = [1, 1]} : vector<8x512xf32> to vector<8x128xf32>
      %608 = arith.negf %607 : vector<8x128xf32>
      %609 = math.exp %608 : vector<8x128xf32>
      %cst_89 = arith.constant 1.000000e+00 : f32
      %610 = vector.broadcast %cst_89 : f32 to vector<8x128xf32>
      %611 = arith.addf %610, %609 : vector<8x128xf32>
      %612 = arith.divf %610, %611 : vector<8x128xf32>
      %613 = arith.mulf %604, %549 : vector<8x128xf32>
      %614 = arith.mulf %598, %606 : vector<8x128xf32>
      %615 = arith.addf %613, %614 : vector<8x128xf32>
      %616 = math.tanh %615 : vector<8x128xf32>
      %617 = arith.mulf %612, %616 : vector<8x128xf32>
      %618 = vector.broadcast %550 : i32 to vector<8x1xi32>
      %619 = arith.cmpi slt, %618, %11 : vector<8x1xi32>
      %620 = vector.shape_cast %619 : vector<8x1xi1> to vector<8x1xi1>
      %621 = vector.broadcast %620 : vector<8x1xi1> to vector<8x128xi1>
      %622 = arith.select %621, %617, %546 : vector<8x128xi1>, vector<8x128xf32>
      %623 = vector.shape_cast %619 : vector<8x1xi1> to vector<8x1xi1>
      %624 = vector.broadcast %623 : vector<8x1xi1> to vector<8x128xi1>
      %625 = arith.select %624, %615, %549 : vector<8x128xi1>, vector<8x128xf32>
      %c8_i32_90 = arith.constant 8 : i32
      %c0_91 = arith.constant 0 : index
      %c0_92 = arith.constant 0 : index
      %626 = vector.load %arg6[%c0_91, %c0_92] : memref<16x128xf32, #tpu.memory_space<vmem>>, vector<8x128xf32>
      tpu.vector_store %arg6[%c0_91, %c0_92], %586 {strides = array<i32>} : memref<16x128xf32, #tpu.memory_space<vmem>>, vector<8x128xf32>,
      %c8 = arith.constant 8 : index
      %c0_93 = arith.constant 0 : index
      %627 = vector.load %arg6[%c8, %c0_93] : memref<16x128xf32, #tpu.memory_space<vmem>>, vector<8x128xf32>
      tpu.vector_store %arg6[%c8, %c0_93], %622 {strides = array<i32>} : memref<16x128xf32, #tpu.memory_space<vmem>>, vector<8x128xf32>,
      %c0_94 = arith.constant 0 : index
      %c0_95 = arith.constant 0 : index
      %628 = vector.load %arg7[%c0_94, %c0_95] : memref<16x128xf32, #tpu.memory_space<vmem>>, vector<8x128xf32>
      tpu.vector_store %arg7[%c0_94, %c0_95], %589 {strides = array<i32>} : memref<16x128xf32, #tpu.memory_space<vmem>>, vector<8x128xf32>,
      %c8_96 = arith.constant 8 : index
      %c0_97 = arith.constant 0 : index
      %629 = vector.load %arg7[%c8_96, %c0_97] : memref<16x128xf32, #tpu.memory_space<vmem>>, vector<8x128xf32>
      tpu.vector_store %arg7[%c8_96, %c0_97], %625 {strides = array<i32>} : memref<16x128xf32, #tpu.memory_space<vmem>>, vector<8x128xf32>,
    } else {
    }
    return
  }
  func.func @transform_0(%arg0: i32, %arg1: i32, %arg2: memref<1xi32, #tpu.memory_space<smem>>) -> (i32, i32) {
    %c0_i32 = arith.constant 0 : i32
    %c0_i32_0 = arith.constant 0 : i32
    return %arg0, %c0_i32 : i32, i32
  }
  func.func @transform_1(%arg0: i32, %arg1: i32, %arg2: memref<1xi32, #tpu.memory_space<smem>>) -> (i32, i32, i32) {
    %c0_i32 = arith.constant 0 : i32
    %c0_i32_0 = arith.constant 0 : i32
    return %arg1, %arg0, %c0_i32 : i32, i32, i32
  }
  func.func @transform_2(%arg0: i32, %arg1: i32, %arg2: memref<1xi32, #tpu.memory_space<smem>>) -> (i32, i32) {
    %c0_i32 = arith.constant 0 : i32
    %c0_i32_0 = arith.constant 0 : i32
    %c0_i32_1 = arith.constant 0 : i32
    return %c0_i32, %c0_i32_0 : i32, i32
  }
  func.func @transform_3(%arg0: i32, %arg1: i32, %arg2: memref<1xi32, #tpu.memory_space<smem>>) -> (i32, i32) {
    %c0_i32 = arith.constant 0 : i32
    %c0_i32_0 = arith.constant 0 : i32
    return %arg0, %c0_i32 : i32, i32
  }
}

</mosaic_0001>

<bundles_post_ra>
// kernel: lstm_embedder_forward.1
= control target key start
LH: loop header
LB: loop body
LE: loop exit
PB: predicated region body
PF: predicated region fallthrough
CT: control target
= control target key end

     0   :  { %v4385_v0 = vmov 0.0   ;;  %s5636_s0 = inlined_call_operand.<no memory space> [shape: s32[1], index: 0, kind: input, shape index: {}]   ;;  %s5637_s1 = inlined_call_operand.vmem [shape: s32[16,1], index: 1, kind: input, shape index: {}]   ;;  %s5638_s2 = inlined_call_operand.vmem [shape: f32[8,16,512], index: 2, kind: input, shape index: {}]   ;;  %s5639_s3 = inlined_call_operand.vmem [shape: f32[128,512], index: 3, kind: input, shape index: {}]   ;;  %s5640_s4 = inlined_call_operand.vmem [shape: f32[16,128], index: 4, kind: output, shape index: {}]  }
   0x1   :  { %20 = vst [vmem:[%s5640_s4] sm:$0xff] %v4385_v0  ;;  %21 = vst [vmem:[%s5640_s4 + $0x8] sm:$0xff] %v4385_v0  ;;  %p2979_p0 = scmp.le.s32.totalorder %s5636_s0, 0 }
   0x2   :  { %22 = vst [vmem:[#allocation2] sm:$0xff] %v4385_v0  ;;  %23 = vst [vmem:[#allocation2 + $0x8] sm:$0xff] %v4385_v0  ;;  %v33_v1 = vld [vmem:[%s5639_s3 + $0x8] sm:$0xff] (!%p2979_p0)  ;;  %v32_v3 = vld [vmem:[%s5639_s3] sm:$0xff] (!%p2979_p0)  ;;  %v4386_v8 = vmov (!%p2979_p0), 0.0   ;;  %v4387_v14 = vmov (!%p2979_p0), 0  }
   0x3   :  { %29 = sbr.rel (%p2979_p0) target bundleno = 2143 (0x85f), region = 21  ;;  %v37_v2 = vld [vmem:[%s5639_s3 + $0x28] sm:$0xff] (!%p2979_p0)  ;;  %v36_v5 = vld [vmem:[%s5639_s3 + $0x20] sm:$0xff] (!%p2979_p0)  ;;  %172 = vmatprep.mubr.f32.mxu0 (!%p2979_p0), %v4386_v8  ;;  %243 = vmatprep.mubr.f32.mxu1 (!%p2979_p0), %v4386_v8  ;;  %v35_v21 = vld [vmem:[%s5639_s3 + $0x18] sm:$0xff] (!%p2979_p0) }
   0x4   :  { %v4431_v4 = vpack.c.bf16 (!%p2979_p0), %v37_v2, %v33_v1  ;;  %v41_v6 = vld [vmem:[%s5639_s3 + $0x48] sm:$0xff] (!%p2979_p0)  ;;  %v4444_v9 = vpack.c.bf16 (!%p2979_p0), %v36_v5, %v32_v3  ;;  %v40_v11 = vld [vmem:[%s5639_s3 + $0x40] sm:$0xff] (!%p2979_p0)  ;;  %4127 = vset.pattern.permute.xlu0 (!%p2979_p0), %v4387_v14  ;;  %4128 = vset.pattern.permute.xlu1 (!%p2979_p0), %v4387_v14  ;;  %v39_v22 = vld [vmem:[%s5639_s3 + $0x38] sm:$0xff] (!%p2979_p0) }
   0x5   :  { %v45_v7 = vld [vmem:[%s5639_s3 + $0x68] sm:$0xff] (!%p2979_p0)  ;;  %v44_v12 = vld [vmem:[%s5639_s3 + $0x60] sm:$0xff] (!%p2979_p0)  ;;  %v4487_v24 = vpack.c.bf16 (!%p2979_p0), %v39_v22, %v35_v21  ;;  %v34_v25 = vld [vmem:[%s5639_s3 + $0x10] sm:$0xff] (!%p2979_p0) }
   0x6   :  { %v4446_v10 = vpack.c.bf16 (!%p2979_p0), %v45_v7, %v41_v6  ;;  %v49_v13 = vld [vmem:[%s5639_s3 + $0x88] sm:$0xff] (!%p2979_p0)  ;;  %3101 = vmatprep.subr.bf16.mxu0 (!%p2979_p0), %v4431_v4  ;;  %v4464_v16 = vpack.c.bf16 (!%p2979_p0), %v44_v12, %v40_v11  ;;  %v48_v17 = vld [vmem:[%s5639_s3 + $0x80] sm:$0xff] (!%p2979_p0)  ;;  %v38_v26 = vld [vmem:[%s5639_s3 + $0x30] sm:$0xff] (!%p2979_p0) }
   0x7   :  { %v53_v15 = vld [vmem:[%s5639_s3 + $0xa8] sm:$0xff] (!%p2979_p0)  ;;  %3103 = vmatpush1.bf16.msra.mxu0 (!%p2979_p0), %v4444_v9  ;;  %v52_v18 = vld [vmem:[%s5639_s3 + $0xa0] sm:$0xff] (!%p2979_p0)  ;;  %v4495_v27 = vpack.c.bf16 (!%p2979_p0), %v38_v26, %v34_v25  ;;  %3133 = vmatprep.subr.bf16.mxu1 (!%p2979_p0), %v4487_v24  ;;  %v43_v29 = vld [vmem:[%s5639_s3 + $0x58] sm:$0xff] (!%p2979_p0) }
   0x8   :  { %3105 = vmatprep.subr.bf16.mxu0 (!%p2979_p0), %v4446_v10  ;;  %v4473_v19 = vpack.c.bf16 (!%p2979_p0), %v53_v15, %v49_v13  ;;  %v57_v20 = vld [vmem:[%s5639_s3 + $0xc8] sm:$0xff] (!%p2979_p0)  ;;  %v4498_v28 = vpack.c.bf16 (!%p2979_p0), %v52_v18, %v48_v17  ;;  %v47_v30 = vld [vmem:[%s5639_s3 + $0x78] sm:$0xff] (!%p2979_p0)  ;;  %v42_v31 = vld [vmem:[%s5639_s3 + $0x50] sm:$0xff] (!%p2979_p0) }
   0x9   :  { %v61_v23 = vld [vmem:[%s5639_s3 + $0xe8] sm:$0xff] (!%p2979_p0)  ;;  %v56_v33 = vld [vmem:[%s5639_s3 + $0xc0] sm:$0xff] (!%p2979_p0)  ;;  %3135 = vmatpush1.bf16.msra.mxu1 (!%p2979_p0), %v4495_v27  ;;  %v4520_v35 = vpack.c.bf16 (!%p2979_p0), %v47_v30, %v43_v29  ;;  %v46_v36 = vld [vmem:[%s5639_s3 + $0x70] sm:$0xff] (!%p2979_p0) }
   0xa   :  { %v4511_v32 = vpack.c.bf16 %v61_v23, %v57_v20  ;;  %v60_v34 = vld [vmem:[%s5639_s3 + $0xe0] sm:$0xff]  ;;  %v65_v37 = vld [vmem:[%s5639_s3 + $0x108] sm:$0xff]  ;;  %v4531_v39 = vpack.c.bf16 %v46_v36, %v42_v31  ;;  %v51_v40 = vld [vmem:[%s5639_s3 + $0x98] sm:$0xff] }
   0xb   :  { %3107 = vmatpush1.bf16.msra.mxu0 %v4464_v16  ;;  %v69_v38 = vld [vmem:[%s5639_s3 + $0x128] sm:$0xff]  ;;  %3137 = vmatprep.subr.bf16.mxu1 %v4520_v35  ;;  %v55_v41 = vld [vmem:[%s5639_s3 + $0xb8] sm:$0xff]  ;;  %v50_v42 = vld [vmem:[%s5639_s3 + $0x90] sm:$0xff]  ;;  %v4547_v44 = vpack.c.bf16 %v60_v34, %v56_v33 }
   0xc   :  { %3109 = vmatprep.subr.bf16.mxu0 %v4473_v19  ;;  %v54_v43 = vld [vmem:[%s5639_s3 + $0xb0] sm:$0xff]  ;;  %v64_v45 = vld [vmem:[%s5639_s3 + $0x100] sm:$0xff]  ;;  %v4555_v47 = vpack.c.bf16 %v55_v41, %v51_v40  ;;  %v4558_v48 = vpack.c.bf16 %v69_v38, %v65_v37  ;;  %v73_v49 = vld [vmem:[%s5639_s3 + $0x148] sm:$0xff] }
   0xd   :  { %v68_v46 = vld [vmem:[%s5639_s3 + $0x120] sm:$0xff]  ;;  %3139 = vmatpush1.bf16.msra.mxu1 %v4531_v39  ;;  %v4564_v50 = vpack.c.bf16 %v54_v43, %v50_v42  ;;  %v59_v51 = vld [vmem:[%s5639_s3 + $0xd8] sm:$0xff]  ;;  %v77_v53 = vld [vmem:[%s5639_s3 + $0x168] sm:$0xff] }
   0xe   :  { %v63_v52 = vld [vmem:[%s5639_s3 + $0xf8] sm:$0xff]  ;;  %3141 = vmatprep.subr.bf16.mxu1 %v4555_v47  ;;  %v58_v55 = vld [vmem:[%s5639_s3 + $0xd0] sm:$0xff]  ;;  %v4585_v57 = vpack.c.bf16 %v68_v46, %v64_v45  ;;  %v4594_v60 = vpack.c.bf16 %v77_v53, %v73_v49  ;;  %v72_v61 = vld [vmem:[%s5639_s3 + $0x140] sm:$0xff] }
   0xf   :  { %3111 = vmatpush1.bf16.msra.mxu0 %v4498_v28  ;;  %v4576_v54 = vpack.c.bf16 %v63_v52, %v59_v51  ;;  %v62_v56 = vld [vmem:[%s5639_s3 + $0xf0] sm:$0xff]  ;;  %v67_v58 = vld [vmem:[%s5639_s3 + $0x118] sm:$0xff]  ;;  %v76_v62 = vld [vmem:[%s5639_s3 + $0x160] sm:$0xff] }
  0x10   :  { %3113 = vmatprep.subr.bf16.mxu0 %v4511_v32  ;;  %v71_v59 = vld [vmem:[%s5639_s3 + $0x138] sm:$0xff]  ;;  %v81_v63 = vld [vmem:[%s5639_s3 + $0x188] sm:$0xff]  ;;  %v4606_v0 = vpack.c.bf16 %v62_v56, %v58_v55  ;;  %v66_v3 = vld [vmem:[%s5639_s3 + $0x110] sm:$0xff]  ;;  %v4627_v11 = vpack.c.bf16 %v76_v62, %v72_v61 }
  0x11   :  { %3143 = vmatpush1.bf16.msra.mxu1 %v4564_v50  ;;  %v85_v1 = vld [vmem:[%s5639_s3 + $0x1a8] sm:$0xff]  ;;  %v4612_v2 = vpack.c.bf16 %v71_v59, %v67_v58  ;;  %v70_v5 = vld [vmem:[%s5639_s3 + $0x130] sm:$0xff]  ;;  %v75_v6 = vld [vmem:[%s5639_s3 + $0x158] sm:$0xff] }
  0x12   :  { %3145 = vmatprep.subr.bf16.mxu1 %v4576_v54  ;;  %v79_v7 = vld [vmem:[%s5639_s3 + $0x178] sm:$0xff]  ;;  %v80_v12 = vld [vmem:[%s5639_s3 + $0x180] sm:$0xff]  ;;  %v4636_v15 = vpack.c.bf16 %v85_v1, %v81_v63  ;;  %v89_v17 = vld [vmem:[%s5639_s3 + $0x1c8] sm:$0xff]  ;;  %v4645_v20 = vpack.c.bf16 %v70_v5, %v66_v3 }
  0x13   :  { %3115 = vmatpush1.bf16.msra.mxu0 %v4547_v44  ;;  %v84_v13 = vld [vmem:[%s5639_s3 + $0x1a0] sm:$0xff]  ;;  %v93_v18 = vld [vmem:[%s5639_s3 + $0x1e8] sm:$0xff]  ;;  %v74_v21 = vld [vmem:[%s5639_s3 + $0x150] sm:$0xff]  ;;  %v4651_v22 = vpack.c.bf16 %v79_v7, %v75_v6 }
  0x14   :  { %3117 = vmatprep.subr.bf16.mxu0 %v4558_v48  ;;  %v78_v23 = vld [vmem:[%s5639_s3 + $0x170] sm:$0xff]  ;;  %v4659_v25 = vld [vmem:[%s5637_s1] sm:$0xff]  ;;  %v4664_v26 = vld [vmem:[%s5637_s1 + $0x8] sm:$0xff]  ;;  %v4674_v31 = vpack.c.bf16 %v84_v13, %v80_v12  ;;  %v4679_v34 = vpack.c.bf16 %v93_v18, %v89_v17 }
  0x15   :  { %3147 = vmatpush1.bf16.msra.mxu1 %v4606_v0  ;;  %v83_v29 = vld [vmem:[%s5639_s3 + $0x198] sm:$0xff]  ;;  %vm2983_vm0 = vcmp.gt.s32.totalorder %v4659_v25, 0  ;;  %vm2987_vm1 = vcmp.gt.s32.totalorder %v4664_v26, 0  ;;  %v88_v36 = vld [vmem:[%s5639_s3 + $0x1c0] sm:$0xff]  ;;  %v4688_v38 = vpack.c.bf16 %v78_v23, %v74_v21  ;;  %v82_v41 = vld [vmem:[%s5639_s3 + $0x190] sm:$0xff]  ;;  %vm3015_vm2 = vcmp.gt.s32.totalorder %v4659_v25, 2 }
  0x16   :  { %3149 = vmatprep.subr.bf16.mxu1 %v4612_v2  ;;  %v87_v30 = vld [vmem:[%s5639_s3 + $0x1b8] sm:$0xff]  ;;  %v276_v33 = vsel %vm2983_vm0, 1, %v4387_v14  ;;  %v92_v37 = vld [vmem:[%s5639_s3 + $0x1e0] sm:$0xff]  ;;  %v86_v42 = vld [vmem:[%s5639_s3 + $0x1b0] sm:$0xff]  ;;  %v450_v46 = vsel %vm2987_vm1, 1, %v4387_v14  ;;  %v994_v56 = vsel %vm3015_vm2, 1, %v4387_v14 }
  0x17   :  { %3119 = vmatpush1.bf16.msra.mxu0 %v4585_v57  ;;  %v4691_v40 = vpack.c.bf16 %v87_v30, %v83_v29  ;;  %278 = vperm.xlu0 %4127, %v276_v33   ;;  %v91_v43 = vld [vmem:[%s5639_s3 + $0x1d8] sm:$0xff]  ;;  %v4707_v49 = vpack.c.bf16 %v92_v37, %v88_v36  ;;  %v4712_v51 = vpack.c.bf16 %v86_v42, %v82_v41  ;;  %v90_v53 = vld [vmem:[%s5639_s3 + $0x1d0] sm:$0xff]  ;;  %v4728_v58 = vld [vmem:[%s5640_s4] sm:$0xff]  ;;  %vm3031_vm3 = vcmp.gt.s32.totalorder %v4659_v25, 3 }
  0x18   :  { %3121 = vmatprep.subr.bf16.mxu0 %v4594_v60  ;;  %v95_v45 = vld [vmem:[%s5639_s3 + $0x1f8] sm:$0xff]  ;;  %v94_v55 = vld [vmem:[%s5639_s3 + $0x1f0] sm:$0xff]  ;;  %v1353_v61 = vsel %vm3031_vm3, 1, %v4387_v14  ;;  %vm3047_vm4 = vcmp.gt.s32.totalorder %v4659_v25, 4  ;;  %vm3063_vm5 = vcmp.gt.s32.totalorder %v4659_v25, 5  ;;  %vm3079_vm6 = vcmp.gt.s32.totalorder %v4659_v25, 6 }
  0x19   :  { %3151 = vmatpush1.bf16.msra.mxu1 %v4645_v20  ;;  %v4715_v52 = vpack.c.bf16 %v95_v45, %v91_v43  ;;  %v4733_v59 = vpack.c.bf16 %v94_v55, %v90_v53  ;;  %v1712_v62 = vsel %vm3047_vm4, 1, %v4387_v14  ;;  %v2071_v63 = vsel %vm3063_vm5, 1, %v4387_v14  ;;  %v4781_v5 = vld [vmem:[%s5640_s4 + $0x8] sm:$0xff] }
  0x1a   :  { %3153 = vmatprep.subr.bf16.mxu1 %v4651_v22  ;;  %v2430_v1 = vsel %vm3079_vm6, 1, %v4387_v14  ;;  %vm3095_vm7 = vcmp.gt.s32.totalorder %v4659_v25, 7  ;;  %vm2999_vm8 = vcmp.gt.s32.totalorder %v4659_v25, 1  ;;  %vm3003_vm9 = vcmp.gt.s32.totalorder %v4664_v26, 1  ;;  %v100_v25 = vld [vmem:[%s5638_s2] sm:$0xff]  ;;  %v101_v29 = vld [vmem:[%s5638_s2 + $0x8] sm:$0xff] }
  0x1b   :  { %3123 = vmatpush1.bf16.msra.mxu0 %v4627_v11  ;;  %452 = vperm.xlu0 %4127, %v450_v46   ;;  %v2789_v3 = vsel %vm3095_vm7, 1, %v4387_v14  ;;  %v635_v6 = vsel %vm2999_vm8, 1, %v4387_v14  ;;  %v809_v7 = vsel %vm3003_vm9, 1, %v4387_v14  ;;  %vm3019_vm10 = vcmp.gt.s32.totalorder %v4664_v26, 2  ;;  %v102_v46 = vld [vmem:[%s5638_s2 + $0x10] sm:$0xff] }
  0x1c   :  { %3125 = vmatprep.subr.bf16.mxu0 %v4636_v15  ;;  %637 = vperm.xlu1 %4128, %v635_v6   ;;  %v1168_v12 = vsel %vm3019_vm10, 1, %v4387_v14  ;;  %vm3035_vm11 = vcmp.gt.s32.totalorder %v4664_v26, 3  ;;  %vm3051_vm12 = vcmp.gt.s32.totalorder %v4664_v26, 4  ;;  %vm3067_vm13 = vcmp.gt.s32.totalorder %v4664_v26, 5  ;;  %v98_v6 = vld [vmem:[#allocation2] sm:$0xff] }
  0x1d   :  { %3155 = vmatpush1.bf16.msra.mxu1 %v4688_v38  ;;  %v1527_v13 = vsel %vm3035_vm11, 1, %v4387_v14  ;;  %v1886_v17 = vsel %vm3051_vm12, 1, %v4387_v14  ;;  %v2245_v18 = vsel %vm3067_vm13, 1, %v4387_v14  ;;  %vm3083_vm14 = vcmp.gt.s32.totalorder %v4664_v26, 6 }
  0x1e   :  { %3157 = vmatprep.subr.bf16.mxu1 %v4691_v40  ;;  %v2604_v21 = vsel %vm3083_vm14, 1, %v4387_v14  ;;  %vm3099_vm15 = vcmp.gt.s32.totalorder %v4664_v26, 7  ;;  %v103_v26 = vld [vmem:[%s5638_s2 + $0x18] sm:$0xff] }
  0x1f   :  { %3127 = vmatpush1.bf16.msra.mxu0 %v4674_v31  ;;  %996 = vperm.xlu0 %4127, %v994_v56   ;;  %v2963_v23 = vsel %vm3099_vm15, 1, %v4387_v14 }
  0x20   :  { %3129 = vmatprep.subr.bf16.mxu0 %v4679_v34  ;;  %811 = vperm.xlu1 %4128, %v809_v7  }
  0x21   :  { %3159 = vmatpush1.bf16.msra.mxu1 %v4712_v51 }
  0x22   :  { %3161 = vmatprep.subr.bf16.mxu1 %v4715_v52 }
  0x23   :  { %3131 = vmatpush1.bf16.msra.mxu0 %v4707_v49  ;;  %1355 = vperm.xlu0 %4127, %v1353_v61  }
  0x24   :  { %3165 = vmatprep.subr.bf16.mxu0 %v4431_v4  ;;  %1170 = vperm.xlu1 %4128, %v1168_v12  }
  0x25   :  { %3163 = vmatpush1.bf16.msra.mxu1 %v4733_v59 }
  0x26   :  { %173 = vmatmul.mubr.f32.vlgmr.msra.gmra.mrb[0].mxu0 %v4728_v58  ;;  %3197 = vmatprep.subr.bf16.mxu1 %v4487_v24 }
  0x27   :  { %3167 = vmatpush1.bf16.msra.mxu0 %v4444_v9  ;;  %347 = vmatprep.mubr.f32.mxu0 %v4386_v8 }
  0x28   :  { %3169 = vmatprep.subr.bf16.mxu0 %v4446_v10  ;;  %244 = vmatmul.mubr.f32.vlgmr.msra.gmra.mrb[0].mxu1 %v4728_v58 }
  0x29   :  { %3199 = vmatpush1.bf16.msra.mxu1 %v4495_v27  ;;  %418 = vmatprep.mubr.f32.mxu1 %v4386_v8 }
  0x2a   :  { %3201 = vmatprep.subr.bf16.mxu1 %v4520_v35  ;;  %1714 = vperm.xlu0 %4127, %v1712_v62  }
  0x2b   :  { %3171 = vmatpush1.bf16.msra.mxu0 %v4464_v16  ;;  %1529 = vperm.xlu1 %4128, %v1527_v13  }
  0x2c   :  { %3173 = vmatprep.subr.bf16.mxu0 %v4473_v19 }
  0x2d   :  { %3203 = vmatpush1.bf16.msra.mxu1 %v4531_v39 }
  0x2e   :  { %3205 = vmatprep.subr.bf16.mxu1 %v4555_v47  ;;  %2073 = vperm.xlu0 %4127, %v2071_v63  }
  0x2f   :  { %3175 = vmatpush1.bf16.msra.mxu0 %v4498_v28  ;;  %1888 = vperm.xlu1 %4128, %v1886_v17  }
  0x30   :  { %3177 = vmatprep.subr.bf16.mxu0 %v4511_v32 }
  0x31   :  { %3207 = vmatpush1.bf16.msra.mxu1 %v4564_v50 }
  0x32   :  { %3209 = vmatprep.subr.bf16.mxu1 %v4576_v54  ;;  %2432 = vperm.xlu0 %4127, %v2430_v1  }
  0x33   :  { %3179 = vmatpush1.bf16.msra.mxu0 %v4547_v44  ;;  %2247 = vperm.xlu1 %4128, %v2245_v18  }
  0x34   :  { %3181 = vmatprep.subr.bf16.mxu0 %v4558_v48 }
  0x35   :  { %3211 = vmatpush1.bf16.msra.mxu1 %v4606_v0 }
  0x36   :  { %3213 = vmatprep.subr.bf16.mxu1 %v4612_v2  ;;  %2791 = vperm.xlu0 %4127, %v2789_v3  }
  0x37   :  { %3183 = vmatpush1.bf16.msra.mxu0 %v4585_v57  ;;  %2606 = vperm.xlu1 %4128, %v2604_v21  }
  0x38   :  { %3185 = vmatprep.subr.bf16.mxu0 %v4594_v60 }
  0x39   :  { %3215 = vmatpush1.bf16.msra.mxu1 %v4645_v20 }
  0x3a   :  { %3217 = vmatprep.subr.bf16.mxu1 %v4651_v22 }
  0x3b   :  { %3187 = vmatpush1.bf16.msra.mxu0 %v4627_v11  ;;  %2965 = vperm.xlu1 %4128, %v2963_v23   ;;  %v104_v23 = vld [vmem:[%s5638_s2 + $0x20] sm:$0xff] }
  0x3c   :  { %3189 = vmatprep.subr.bf16.mxu0 %v4636_v15 }
  0x3d   :  { %3219 = vmatpush1.bf16.msra.mxu1 %v4688_v38 }
  0x3e   :  { %3221 = vmatprep.subr.bf16.mxu1 %v4691_v40 }
  0x3f   :  { %3191 = vmatpush1.bf16.msra.mxu0 %v4674_v31 }
  0x40   :  { %3193 = vmatprep.subr.bf16.mxu0 %v4679_v34 }
  0x41   :  { %3223 = vmatpush1.bf16.msra.mxu1 %v4712_v51 }
  0x42   :  { %3225 = vmatprep.subr.bf16.mxu1 %v4715_v52 }
  0x43   :  { %3195 = vmatpush1.bf16.msra.mxu0 %v4707_v49 }
  0x44   :  { %3229 = vmatprep.subr.bf16.mxu0 %v4431_v4 }
  0x45   :  { %3227 = vmatpush1.bf16.msra.mxu1 %v4733_v59 }
  0x46   :  { %348 = vmatmul.mubr.f32.vlgmr.msra.gmra.mrb[2].mxu0 %v4781_v5  ;;  %3261 = vmatprep.subr.bf16.mxu1 %v4487_v24 }
  0x47   :  { %3231 = vmatpush1.bf16.msra.mxu0 %v4444_v9  ;;  %531 = vmatprep.mubr.f32.mxu0 %v4386_v8 }
  0x48   :  { %3233 = vmatprep.subr.bf16.mxu0 %v4446_v10  ;;  %419 = vmatmul.mubr.f32.vlgmr.msra.gmra.mrb[2].mxu1 %v4781_v5 }
  0x49   :  { %3263 = vmatpush1.bf16.msra.mxu1 %v4495_v27  ;;  %602 = vmatprep.mubr.f32.mxu1 %v4386_v8 }
  0x4a   :  { %3265 = vmatprep.subr.bf16.mxu1 %v4520_v35 }
  0x4b   :  { %3235 = vmatpush1.bf16.msra.mxu0 %v4464_v16 }
  0x4c   :  { %3237 = vmatprep.subr.bf16.mxu0 %v4473_v19 }
  0x4d   :  { %3267 = vmatpush1.bf16.msra.mxu1 %v4531_v39 }
  0x4e   :  { %3269 = vmatprep.subr.bf16.mxu1 %v4555_v47 }
  0x4f   :  { %3239 = vmatpush1.bf16.msra.mxu0 %v4498_v28 }
  0x50   :  { %3241 = vmatprep.subr.bf16.mxu0 %v4511_v32 }
  0x51   :  { %3271 = vmatpush1.bf16.msra.mxu1 %v4564_v50 }
  0x52   :  { %3273 = vmatprep.subr.bf16.mxu1 %v4576_v54 }
  0x53   :  { %3243 = vmatpush1.bf16.msra.mxu0 %v4547_v44 }
  0x54   :  { %3245 = vmatprep.subr.bf16.mxu0 %v4558_v48 }
  0x55   :  { %3275 = vmatpush1.bf16.msra.mxu1 %v4606_v0 }
  0x56   :  { %3277 = vmatprep.subr.bf16.mxu1 %v4612_v2 }
  0x57   :  { %3247 = vmatpush1.bf16.msra.mxu0 %v4585_v57 }
  0x58   :  { %3249 = vmatprep.subr.bf16.mxu0 %v4594_v60 }
  0x59   :  { %3279 = vmatpush1.bf16.msra.mxu1 %v4645_v20 }
  0x5a   :  { %3281 = vmatprep.subr.bf16.mxu1 %v4651_v22 }
  0x5b   :  { %3251 = vmatpush1.bf16.msra.mxu0 %v4627_v11 }
  0x5c   :  { %3253 = vmatprep.subr.bf16.mxu0 %v4636_v15 }
  0x5d   :  { %3283 = vmatpush1.bf16.msra.mxu1 %v4688_v38 }
  0x5e   :  { %3285 = vmatprep.subr.bf16.mxu1 %v4691_v40 }
  0x5f   :  { %3255 = vmatpush1.bf16.msra.mxu0 %v4674_v31 }
  0x60   :  { %3257 = vmatprep.subr.bf16.mxu0 %v4679_v34 }
  0x61   :  { %3287 = vmatpush1.bf16.msra.mxu1 %v4712_v51 }
  0x62   :  { %3289 = vmatprep.subr.bf16.mxu1 %v4715_v52 }
  0x63   :  { %3259 = vmatpush1.bf16.msra.mxu0 %v4707_v49 }
  0x64   :  { %3293 = vmatprep.subr.bf16.mxu0 %v4431_v4 }
  0x65   :  { %3291 = vmatpush1.bf16.msra.mxu1 %v4733_v59 }
  0x66   :  { %3325 = vmatprep.subr.bf16.mxu1 %v4487_v24 }
  0x96   :  { %v279_v21 = vpop.permute.xlu0 %278 }
  0x97   :  { %vm280_vm0 = vcmp.eq.s32.totalorder %v279_v21, 1 }
  0xf9   :  { %v174_v30 = vpop.f32.mrb[0].mxu0 }
  0xfa   :  { %v175_v33 = vadd.f32 %v174_v30, %v100_v25  ;;  %v176_v36 = vpop.f32.mrb[1].mxu0  ;;  %v105_v25 = vld [vmem:[%s5638_s2 + $0x28] sm:$0xff] }
  0xfb   :  { %v177_v37 = vadd.f32 %v176_v36, %v101_v29  ;;  %v245_v14 = vpop.f32.mrb[0].mxu1 }
  0xfc   :  { %v2980_v41 = vmul.f32 -1.442695, %v175_v33  ;;  %v247_v43 = vpop.f32.mrb[1].mxu1  ;;  %v246_v55 = vadd.f32 %v245_v14, %v102_v46  ;;  %v107_v14 = vld [vmem:[%s5638_s2 + $0x38] sm:$0xff] }
  0xfd   :  { %v2981_v42 = vmul.f32 -1.442695, %v177_v37  ;;  %v248_v45 = vadd.f32 %v247_v43, %v103_v26 }
  0xfe   :  { %4129 = vpow2.f32 %v2980_v41 }
  0xff   :  { %4131 = vpow2.f32 %v2981_v42  ;;  %v2982_v53 = vmul.f32 -1.442695, %v248_v45 }
 0x101   :  { %4133 = vpow2.f32 %v2982_v53  ;;  %v106_v53 = vld [vmem:[%s5638_s2 + $0x30] sm:$0xff] }
 0x102   :  { %4135 = vtanh.f32 %v246_v55 }
 0x108   :  { %v4130_v56 = vpop.eup %4129 }
 0x109   :  { %v4132_v61 = vpop.eup %4131  ;;  %v253_v62 = vadd.f32 1.0, %v4130_v56 }
 0x10a   :  { %v259_v63 = vadd.f32 1.0, %v4132_v61 }
 0x10b   :  { %4137 = vrcp.f32 %v253_v62  ;;  %v4134_v1 = vpop.eup %4133 }
 0x10c   :  { %4139 = vrcp.f32 %v259_v63  ;;  %v4136_v3 = vpop.eup %4135  ;;  %v266_v12 = vadd.f32 1.0, %v4134_v1 }
 0x10e   :  { %4141 = vrcp.f32 %v266_v12 }
 0x115   :  { %v4138_v7 = vpop.eup %4137 }
 0x116   :  { %v4140_v13 = vpop.eup %4139  ;;  %v270_v17 = vmul.f32 %v4138_v7, %v4136_v3 }
 0x117   :  { %v269_v18 = vmul.f32 %v4140_v13, %v98_v6 }
 0x118   :  { %v4142_v55 = vpop.eup %4141 }
 0x119   :  { %v271_v29 = vadd.f32 %v270_v17, %v269_v18  ;;  %v349_v30 = vpop.f32.mrb[2].mxu0  ;;  %v99_v17 = vld [vmem:[#allocation2 + $0x8] sm:$0xff] }
 0x11a   :  { %v350_v33 = vadd.f32 %v349_v30, %v104_v23  ;;  %v351_v36 = vpop.f32.mrb[3].mxu0  ;;  %v453_v30 = vpop.permute.xlu0 %452 }
 0x11b   :  { %4143 = vtanh.f32 %v271_v29  ;;  %v4859_v37 = vsel %vm280_vm0, %v271_v29, %v98_v6  ;;  %v352_v41 = vadd.f32 %v351_v36, %v105_v25  ;;  %v420_v43 = vpop.f32.mrb[2].mxu1  ;;  %vm454_vm1 = vcmp.eq.s32.totalorder %v453_v30, 1 }
 0x11c   :  { %v2984_v42 = vmul.f32 -1.442695, %v350_v33  ;;  %v422_v45 = vpop.f32.mrb[3].mxu1  ;;  %v421_v62 = vadd.f32 %v420_v43, %v106_v53  ;;  %v2989_v43 = vld [vmem:[%s5638_s2 + $0x48] sm:$0xff] }
 0x11d   :  { %v2985_v26 = vmul.f32 -1.442695, %v352_v41  ;;  %v423_v46 = vadd.f32 %v422_v45, %v107_v14 }
 0x11e   :  { %4145 = vpow2.f32 %v2984_v42 }
 0x11f   :  { %4147 = vpow2.f32 %v2985_v26  ;;  %v2986_v56 = vmul.f32 -1.442695, %v423_v46 }
 0x121   :  { %4149 = vpow2.f32 %v2986_v56 }
 0x122   :  { %4151 = vtanh.f32 %v421_v62 }
 0x125   :  { %v4144_v61 = vpop.eup %4143 }
 0x126   :  { %v273_v63 = vmul.f32 %v4144_v61, %v4142_v55 }
 0x128   :  { %v4146_v1 = vpop.eup %4145  ;;  %v4869_v3 = vsel %vm280_vm0, %v273_v63, %v4728_v58 }
 0x129   :  { %v4148_v6 = vpop.eup %4147  ;;  %v428_v7 = vadd.f32 1.0, %v4146_v1  ;;  %532 = vmatmul.mubr.f32.vlgmr.msra.gmra.mrb[4].mxu0 %v4869_v3  ;;  %603 = vmatmul.mubr.f32.vlgmr.msra.gmra.mrb[4].mxu1 %v4869_v3  ;;  %v2991_v1 = vld [vmem:[%s5638_s2 + $0x58] sm:$0xff] }
 0x12a   :  { %v434_v12 = vadd.f32 1.0, %v4148_v6  ;;  %3295 = vmatpush1.bf16.msra.mxu0 %v4444_v9  ;;  %3327 = vmatpush1.bf16.msra.mxu1 %v4495_v27 }
 0x12b   :  { %4153 = vrcp.f32 %v428_v7  ;;  %3297 = vmatprep.subr.bf16.mxu0 %v4446_v10  ;;  %3329 = vmatprep.subr.bf16.mxu1 %v4520_v35  ;;  %v4150_v58 = vpop.eup %4149  ;;  %v2990_v7 = vld [vmem:[%s5638_s2 + $0x50] sm:$0xff] }
 0x12c   :  { %4155 = vrcp.f32 %v434_v12  ;;  %706 = vmatprep.mubr.f32.mxu0 %v4386_v8  ;;  %777 = vmatprep.mubr.f32.mxu1 %v4386_v8  ;;  %v4152_v13 = vpop.eup %4151  ;;  %v441_v21 = vadd.f32 1.0, %v4150_v58 }
 0x12e   :  { %3299 = vmatpush1.bf16.msra.mxu0 %v4464_v16  ;;  %3331 = vmatpush1.bf16.msra.mxu1 %v4531_v39  ;;  %4157 = vrcp.f32 %v441_v21 }
 0x12f   :  { %3301 = vmatprep.subr.bf16.mxu0 %v4473_v19  ;;  %3333 = vmatprep.subr.bf16.mxu1 %v4555_v47 }
 0x132   :  { %3303 = vmatpush1.bf16.msra.mxu0 %v4498_v28  ;;  %3335 = vmatpush1.bf16.msra.mxu1 %v4564_v50 }
 0x133   :  { %3305 = vmatprep.subr.bf16.mxu0 %v4511_v32  ;;  %3337 = vmatprep.subr.bf16.mxu1 %v4576_v54 }
 0x135   :  { %v4154_v18 = vpop.eup %4153 }
 0x136   :  { %v4156_v23 = vpop.eup %4155  ;;  %v445_v25 = vmul.f32 %v4154_v18, %v4152_v13  ;;  %3307 = vmatpush1.bf16.msra.mxu0 %v4547_v44  ;;  %3339 = vmatpush1.bf16.msra.mxu1 %v4606_v0 }
 0x137   :  { %v444_v29 = vmul.f32 %v4156_v23, %v99_v17  ;;  %3309 = vmatprep.subr.bf16.mxu0 %v4558_v48  ;;  %3341 = vmatprep.subr.bf16.mxu1 %v4612_v2 }
 0x138   :  { %v4158_v41 = vpop.eup %4157 }
 0x139   :  { %v446_v33 = vadd.f32 %v445_v25, %v444_v29 }
 0x13a   :  { %3311 = vmatpush1.bf16.msra.mxu0 %v4585_v57  ;;  %3343 = vmatpush1.bf16.msra.mxu1 %v4645_v20 }
 0x13b   :  { %4159 = vtanh.f32 %v446_v33  ;;  %3313 = vmatprep.subr.bf16.mxu0 %v4594_v60  ;;  %3345 = vmatprep.subr.bf16.mxu1 %v4651_v22  ;;  %v4896_v36 = vsel %vm454_vm1, %v446_v33, %v99_v17 }
 0x13e   :  { %3315 = vmatpush1.bf16.msra.mxu0 %v4627_v11  ;;  %3347 = vmatpush1.bf16.msra.mxu1 %v4688_v38 }
 0x13f   :  { %3317 = vmatprep.subr.bf16.mxu0 %v4636_v15  ;;  %3349 = vmatprep.subr.bf16.mxu1 %v4691_v40 }
 0x142   :  { %3319 = vmatpush1.bf16.msra.mxu0 %v4674_v31  ;;  %3351 = vmatpush1.bf16.msra.mxu1 %v4712_v51 }
 0x143   :  { %3321 = vmatprep.subr.bf16.mxu0 %v4679_v34  ;;  %3353 = vmatprep.subr.bf16.mxu1 %v4715_v52 }
 0x145   :  { %v4160_v42 = vpop.eup %4159 }
 0x146   :  { %3323 = vmatpush1.bf16.msra.mxu0 %v4707_v49  ;;  %3355 = vmatpush1.bf16.msra.mxu1 %v4733_v59  ;;  %v448_v26 = vmul.f32 %v4160_v42, %v4158_v41  ;;  %v638_v42 = vpop.permute.xlu1 %637 }
 0x147   :  { %3357 = vmatprep.subr.bf16.mxu0 %v4431_v4  ;;  %3389 = vmatprep.subr.bf16.mxu1 %v4487_v24  ;;  %vm639_vm2 = vcmp.eq.s32.totalorder %v638_v42, 1 }
 0x148   :  { %v4912_v14 = vsel %vm454_vm1, %v448_v26, %v4781_v5  ;;  %v2988_v5 = vld [vmem:[%s5638_s2 + $0x40] sm:$0xff] }
 0x149   :  { %707 = vmatmul.mubr.f32.vlgmr.msra.gmra.mrb[6].mxu0 %v4912_v14  ;;  %778 = vmatmul.mubr.f32.vlgmr.msra.gmra.mrb[6].mxu1 %v4912_v14 }
 0x14a   :  { %3359 = vmatpush1.bf16.msra.mxu0 %v4444_v9  ;;  %3391 = vmatpush1.bf16.msra.mxu1 %v4495_v27 }
 0x14b   :  { %3361 = vmatprep.subr.bf16.mxu0 %v4446_v10  ;;  %3393 = vmatprep.subr.bf16.mxu1 %v4520_v35 }
 0x14c   :  { %890 = vmatprep.mubr.f32.mxu0 %v4386_v8  ;;  %961 = vmatprep.mubr.f32.mxu1 %v4386_v8 }
 0x14e   :  { %3363 = vmatpush1.bf16.msra.mxu0 %v4464_v16  ;;  %3395 = vmatpush1.bf16.msra.mxu1 %v4531_v39 }
 0x14f   :  { %3365 = vmatprep.subr.bf16.mxu0 %v4473_v19  ;;  %3397 = vmatprep.subr.bf16.mxu1 %v4555_v47 }
 0x152   :  { %3367 = vmatpush1.bf16.msra.mxu0 %v4498_v28  ;;  %3399 = vmatpush1.bf16.msra.mxu1 %v4564_v50 }
 0x153   :  { %3369 = vmatprep.subr.bf16.mxu0 %v4511_v32  ;;  %3401 = vmatprep.subr.bf16.mxu1 %v4576_v54 }
 0x156   :  { %3371 = vmatpush1.bf16.msra.mxu0 %v4547_v44  ;;  %3403 = vmatpush1.bf16.msra.mxu1 %v4606_v0 }
 0x157   :  { %3373 = vmatprep.subr.bf16.mxu0 %v4558_v48  ;;  %3405 = vmatprep.subr.bf16.mxu1 %v4612_v2 }
 0x15a   :  { %3375 = vmatpush1.bf16.msra.mxu0 %v4585_v57  ;;  %3407 = vmatpush1.bf16.msra.mxu1 %v4645_v20 }
 0x15b   :  { %3377 = vmatprep.subr.bf16.mxu0 %v4594_v60  ;;  %3409 = vmatprep.subr.bf16.mxu1 %v4651_v22 }
 0x15e   :  { %3379 = vmatpush1.bf16.msra.mxu0 %v4627_v11  ;;  %3411 = vmatpush1.bf16.msra.mxu1 %v4688_v38 }
 0x15f   :  { %3381 = vmatprep.subr.bf16.mxu0 %v4636_v15  ;;  %3413 = vmatprep.subr.bf16.mxu1 %v4691_v40 }
 0x162   :  { %3383 = vmatpush1.bf16.msra.mxu0 %v4674_v31  ;;  %3415 = vmatpush1.bf16.msra.mxu1 %v4712_v51 }
 0x163   :  { %3385 = vmatprep.subr.bf16.mxu0 %v4679_v34  ;;  %3417 = vmatprep.subr.bf16.mxu1 %v4715_v52 }
 0x166   :  { %3387 = vmatpush1.bf16.msra.mxu0 %v4707_v49  ;;  %3419 = vmatpush1.bf16.msra.mxu1 %v4733_v59 }
 0x167   :  { %3421 = vmatprep.subr.bf16.mxu0 %v4431_v4  ;;  %3453 = vmatprep.subr.bf16.mxu1 %v4487_v24 }
 0x1fc   :  { %v533_v45 = vpop.f32.mrb[4].mxu0  ;;  %v604_v46 = vpop.f32.mrb[4].mxu1 }
 0x1fd   :  { %v534_v53 = vadd.f32 %v2988_v5, %v533_v45  ;;  %v535_v55 = vpop.f32.mrb[5].mxu0  ;;  %v606_v56 = vpop.f32.mrb[5].mxu1  ;;  %v605_v58 = vadd.f32 %v2990_v7, %v604_v46  ;;  %v2992_v5 = vld [vmem:[%s5638_s2 + $0x60] sm:$0xff]  ;;  %v2995_v7 = vld [vmem:[%s5638_s2 + $0x78] sm:$0xff] }
 0x1fe   :  { %v536_v61 = vadd.f32 %v2989_v43, %v535_v55  ;;  %v607_v6 = vadd.f32 %v2991_v1, %v606_v56  ;;  %v2993_v43 = vld [vmem:[%s5638_s2 + $0x68] sm:$0xff] }
 0x1ff   :  { %v2996_v62 = vmul.f32 -1.442695, %v534_v53 }
 0x200   :  { %v2997_v63 = vmul.f32 -1.442695, %v536_v61  ;;  %v2998_v12 = vmul.f32 -1.442695, %v607_v6 }
 0x201   :  { %4161 = vpow2.f32 %v2996_v62 }
 0x202   :  { %4163 = vpow2.f32 %v2997_v63 }
 0x203   :  { %4165 = vpow2.f32 %v2998_v12 }
 0x204   :  { %4167 = vtanh.f32 %v605_v58  ;;  %v2994_v58 = vld [vmem:[%s5638_s2 + $0x70] sm:$0xff] }
 0x20b   :  { %v4162_v13 = vpop.eup %4161 }
 0x20c   :  { %v4164_v17 = vpop.eup %4163  ;;  %v612_v18 = vadd.f32 1.0, %v4162_v13 }
 0x20d   :  { %v618_v21 = vadd.f32 1.0, %v4164_v17  ;;  %v4166_v23 = vpop.eup %4165 }
 0x20e   :  { %4169 = vrcp.f32 %v612_v18  ;;  %v4168_v25 = vpop.eup %4167  ;;  %v625_v33 = vadd.f32 1.0, %v4166_v23 }
 0x20f   :  { %4171 = vrcp.f32 %v618_v21 }
 0x210   :  { %4173 = vrcp.f32 %v625_v33 }
 0x218   :  { %v4170_v29 = vpop.eup %4169 }
 0x219   :  { %v4172_v30 = vpop.eup %4171  ;;  %v629_v41 = vmul.f32 %v4170_v29, %v4168_v25 }
 0x21a   :  { %v628_v26 = vmul.f32 %v4172_v30, %v4859_v37  ;;  %v4174_v13 = vpop.eup %4173 }
 0x21c   :  { %v630_v45 = vadd.f32 %v629_v41, %v628_v26  ;;  %v708_v46 = vpop.f32.mrb[6].mxu0  ;;  %v779_v53 = vpop.f32.mrb[6].mxu1 }
 0x21d   :  { %v709_v55 = vadd.f32 %v2992_v5, %v708_v46  ;;  %v710_v56 = vpop.f32.mrb[7].mxu0  ;;  %v781_v61 = vpop.f32.mrb[7].mxu1 }
 0x21e   :  { %4175 = vtanh.f32 %v630_v45  ;;  %v4971_v62 = vsel %vm639_vm2, %v630_v45, %v4859_v37  ;;  %v711_v63 = vadd.f32 %v2993_v43, %v710_v56  ;;  %v782_v12 = vadd.f32 %v2995_v7, %v781_v61  ;;  %v812_v46 = vpop.permute.xlu1 %811 }
 0x21f   :  { %v3000_v1 = vmul.f32 -1.442695, %v709_v55  ;;  %v780_v37 = vadd.f32 %v2994_v58, %v779_v53  ;;  %vm813_vm3 = vcmp.eq.s32.totalorder %v812_v46, 1 }
 0x220   :  { %v3001_v6 = vmul.f32 -1.442695, %v711_v63  ;;  %v3002_v18 = vmul.f32 -1.442695, %v782_v12 }
 0x221   :  { %4177 = vpow2.f32 %v3000_v1  ;;  %v3005_v1 = vld [vmem:[%s5638_s2 + $0x88] sm:$0xff] }
 0x222   :  { %4179 = vpow2.f32 %v3001_v6 }
 0x223   :  { %4181 = vpow2.f32 %v3002_v18 }
 0x224   :  { %4183 = vtanh.f32 %v780_v37  ;;  %v3007_v37 = vld [vmem:[%s5638_s2 + $0x98] sm:$0xff] }
 0x228   :  { %v4176_v17 = vpop.eup %4175 }
 0x229   :  { %v632_v21 = vmul.f32 %v4176_v17, %v4174_v13 }
 0x22b   :  { %v4178_v23 = vpop.eup %4177  ;;  %v4981_v25 = vsel %vm639_vm2, %v632_v21, %v4869_v3 }
 0x22c   :  { %v4180_v29 = vpop.eup %4179  ;;  %v787_v30 = vadd.f32 1.0, %v4178_v23  ;;  %891 = vmatmul.mubr.f32.vlgmr.msra.gmra.mrb[8].mxu0 %v4981_v25  ;;  %962 = vmatmul.mubr.f32.vlgmr.msra.gmra.mrb[8].mxu1 %v4981_v25 }
 0x22d   :  { %v793_v33 = vadd.f32 1.0, %v4180_v29  ;;  %3423 = vmatpush1.bf16.msra.mxu0 %v4444_v9  ;;  %3455 = vmatpush1.bf16.msra.mxu1 %v4495_v27  ;;  %v4182_v3 = vpop.eup %4181  ;;  %v3006_v29 = vld [vmem:[%s5638_s2 + $0x90] sm:$0xff] }
 0x22e   :  { %4185 = vrcp.f32 %v787_v30  ;;  %3425 = vmatprep.subr.bf16.mxu0 %v4446_v10  ;;  %3457 = vmatprep.subr.bf16.mxu1 %v4520_v35  ;;  %v4184_v41 = vpop.eup %4183  ;;  %v800_v43 = vadd.f32 1.0, %v4182_v3 }
 0x22f   :  { %4187 = vrcp.f32 %v793_v33  ;;  %1065 = vmatprep.mubr.f32.mxu0 %v4386_v8  ;;  %1136 = vmatprep.mubr.f32.mxu1 %v4386_v8 }
 0x230   :  { %4189 = vrcp.f32 %v800_v43 }
 0x231   :  { %3427 = vmatpush1.bf16.msra.mxu0 %v4464_v16  ;;  %3459 = vmatpush1.bf16.msra.mxu1 %v4531_v39 }
 0x232   :  { %3429 = vmatprep.subr.bf16.mxu0 %v4473_v19  ;;  %3461 = vmatprep.subr.bf16.mxu1 %v4555_v47 }
 0x235   :  { %3431 = vmatpush1.bf16.msra.mxu0 %v4498_v28  ;;  %3463 = vmatpush1.bf16.msra.mxu1 %v4564_v50 }
 0x236   :  { %3433 = vmatprep.subr.bf16.mxu0 %v4511_v32  ;;  %3465 = vmatprep.subr.bf16.mxu1 %v4576_v54 }
 0x238   :  { %v4186_v42 = vpop.eup %4185 }
 0x239   :  { %v4188_v26 = vpop.eup %4187  ;;  %v804_v5 = vmul.f32 %v4186_v42, %v4184_v41  ;;  %3435 = vmatpush1.bf16.msra.mxu0 %v4547_v44  ;;  %3467 = vmatpush1.bf16.msra.mxu1 %v4606_v0 }
 0x23a   :  { %v803_v45 = vmul.f32 %v4188_v26, %v4896_v36  ;;  %3437 = vmatprep.subr.bf16.mxu0 %v4558_v48  ;;  %3469 = vmatprep.subr.bf16.mxu1 %v4612_v2  ;;  %v4190_v56 = vpop.eup %4189 }
 0x23c   :  { %v805_v53 = vadd.f32 %v804_v5, %v803_v45 }
 0x23d   :  { %3439 = vmatpush1.bf16.msra.mxu0 %v4585_v57  ;;  %3471 = vmatpush1.bf16.msra.mxu1 %v4645_v20 }
 0x23e   :  { %3441 = vmatprep.subr.bf16.mxu0 %v4594_v60  ;;  %3473 = vmatprep.subr.bf16.mxu1 %v4651_v22  ;;  %4191 = vtanh.f32 %v805_v53  ;;  %v5010_v55 = vsel %vm813_vm3, %v805_v53, %v4896_v36 }
 0x241   :  { %3443 = vmatpush1.bf16.msra.mxu0 %v4627_v11  ;;  %3475 = vmatpush1.bf16.msra.mxu1 %v4688_v38 }
 0x242   :  { %3445 = vmatprep.subr.bf16.mxu0 %v4636_v15  ;;  %3477 = vmatprep.subr.bf16.mxu1 %v4691_v40 }
 0x245   :  { %3447 = vmatpush1.bf16.msra.mxu0 %v4674_v31  ;;  %3479 = vmatpush1.bf16.msra.mxu1 %v4712_v51 }
 0x246   :  { %3449 = vmatprep.subr.bf16.mxu0 %v4679_v34  ;;  %3481 = vmatprep.subr.bf16.mxu1 %v4715_v52 }
 0x248   :  { %v4192_v61 = vpop.eup %4191 }
 0x249   :  { %3451 = vmatpush1.bf16.msra.mxu0 %v4707_v49  ;;  %3483 = vmatpush1.bf16.msra.mxu1 %v4733_v59  ;;  %v807_v36 = vmul.f32 %v4192_v61, %v4190_v56 }
 0x24a   :  { %3485 = vmatprep.subr.bf16.mxu0 %v4431_v4  ;;  %3517 = vmatprep.subr.bf16.mxu1 %v4487_v24 }
 0x24b   :  { %v5026_v63 = vsel %vm813_vm3, %v807_v36, %v4912_v14  ;;  %v3004_v14 = vld [vmem:[%s5638_s2 + $0x80] sm:$0xff] }
 0x24c   :  { %1066 = vmatmul.mubr.f32.vlgmr.msra.gmra.mrb[10].mxu0 %v5026_v63  ;;  %1137 = vmatmul.mubr.f32.vlgmr.msra.gmra.mrb[10].mxu1 %v5026_v63  ;;  %v3008_v36 = vld [vmem:[%s5638_s2 + $0xa0] sm:$0xff] }
 0x24d   :  { %3487 = vmatpush1.bf16.msra.mxu0 %v4444_v9  ;;  %3519 = vmatpush1.bf16.msra.mxu1 %v4495_v27 }
 0x24e   :  { %3489 = vmatprep.subr.bf16.mxu0 %v4446_v10  ;;  %3521 = vmatprep.subr.bf16.mxu1 %v4520_v35 }
 0x24f   :  { %1249 = vmatprep.mubr.f32.mxu0 %v4386_v8  ;;  %1320 = vmatprep.mubr.f32.mxu1 %v4386_v8 }
 0x251   :  { %3491 = vmatpush1.bf16.msra.mxu0 %v4464_v16  ;;  %3523 = vmatpush1.bf16.msra.mxu1 %v4531_v39 }
 0x252   :  { %3493 = vmatprep.subr.bf16.mxu0 %v4473_v19  ;;  %3525 = vmatprep.subr.bf16.mxu1 %v4555_v47 }
 0x255   :  { %3495 = vmatpush1.bf16.msra.mxu0 %v4498_v28  ;;  %3527 = vmatpush1.bf16.msra.mxu1 %v4564_v50 }
 0x256   :  { %3497 = vmatprep.subr.bf16.mxu0 %v4511_v32  ;;  %3529 = vmatprep.subr.bf16.mxu1 %v4576_v54 }
 0x259   :  { %3499 = vmatpush1.bf16.msra.mxu0 %v4547_v44  ;;  %3531 = vmatpush1.bf16.msra.mxu1 %v4606_v0 }
 0x25a   :  { %3501 = vmatprep.subr.bf16.mxu0 %v4558_v48  ;;  %3533 = vmatprep.subr.bf16.mxu1 %v4612_v2 }
 0x25d   :  { %3503 = vmatpush1.bf16.msra.mxu0 %v4585_v57  ;;  %3535 = vmatpush1.bf16.msra.mxu1 %v4645_v20 }
 0x25e   :  { %3505 = vmatprep.subr.bf16.mxu0 %v4594_v60  ;;  %3537 = vmatprep.subr.bf16.mxu1 %v4651_v22 }
 0x261   :  { %3507 = vmatpush1.bf16.msra.mxu0 %v4627_v11  ;;  %3539 = vmatpush1.bf16.msra.mxu1 %v4688_v38 }
 0x262   :  { %3509 = vmatprep.subr.bf16.mxu0 %v4636_v15  ;;  %3541 = vmatprep.subr.bf16.mxu1 %v4691_v40 }
 0x265   :  { %3511 = vmatpush1.bf16.msra.mxu0 %v4674_v31  ;;  %3543 = vmatpush1.bf16.msra.mxu1 %v4712_v51 }
 0x266   :  { %3513 = vmatprep.subr.bf16.mxu0 %v4679_v34  ;;  %3545 = vmatprep.subr.bf16.mxu1 %v4715_v52 }
 0x269   :  { %3515 = vmatpush1.bf16.msra.mxu0 %v4707_v49  ;;  %3547 = vmatpush1.bf16.msra.mxu1 %v4733_v59 }
 0x26a   :  { %3549 = vmatprep.subr.bf16.mxu0 %v4431_v4  ;;  %3581 = vmatprep.subr.bf16.mxu1 %v4487_v24 }
 0x2ff   :  { %v892_v6 = vpop.f32.mrb[8].mxu0  ;;  %v963_v7 = vpop.f32.mrb[8].mxu1 }
 0x300   :  { %v893_v12 = vadd.f32 %v3004_v14, %v892_v6  ;;  %v894_v58 = vpop.f32.mrb[9].mxu0  ;;  %v965_v13 = vpop.f32.mrb[9].mxu1  ;;  %v964_v33 = vadd.f32 %v3006_v29, %v963_v7  ;;  %v3011_v29 = vld [vmem:[%s5638_s2 + $0xb8] sm:$0xff] }
 0x301   :  { %v895_v17 = vadd.f32 %v3005_v1, %v894_v58  ;;  %v966_v23 = vadd.f32 %v3007_v37, %v965_v13  ;;  %v997_v14 = vpop.permute.xlu0 %996  ;;  %v3009_v1 = vld [vmem:[%s5638_s2 + $0xa8] sm:$0xff] }
 0x302   :  { %v3012_v18 = vmul.f32 -1.442695, %v893_v12  ;;  %vm998_vm4 = vcmp.eq.s32.totalorder %v997_v14, 1 }
 0x303   :  { %v3013_v21 = vmul.f32 -1.442695, %v895_v17  ;;  %v3014_v30 = vmul.f32 -1.442695, %v966_v23 }
 0x304   :  { %4193 = vpow2.f32 %v3012_v18 }
 0x305   :  { %4195 = vpow2.f32 %v3013_v21 }
 0x306   :  { %4197 = vpow2.f32 %v3014_v30 }
 0x307   :  { %4199 = vtanh.f32 %v964_v33  ;;  %v3010_v33 = vld [vmem:[%s5638_s2 + $0xb0] sm:$0xff] }
 0x30e   :  { %v4194_v3 = vpop.eup %4193 }
 0x30f   :  { %v4196_v41 = vpop.eup %4195  ;;  %v971_v42 = vadd.f32 1.0, %v4194_v3 }
 0x310   :  { %v977_v26 = vadd.f32 1.0, %v4196_v41  ;;  %v4198_v5 = vpop.eup %4197 }
 0x311   :  { %4201 = vrcp.f32 %v971_v42  ;;  %v4200_v43 = vpop.eup %4199  ;;  %v984_v56 = vadd.f32 1.0, %v4198_v5 }
 0x312   :  { %4203 = vrcp.f32 %v977_v26 }
 0x313   :  { %4205 = vrcp.f32 %v984_v56 }
 0x31b   :  { %v4202_v45 = vpop.eup %4201 }
 0x31c   :  { %v4204_v46 = vpop.eup %4203  ;;  %v988_v53 = vmul.f32 %v4202_v45, %v4200_v43 }
 0x31d   :  { %v987_v61 = vmul.f32 %v4204_v46, %v4971_v62  ;;  %v4206_v3 = vpop.eup %4205 }
 0x31f   :  { %v989_v6 = vadd.f32 %v988_v53, %v987_v61  ;;  %v1067_v7 = vpop.f32.mrb[10].mxu0  ;;  %v1138_v12 = vpop.f32.mrb[10].mxu1 }
 0x320   :  { %v1068_v58 = vadd.f32 %v3008_v36, %v1067_v7  ;;  %v1069_v13 = vpop.f32.mrb[11].mxu0  ;;  %v1140_v17 = vpop.f32.mrb[11].mxu1  ;;  %v1139_v26 = vadd.f32 %v3010_v33, %v1138_v12 }
 0x321   :  { %v1070_v18 = vadd.f32 %v3009_v1, %v1069_v13  ;;  %4207 = vtanh.f32 %v989_v6  ;;  %v5085_v21 = vsel %vm998_vm4, %v989_v6, %v4971_v62  ;;  %v1141_v30 = vadd.f32 %v3011_v29, %v1140_v17  ;;  %v1171_v7 = vpop.permute.xlu1 %1170 }
 0x322   :  { %v3016_v37 = vmul.f32 -1.442695, %v1068_v58  ;;  %vm1172_vm5 = vcmp.eq.s32.totalorder %v1171_v7, 1 }
 0x323   :  { %v3017_v23 = vmul.f32 -1.442695, %v1070_v18  ;;  %v3018_v42 = vmul.f32 -1.442695, %v1141_v30 }
 0x324   :  { %4209 = vpow2.f32 %v3016_v37  ;;  %v3021_v37 = vld [vmem:[%s5638_s2 + $0xc8] sm:$0xff] }
 0x325   :  { %4211 = vpow2.f32 %v3017_v23 }
 0x326   :  { %4213 = vpow2.f32 %v3018_v42 }
 0x327   :  { %4215 = vtanh.f32 %v1139_v26 }
 0x32b   :  { %v4208_v41 = vpop.eup %4207 }
 0x32c   :  { %v991_v5 = vmul.f32 %v4208_v41, %v4206_v3 }
 0x32e   :  { %v4210_v62 = vpop.eup %4209  ;;  %v5095_v43 = vsel %vm998_vm4, %v991_v5, %v4981_v25  ;;  %v3023_v5 = vld [vmem:[%s5638_s2 + $0xd8] sm:$0xff] }
 0x32f   :  { %v4212_v45 = vpop.eup %4211  ;;  %v1146_v46 = vadd.f32 1.0, %v4210_v62  ;;  %1250 = vmatmul.mubr.f32.vlgmr.msra.gmra.mrb[12].mxu0 %v5095_v43  ;;  %1321 = vmatmul.mubr.f32.vlgmr.msra.gmra.mrb[12].mxu1 %v5095_v43 }
 0x330   :  { %v1152_v53 = vadd.f32 1.0, %v4212_v45  ;;  %3551 = vmatpush1.bf16.msra.mxu0 %v4444_v9  ;;  %3583 = vmatpush1.bf16.msra.mxu1 %v4495_v27  ;;  %v4214_v25 = vpop.eup %4213  ;;  %v3022_v45 = vld [vmem:[%s5638_s2 + $0xd0] sm:$0xff] }
 0x331   :  { %4217 = vrcp.f32 %v1146_v46  ;;  %3553 = vmatprep.subr.bf16.mxu0 %v4446_v10  ;;  %3585 = vmatprep.subr.bf16.mxu1 %v4520_v35  ;;  %v4216_v56 = vpop.eup %4215  ;;  %v1159_v1 = vadd.f32 1.0, %v4214_v25 }
 0x332   :  { %4219 = vrcp.f32 %v1152_v53  ;;  %1424 = vmatprep.mubr.f32.mxu0 %v4386_v8  ;;  %1495 = vmatprep.mubr.f32.mxu1 %v4386_v8 }
 0x333   :  { %4221 = vrcp.f32 %v1159_v1 }
 0x334   :  { %3555 = vmatpush1.bf16.msra.mxu0 %v4464_v16  ;;  %3587 = vmatpush1.bf16.msra.mxu1 %v4531_v39 }
 0x335   :  { %3557 = vmatprep.subr.bf16.mxu0 %v4473_v19  ;;  %3589 = vmatprep.subr.bf16.mxu1 %v4555_v47 }
 0x338   :  { %3559 = vmatpush1.bf16.msra.mxu0 %v4498_v28  ;;  %3591 = vmatpush1.bf16.msra.mxu1 %v4564_v50 }
 0x339   :  { %3561 = vmatprep.subr.bf16.mxu0 %v4511_v32  ;;  %3593 = vmatprep.subr.bf16.mxu1 %v4576_v54 }
 0x33b   :  { %v4218_v61 = vpop.eup %4217 }
 0x33c   :  { %v4220_v36 = vpop.eup %4219  ;;  %v1163_v14 = vmul.f32 %v4218_v61, %v4216_v56  ;;  %3563 = vmatpush1.bf16.msra.mxu0 %v4547_v44  ;;  %3595 = vmatpush1.bf16.msra.mxu1 %v4606_v0 }
 0x33d   :  { %v1162_v6 = vmul.f32 %v4220_v36, %v5010_v55  ;;  %3565 = vmatprep.subr.bf16.mxu0 %v4558_v48  ;;  %3597 = vmatprep.subr.bf16.mxu1 %v4612_v2  ;;  %v4222_v13 = vpop.eup %4221 }
 0x33f   :  { %v1164_v12 = vadd.f32 %v1163_v14, %v1162_v6 }
 0x340   :  { %3567 = vmatpush1.bf16.msra.mxu0 %v4585_v57  ;;  %3599 = vmatpush1.bf16.msra.mxu1 %v4645_v20 }
 0x341   :  { %3569 = vmatprep.subr.bf16.mxu0 %v4594_v60  ;;  %3601 = vmatprep.subr.bf16.mxu1 %v4651_v22  ;;  %4223 = vtanh.f32 %v1164_v12  ;;  %v5124_v58 = vsel %vm1172_vm5, %v1164_v12, %v5010_v55 }
 0x344   :  { %3571 = vmatpush1.bf16.msra.mxu0 %v4627_v11  ;;  %3603 = vmatpush1.bf16.msra.mxu1 %v4688_v38 }
 0x345   :  { %3573 = vmatprep.subr.bf16.mxu0 %v4636_v15  ;;  %3605 = vmatprep.subr.bf16.mxu1 %v4691_v40 }
 0x348   :  { %3575 = vmatpush1.bf16.msra.mxu0 %v4674_v31  ;;  %3607 = vmatpush1.bf16.msra.mxu1 %v4712_v51 }
 0x349   :  { %3577 = vmatprep.subr.bf16.mxu0 %v4679_v34  ;;  %3609 = vmatprep.subr.bf16.mxu1 %v4715_v52 }
 0x34b   :  { %v4224_v17 = vpop.eup %4223 }
 0x34c   :  { %3579 = vmatpush1.bf16.msra.mxu0 %v4707_v49  ;;  %3611 = vmatpush1.bf16.msra.mxu1 %v4733_v59  ;;  %v1166_v55 = vmul.f32 %v4224_v17, %v4222_v13 }
 0x34d   :  { %3613 = vmatprep.subr.bf16.mxu0 %v4431_v4  ;;  %3645 = vmatprep.subr.bf16.mxu1 %v4487_v24 }
 0x34e   :  { %v5140_v18 = vsel %vm1172_vm5, %v1166_v55, %v5026_v63  ;;  %v3020_v63 = vld [vmem:[%s5638_s2 + $0xc0] sm:$0xff] }
 0x34f   :  { %1425 = vmatmul.mubr.f32.vlgmr.msra.gmra.mrb[14].mxu0 %v5140_v18  ;;  %1496 = vmatmul.mubr.f32.vlgmr.msra.gmra.mrb[14].mxu1 %v5140_v18  ;;  %v3024_v55 = vld [vmem:[%s5638_s2 + $0xe0] sm:$0xff] }
 0x350   :  { %3615 = vmatpush1.bf16.msra.mxu0 %v4444_v9  ;;  %3647 = vmatpush1.bf16.msra.mxu1 %v4495_v27 }
 0x351   :  { %3617 = vmatprep.subr.bf16.mxu0 %v4446_v10  ;;  %3649 = vmatprep.subr.bf16.mxu1 %v4520_v35 }
 0x352   :  { %1608 = vmatprep.mubr.f32.mxu0 %v4386_v8  ;;  %1679 = vmatprep.mubr.f32.mxu1 %v4386_v8 }
 0x354   :  { %3619 = vmatpush1.bf16.msra.mxu0 %v4464_v16  ;;  %3651 = vmatpush1.bf16.msra.mxu1 %v4531_v39 }
 0x355   :  { %3621 = vmatprep.subr.bf16.mxu0 %v4473_v19  ;;  %3653 = vmatprep.subr.bf16.mxu1 %v4555_v47 }
 0x358   :  { %3623 = vmatpush1.bf16.msra.mxu0 %v4498_v28  ;;  %3655 = vmatpush1.bf16.msra.mxu1 %v4564_v50 }
 0x359   :  { %3625 = vmatprep.subr.bf16.mxu0 %v4511_v32  ;;  %3657 = vmatprep.subr.bf16.mxu1 %v4576_v54 }
 0x35c   :  { %3627 = vmatpush1.bf16.msra.mxu0 %v4547_v44  ;;  %3659 = vmatpush1.bf16.msra.mxu1 %v4606_v0 }
 0x35d   :  { %3629 = vmatprep.subr.bf16.mxu0 %v4558_v48  ;;  %3661 = vmatprep.subr.bf16.mxu1 %v4612_v2 }
 0x360   :  { %3631 = vmatpush1.bf16.msra.mxu0 %v4585_v57  ;;  %3663 = vmatpush1.bf16.msra.mxu1 %v4645_v20 }
 0x361   :  { %3633 = vmatprep.subr.bf16.mxu0 %v4594_v60  ;;  %3665 = vmatprep.subr.bf16.mxu1 %v4651_v22 }
 0x364   :  { %3635 = vmatpush1.bf16.msra.mxu0 %v4627_v11  ;;  %3667 = vmatpush1.bf16.msra.mxu1 %v4688_v38 }
 0x365   :  { %3637 = vmatprep.subr.bf16.mxu0 %v4636_v15  ;;  %3669 = vmatprep.subr.bf16.mxu1 %v4691_v40 }
 0x368   :  { %3639 = vmatpush1.bf16.msra.mxu0 %v4674_v31  ;;  %3671 = vmatpush1.bf16.msra.mxu1 %v4712_v51 }
 0x369   :  { %3641 = vmatprep.subr.bf16.mxu0 %v4679_v34  ;;  %3673 = vmatprep.subr.bf16.mxu1 %v4715_v52 }
 0x36c   :  { %3643 = vmatpush1.bf16.msra.mxu0 %v4707_v49  ;;  %3675 = vmatpush1.bf16.msra.mxu1 %v4733_v59 }
 0x36d   :  { %3677 = vmatprep.subr.bf16.mxu0 %v4431_v4  ;;  %3709 = vmatprep.subr.bf16.mxu1 %v4487_v24 }
 0x402   :  { %v1251_v23 = vpop.f32.mrb[12].mxu0  ;;  %v1322_v29 = vpop.f32.mrb[12].mxu1 }
 0x403   :  { %v1252_v30 = vadd.f32 %v3020_v63, %v1251_v23  ;;  %v1253_v33 = vpop.f32.mrb[13].mxu0  ;;  %v1324_v3 = vpop.f32.mrb[13].mxu1  ;;  %v1323_v53 = vadd.f32 %v3022_v45, %v1322_v29  ;;  %v3027_v45 = vld [vmem:[%s5638_s2 + $0xf8] sm:$0xff] }
 0x404   :  { %v1254_v41 = vadd.f32 %v3021_v37, %v1253_v33  ;;  %v1325_v62 = vadd.f32 %v3023_v5, %v1324_v3  ;;  %v1356_v63 = vpop.permute.xlu0 %1355  ;;  %v3025_v37 = vld [vmem:[%s5638_s2 + $0xe8] sm:$0xff] }
 0x405   :  { %v3028_v42 = vmul.f32 -1.442695, %v1252_v30  ;;  %vm1357_vm6 = vcmp.eq.s32.totalorder %v1356_v63, 1 }
 0x406   :  { %v3029_v26 = vmul.f32 -1.442695, %v1254_v41  ;;  %v3030_v46 = vmul.f32 -1.442695, %v1325_v62 }
 0x407   :  { %4225 = vpow2.f32 %v3028_v42 }
 0x408   :  { %4227 = vpow2.f32 %v3029_v26 }
 0x409   :  { %4229 = vpow2.f32 %v3030_v46 }
 0x40a   :  { %4231 = vtanh.f32 %v1323_v53  ;;  %v3026_v53 = vld [vmem:[%s5638_s2 + $0xf0] sm:$0xff] }
 0x411   :  { %v4226_v25 = vpop.eup %4225 }
 0x412   :  { %v4228_v56 = vpop.eup %4227  ;;  %v1330_v61 = vadd.f32 1.0, %v4226_v25 }
 0x413   :  { %v1336_v36 = vadd.f32 1.0, %v4228_v56  ;;  %v4230_v14 = vpop.eup %4229 }
 0x414   :  { %4233 = vrcp.f32 %v1330_v61  ;;  %v4232_v1 = vpop.eup %4231  ;;  %v1343_v13 = vadd.f32 1.0, %v4230_v14 }
 0x415   :  { %4235 = vrcp.f32 %v1336_v36 }
 0x416   :  { %4237 = vrcp.f32 %v1343_v13 }
 0x41e   :  { %v4234_v6 = vpop.eup %4233 }
 0x41f   :  { %v4236_v7 = vpop.eup %4235  ;;  %v1347_v12 = vmul.f32 %v4234_v6, %v4232_v1 }
 0x420   :  { %v1346_v17 = vmul.f32 %v4236_v7, %v5085_v21  ;;  %v4238_v25 = vpop.eup %4237 }
 0x422   :  { %v1348_v23 = vadd.f32 %v1347_v12, %v1346_v17  ;;  %v1426_v29 = vpop.f32.mrb[14].mxu0  ;;  %v1497_v30 = vpop.f32.mrb[14].mxu1 }
 0x423   :  { %v1427_v33 = vadd.f32 %v3024_v55, %v1426_v29  ;;  %v1428_v3 = vpop.f32.mrb[15].mxu0  ;;  %v1499_v41 = vpop.f32.mrb[15].mxu1  ;;  %v1498_v36 = vadd.f32 %v3026_v53, %v1497_v30 }
 0x424   :  { %v1429_v42 = vadd.f32 %v3025_v37, %v1428_v3  ;;  %4239 = vtanh.f32 %v1348_v23  ;;  %v5199_v26 = vsel %vm1357_vm6, %v1348_v23, %v5085_v21  ;;  %v1500_v46 = vadd.f32 %v3027_v45, %v1499_v41  ;;  %v1530_v29 = vpop.permute.xlu1 %1529 }
 0x425   :  { %v3032_v5 = vmul.f32 -1.442695, %v1427_v33  ;;  %vm1531_vm7 = vcmp.eq.s32.totalorder %v1530_v29, 1 }
 0x426   :  { %v3033_v62 = vmul.f32 -1.442695, %v1429_v42  ;;  %v3034_v61 = vmul.f32 -1.442695, %v1500_v46 }
 0x427   :  { %4241 = vpow2.f32 %v3032_v5  ;;  %v3037_v5 = vld [vmem:[%s5638_s2 + $0x108] sm:$0xff] }
 0x428   :  { %4243 = vpow2.f32 %v3033_v62 }
 0x429   :  { %4245 = vpow2.f32 %v3034_v61 }
 0x42a   :  { %4247 = vtanh.f32 %v1498_v36 }
 0x42e   :  { %v4240_v56 = vpop.eup %4239 }
 0x42f   :  { %v1350_v14 = vmul.f32 %v4240_v56, %v4238_v25 }
 0x431   :  { %v4242_v21 = vpop.eup %4241  ;;  %v5209_v1 = vsel %vm1357_vm6, %v1350_v14, %v5095_v43  ;;  %v3039_v14 = vld [vmem:[%s5638_s2 + $0x118] sm:$0xff] }
 0x432   :  { %v4244_v6 = vpop.eup %4243  ;;  %v1505_v7 = vadd.f32 1.0, %v4242_v21  ;;  %1609 = vmatmul.mubr.f32.vlgmr.msra.gmra.mrb[16].mxu0 %v5209_v1  ;;  %1680 = vmatmul.mubr.f32.vlgmr.msra.gmra.mrb[16].mxu1 %v5209_v1 }
 0x433   :  { %v1511_v12 = vadd.f32 1.0, %v4244_v6  ;;  %3679 = vmatpush1.bf16.msra.mxu0 %v4444_v9  ;;  %3711 = vmatpush1.bf16.msra.mxu1 %v4495_v27  ;;  %v4246_v43 = vpop.eup %4245  ;;  %v3038_v6 = vld [vmem:[%s5638_s2 + $0x110] sm:$0xff] }
 0x434   :  { %4249 = vrcp.f32 %v1505_v7  ;;  %3681 = vmatprep.subr.bf16.mxu0 %v4446_v10  ;;  %3713 = vmatprep.subr.bf16.mxu1 %v4520_v35  ;;  %v4248_v13 = vpop.eup %4247  ;;  %v1518_v37 = vadd.f32 1.0, %v4246_v43 }
 0x435   :  { %4251 = vrcp.f32 %v1511_v12  ;;  %1783 = vmatprep.mubr.f32.mxu0 %v4386_v8  ;;  %1854 = vmatprep.mubr.f32.mxu1 %v4386_v8 }
 0x436   :  { %4253 = vrcp.f32 %v1518_v37 }
 0x437   :  { %3683 = vmatpush1.bf16.msra.mxu0 %v4464_v16  ;;  %3715 = vmatpush1.bf16.msra.mxu1 %v4531_v39 }
 0x438   :  { %3685 = vmatprep.subr.bf16.mxu0 %v4473_v19  ;;  %3717 = vmatprep.subr.bf16.mxu1 %v4555_v47 }
 0x43b   :  { %3687 = vmatpush1.bf16.msra.mxu0 %v4498_v28  ;;  %3719 = vmatpush1.bf16.msra.mxu1 %v4564_v50 }
 0x43c   :  { %3689 = vmatprep.subr.bf16.mxu0 %v4511_v32  ;;  %3721 = vmatprep.subr.bf16.mxu1 %v4576_v54 }
 0x43e   :  { %v4250_v17 = vpop.eup %4249 }
 0x43f   :  { %v4252_v55 = vpop.eup %4251  ;;  %v1522_v63 = vmul.f32 %v4250_v17, %v4248_v13  ;;  %3691 = vmatpush1.bf16.msra.mxu0 %v4547_v44  ;;  %3723 = vmatpush1.bf16.msra.mxu1 %v4606_v0 }
 0x440   :  { %v1521_v23 = vmul.f32 %v4252_v55, %v5124_v58  ;;  %3693 = vmatprep.subr.bf16.mxu0 %v4558_v48  ;;  %3725 = vmatprep.subr.bf16.mxu1 %v4612_v2  ;;  %v4254_v3 = vpop.eup %4253 }
 0x442   :  { %v1523_v30 = vadd.f32 %v1522_v63, %v1521_v23 }
 0x443   :  { %3695 = vmatpush1.bf16.msra.mxu0 %v4585_v57  ;;  %3727 = vmatpush1.bf16.msra.mxu1 %v4645_v20 }
 0x444   :  { %3697 = vmatprep.subr.bf16.mxu0 %v4594_v60  ;;  %3729 = vmatprep.subr.bf16.mxu1 %v4651_v22  ;;  %4255 = vtanh.f32 %v1523_v30  ;;  %v5238_v33 = vsel %vm1531_vm7, %v1523_v30, %v5124_v58 }
 0x447   :  { %3699 = vmatpush1.bf16.msra.mxu0 %v4627_v11  ;;  %3731 = vmatpush1.bf16.msra.mxu1 %v4688_v38 }
 0x448   :  { %3701 = vmatprep.subr.bf16.mxu0 %v4636_v15  ;;  %3733 = vmatprep.subr.bf16.mxu1 %v4691_v40 }
 0x44b   :  { %3703 = vmatpush1.bf16.msra.mxu0 %v4674_v31  ;;  %3735 = vmatpush1.bf16.msra.mxu1 %v4712_v51 }
 0x44c   :  { %3705 = vmatprep.subr.bf16.mxu0 %v4679_v34  ;;  %3737 = vmatprep.subr.bf16.mxu1 %v4715_v52 }
 0x44e   :  { %v4256_v41 = vpop.eup %4255 }
 0x44f   :  { %3707 = vmatpush1.bf16.msra.mxu0 %v4707_v49  ;;  %3739 = vmatpush1.bf16.msra.mxu1 %v4733_v59  ;;  %v1525_v58 = vmul.f32 %v4256_v41, %v4254_v3 }
 0x450   :  { %3741 = vmatprep.subr.bf16.mxu0 %v4431_v4  ;;  %3773 = vmatprep.subr.bf16.mxu1 %v4487_v24 }
 0x451   :  { %v5254_v42 = vsel %vm1531_vm7, %v1525_v58, %v5140_v18  ;;  %v3036_v18 = vld [vmem:[%s5638_s2 + $0x100] sm:$0xff] }
 0x452   :  { %1784 = vmatmul.mubr.f32.vlgmr.msra.gmra.mrb[18].mxu0 %v5254_v42  ;;  %1855 = vmatmul.mubr.f32.vlgmr.msra.gmra.mrb[18].mxu1 %v5254_v42  ;;  %v3040_v58 = vld [vmem:[%s5638_s2 + $0x120] sm:$0xff] }
 0x453   :  { %3743 = vmatpush1.bf16.msra.mxu0 %v4444_v9  ;;  %3775 = vmatpush1.bf16.msra.mxu1 %v4495_v27 }
 0x454   :  { %3745 = vmatprep.subr.bf16.mxu0 %v4446_v10  ;;  %3777 = vmatprep.subr.bf16.mxu1 %v4520_v35 }
 0x455   :  { %1967 = vmatprep.mubr.f32.mxu0 %v4386_v8  ;;  %2038 = vmatprep.mubr.f32.mxu1 %v4386_v8 }
 0x457   :  { %3747 = vmatpush1.bf16.msra.mxu0 %v4464_v16  ;;  %3779 = vmatpush1.bf16.msra.mxu1 %v4531_v39 }
 0x458   :  { %3749 = vmatprep.subr.bf16.mxu0 %v4473_v19  ;;  %3781 = vmatprep.subr.bf16.mxu1 %v4555_v47 }
 0x45b   :  { %3751 = vmatpush1.bf16.msra.mxu0 %v4498_v28  ;;  %3783 = vmatpush1.bf16.msra.mxu1 %v4564_v50 }
 0x45c   :  { %3753 = vmatprep.subr.bf16.mxu0 %v4511_v32  ;;  %3785 = vmatprep.subr.bf16.mxu1 %v4576_v54 }
 0x45f   :  { %3755 = vmatpush1.bf16.msra.mxu0 %v4547_v44  ;;  %3787 = vmatpush1.bf16.msra.mxu1 %v4606_v0 }
 0x460   :  { %3757 = vmatprep.subr.bf16.mxu0 %v4558_v48  ;;  %3789 = vmatprep.subr.bf16.mxu1 %v4612_v2 }
 0x463   :  { %3759 = vmatpush1.bf16.msra.mxu0 %v4585_v57  ;;  %3791 = vmatpush1.bf16.msra.mxu1 %v4645_v20 }
 0x464   :  { %3761 = vmatprep.subr.bf16.mxu0 %v4594_v60  ;;  %3793 = vmatprep.subr.bf16.mxu1 %v4651_v22 }
 0x467   :  { %3763 = vmatpush1.bf16.msra.mxu0 %v4627_v11  ;;  %3795 = vmatpush1.bf16.msra.mxu1 %v4688_v38 }
 0x468   :  { %3765 = vmatprep.subr.bf16.mxu0 %v4636_v15  ;;  %3797 = vmatprep.subr.bf16.mxu1 %v4691_v40 }
 0x46b   :  { %3767 = vmatpush1.bf16.msra.mxu0 %v4674_v31  ;;  %3799 = vmatpush1.bf16.msra.mxu1 %v4712_v51 }
 0x46c   :  { %3769 = vmatprep.subr.bf16.mxu0 %v4679_v34  ;;  %3801 = vmatprep.subr.bf16.mxu1 %v4715_v52 }
 0x46f   :  { %3771 = vmatpush1.bf16.msra.mxu0 %v4707_v49  ;;  %3803 = vmatpush1.bf16.msra.mxu1 %v4733_v59 }
 0x470   :  { %3805 = vmatprep.subr.bf16.mxu0 %v4431_v4  ;;  %3837 = vmatprep.subr.bf16.mxu1 %v4487_v24 }
 0x505   :  { %v1610_v62 = vpop.f32.mrb[16].mxu0  ;;  %v1681_v45 = vpop.f32.mrb[16].mxu1 }
 0x506   :  { %v1611_v46 = vadd.f32 %v3036_v18, %v1610_v62  ;;  %v1612_v53 = vpop.f32.mrb[17].mxu0  ;;  %v1683_v25 = vpop.f32.mrb[17].mxu1  ;;  %v1682_v12 = vadd.f32 %v3038_v6, %v1681_v45  ;;  %v3043_v6 = vld [vmem:[%s5638_s2 + $0x138] sm:$0xff] }
 0x507   :  { %v1613_v56 = vadd.f32 %v3037_v5, %v1612_v53  ;;  %v1684_v21 = vadd.f32 %v3039_v14, %v1683_v25  ;;  %v1715_v18 = vpop.permute.xlu0 %1714  ;;  %v3041_v5 = vld [vmem:[%s5638_s2 + $0x128] sm:$0xff] }
 0x508   :  { %v3044_v61 = vmul.f32 -1.442695, %v1611_v46  ;;  %vm1716_vm8 = vcmp.eq.s32.totalorder %v1715_v18, 1 }
 0x509   :  { %v3045_v36 = vmul.f32 -1.442695, %v1613_v56  ;;  %v3046_v7 = vmul.f32 -1.442695, %v1684_v21 }
 0x50a   :  { %4257 = vpow2.f32 %v3044_v61 }
 0x50b   :  { %4259 = vpow2.f32 %v3045_v36 }
 0x50c   :  { %4261 = vpow2.f32 %v3046_v7 }
 0x50d   :  { %4263 = vtanh.f32 %v1682_v12  ;;  %v3042_v12 = vld [vmem:[%s5638_s2 + $0x130] sm:$0xff] }
 0x514   :  { %v4258_v43 = vpop.eup %4257 }
 0x515   :  { %v4260_v13 = vpop.eup %4259  ;;  %v1689_v17 = vadd.f32 1.0, %v4258_v43 }
 0x516   :  { %v1695_v55 = vadd.f32 1.0, %v4260_v13  ;;  %v4262_v63 = vpop.eup %4261 }
 0x517   :  { %4265 = vrcp.f32 %v1689_v17  ;;  %v4264_v37 = vpop.eup %4263  ;;  %v1702_v3 = vadd.f32 1.0, %v4262_v63 }
 0x518   :  { %4267 = vrcp.f32 %v1695_v55 }
 0x519   :  { %4269 = vrcp.f32 %v1702_v3 }
 0x521   :  { %v4266_v23 = vpop.eup %4265 }
 0x522   :  { %v4268_v29 = vpop.eup %4267  ;;  %v1706_v30 = vmul.f32 %v4266_v23, %v4264_v37 }
 0x523   :  { %v1705_v41 = vmul.f32 %v4268_v29, %v5199_v26  ;;  %v4270_v43 = vpop.eup %4269 }
 0x525   :  { %v1707_v62 = vadd.f32 %v1706_v30, %v1705_v41  ;;  %v1785_v45 = vpop.f32.mrb[18].mxu0  ;;  %v1856_v46 = vpop.f32.mrb[18].mxu1 }
 0x526   :  { %v1786_v53 = vadd.f32 %v3040_v58, %v1785_v45  ;;  %v1787_v25 = vpop.f32.mrb[19].mxu0  ;;  %v1858_v56 = vpop.f32.mrb[19].mxu1  ;;  %v1857_v55 = vadd.f32 %v3042_v12, %v1856_v46 }
 0x527   :  { %v1788_v61 = vadd.f32 %v3041_v5, %v1787_v25  ;;  %4271 = vtanh.f32 %v1707_v62  ;;  %v5313_v36 = vsel %vm1716_vm8, %v1707_v62, %v5199_v26  ;;  %v1859_v7 = vadd.f32 %v3043_v6, %v1858_v56  ;;  %v1889_v45 = vpop.permute.xlu1 %1888 }
 0x528   :  { %v3048_v14 = vmul.f32 -1.442695, %v1786_v53  ;;  %vm1890_vm9 = vcmp.eq.s32.totalorder %v1889_v45, 1 }
 0x529   :  { %v3049_v21 = vmul.f32 -1.442695, %v1788_v61  ;;  %v3050_v17 = vmul.f32 -1.442695, %v1859_v7 }
 0x52a   :  { %4273 = vpow2.f32 %v3048_v14  ;;  %v3053_v14 = vld [vmem:[%s5638_s2 + $0x148] sm:$0xff] }
 0x52b   :  { %4275 = vpow2.f32 %v3049_v21 }
 0x52c   :  { %4277 = vpow2.f32 %v3050_v17 }
 0x52d   :  { %4279 = vtanh.f32 %v1857_v55 }
 0x531   :  { %v4272_v13 = vpop.eup %4271 }
 0x532   :  { %v1709_v63 = vmul.f32 %v4272_v13, %v4270_v43 }
 0x534   :  { %v4274_v26 = vpop.eup %4273  ;;  %v5323_v37 = vsel %vm1716_vm8, %v1709_v63, %v5209_v1  ;;  %v3055_v63 = vld [vmem:[%s5638_s2 + $0x158] sm:$0xff] }
 0x535   :  { %v4276_v23 = vpop.eup %4275  ;;  %v1864_v29 = vadd.f32 1.0, %v4274_v26  ;;  %1968 = vmatmul.mubr.f32.vlgmr.msra.gmra.mrb[20].mxu0 %v5323_v37  ;;  %2039 = vmatmul.mubr.f32.vlgmr.msra.gmra.mrb[20].mxu1 %v5323_v37 }
 0x536   :  { %v1870_v30 = vadd.f32 1.0, %v4276_v23  ;;  %3807 = vmatpush1.bf16.msra.mxu0 %v4444_v9  ;;  %3839 = vmatpush1.bf16.msra.mxu1 %v4495_v27  ;;  %v4278_v1 = vpop.eup %4277  ;;  %v3054_v23 = vld [vmem:[%s5638_s2 + $0x150] sm:$0xff] }
 0x537   :  { %4281 = vrcp.f32 %v1864_v29  ;;  %3809 = vmatprep.subr.bf16.mxu0 %v4446_v10  ;;  %3841 = vmatprep.subr.bf16.mxu1 %v4520_v35  ;;  %v4280_v3 = vpop.eup %4279  ;;  %v1877_v5 = vadd.f32 1.0, %v4278_v1 }
 0x538   :  { %4283 = vrcp.f32 %v1870_v30  ;;  %2142 = vmatprep.mubr.f32.mxu0 %v4386_v8  ;;  %2213 = vmatprep.mubr.f32.mxu1 %v4386_v8 }
 0x539   :  { %4285 = vrcp.f32 %v1877_v5 }
 0x53a   :  { %3811 = vmatpush1.bf16.msra.mxu0 %v4464_v16  ;;  %3843 = vmatpush1.bf16.msra.mxu1 %v4531_v39 }
 0x53b   :  { %3813 = vmatprep.subr.bf16.mxu0 %v4473_v19  ;;  %3845 = vmatprep.subr.bf16.mxu1 %v4555_v47 }
 0x53e   :  { %3815 = vmatpush1.bf16.msra.mxu0 %v4498_v28  ;;  %3847 = vmatpush1.bf16.msra.mxu1 %v4564_v50 }
 0x53f   :  { %3817 = vmatprep.subr.bf16.mxu0 %v4511_v32  ;;  %3849 = vmatprep.subr.bf16.mxu1 %v4576_v54 }
 0x541   :  { %v4282_v41 = vpop.eup %4281 }
 0x542   :  { %v4284_v58 = vpop.eup %4283  ;;  %v1881_v18 = vmul.f32 %v4282_v41, %v4280_v3  ;;  %3819 = vmatpush1.bf16.msra.mxu0 %v4547_v44  ;;  %3851 = vmatpush1.bf16.msra.mxu1 %v4606_v0 }
 0x543   :  { %v1880_v62 = vmul.f32 %v4284_v58, %v5238_v33  ;;  %3821 = vmatprep.subr.bf16.mxu0 %v4558_v48  ;;  %3853 = vmatprep.subr.bf16.mxu1 %v4612_v2  ;;  %v4286_v25 = vpop.eup %4285 }
 0x545   :  { %v1882_v46 = vadd.f32 %v1881_v18, %v1880_v62 }
 0x546   :  { %3823 = vmatpush1.bf16.msra.mxu0 %v4585_v57  ;;  %3855 = vmatpush1.bf16.msra.mxu1 %v4645_v20 }
 0x547   :  { %3825 = vmatprep.subr.bf16.mxu0 %v4594_v60  ;;  %3857 = vmatprep.subr.bf16.mxu1 %v4651_v22  ;;  %4287 = vtanh.f32 %v1882_v46  ;;  %v5352_v53 = vsel %vm1890_vm9, %v1882_v46, %v5238_v33 }
 0x54a   :  { %3827 = vmatpush1.bf16.msra.mxu0 %v4627_v11  ;;  %3859 = vmatpush1.bf16.msra.mxu1 %v4688_v38 }
 0x54b   :  { %3829 = vmatprep.subr.bf16.mxu0 %v4636_v15  ;;  %3861 = vmatprep.subr.bf16.mxu1 %v4691_v40 }
 0x54e   :  { %3831 = vmatpush1.bf16.msra.mxu0 %v4674_v31  ;;  %3863 = vmatpush1.bf16.msra.mxu1 %v4712_v51 }
 0x54f   :  { %3833 = vmatprep.subr.bf16.mxu0 %v4679_v34  ;;  %3865 = vmatprep.subr.bf16.mxu1 %v4715_v52 }
 0x551   :  { %v4288_v56 = vpop.eup %4287 }
 0x552   :  { %3835 = vmatpush1.bf16.msra.mxu0 %v4707_v49  ;;  %3867 = vmatpush1.bf16.msra.mxu1 %v4733_v59  ;;  %v1884_v33 = vmul.f32 %v4288_v56, %v4286_v25 }
 0x553   :  { %3869 = vmatprep.subr.bf16.mxu0 %v4431_v4  ;;  %3901 = vmatprep.subr.bf16.mxu1 %v4487_v24 }
 0x554   :  { %v5368_v61 = vsel %vm1890_vm9, %v1884_v33, %v5254_v42  ;;  %v3052_v42 = vld [vmem:[%s5638_s2 + $0x140] sm:$0xff] }
 0x555   :  { %2143 = vmatmul.mubr.f32.vlgmr.msra.gmra.mrb[22].mxu0 %v5368_v61  ;;  %2214 = vmatmul.mubr.f32.vlgmr.msra.gmra.mrb[22].mxu1 %v5368_v61  ;;  %v3056_v33 = vld [vmem:[%s5638_s2 + $0x160] sm:$0xff] }
 0x556   :  { %3871 = vmatpush1.bf16.msra.mxu0 %v4444_v9  ;;  %3903 = vmatpush1.bf16.msra.mxu1 %v4495_v27 }
 0x557   :  { %3873 = vmatprep.subr.bf16.mxu0 %v4446_v10  ;;  %3905 = vmatprep.subr.bf16.mxu1 %v4520_v35 }
 0x558   :  { %2326 = vmatprep.mubr.f32.mxu0 %v4386_v8  ;;  %2397 = vmatprep.mubr.f32.mxu1 %v4386_v8 }
 0x55a   :  { %3875 = vmatpush1.bf16.msra.mxu0 %v4464_v16  ;;  %3907 = vmatpush1.bf16.msra.mxu1 %v4531_v39 }
 0x55b   :  { %3877 = vmatprep.subr.bf16.mxu0 %v4473_v19  ;;  %3909 = vmatprep.subr.bf16.mxu1 %v4555_v47 }
 0x55e   :  { %3879 = vmatpush1.bf16.msra.mxu0 %v4498_v28  ;;  %3911 = vmatpush1.bf16.msra.mxu1 %v4564_v50 }
 0x55f   :  { %3881 = vmatprep.subr.bf16.mxu0 %v4511_v32  ;;  %3913 = vmatprep.subr.bf16.mxu1 %v4576_v54 }
 0x562   :  { %3883 = vmatpush1.bf16.msra.mxu0 %v4547_v44  ;;  %3915 = vmatpush1.bf16.msra.mxu1 %v4606_v0 }
 0x563   :  { %3885 = vmatprep.subr.bf16.mxu0 %v4558_v48  ;;  %3917 = vmatprep.subr.bf16.mxu1 %v4612_v2 }
 0x566   :  { %3887 = vmatpush1.bf16.msra.mxu0 %v4585_v57  ;;  %3919 = vmatpush1.bf16.msra.mxu1 %v4645_v20 }
 0x567   :  { %3889 = vmatprep.subr.bf16.mxu0 %v4594_v60  ;;  %3921 = vmatprep.subr.bf16.mxu1 %v4651_v22 }
 0x56a   :  { %3891 = vmatpush1.bf16.msra.mxu0 %v4627_v11  ;;  %3923 = vmatpush1.bf16.msra.mxu1 %v4688_v38 }
 0x56b   :  { %3893 = vmatprep.subr.bf16.mxu0 %v4636_v15  ;;  %3925 = vmatprep.subr.bf16.mxu1 %v4691_v40 }
 0x56e   :  { %3895 = vmatpush1.bf16.msra.mxu0 %v4674_v31  ;;  %3927 = vmatpush1.bf16.msra.mxu1 %v4712_v51 }
 0x56f   :  { %3897 = vmatprep.subr.bf16.mxu0 %v4679_v34  ;;  %3929 = vmatprep.subr.bf16.mxu1 %v4715_v52 }
 0x572   :  { %3899 = vmatpush1.bf16.msra.mxu0 %v4707_v49  ;;  %3931 = vmatpush1.bf16.msra.mxu1 %v4733_v59 }
 0x573   :  { %3933 = vmatprep.subr.bf16.mxu0 %v4431_v4  ;;  %3965 = vmatprep.subr.bf16.mxu1 %v4487_v24 }
 0x608   :  { %v1969_v21 = vpop.f32.mrb[20].mxu0  ;;  %v2040_v6 = vpop.f32.mrb[20].mxu1 }
 0x609   :  { %v1970_v7 = vadd.f32 %v3052_v42, %v1969_v21  ;;  %v1971_v12 = vpop.f32.mrb[21].mxu0  ;;  %v2042_v43 = vpop.f32.mrb[21].mxu1  ;;  %v2041_v30 = vadd.f32 %v3054_v23, %v2040_v6  ;;  %v3059_v23 = vld [vmem:[%s5638_s2 + $0x178] sm:$0xff] }
 0x60a   :  { %v1972_v13 = vadd.f32 %v3053_v14, %v1971_v12  ;;  %v2043_v26 = vadd.f32 %v3055_v63, %v2042_v43  ;;  %v2074_v42 = vpop.permute.xlu0 %2073  ;;  %v3057_v14 = vld [vmem:[%s5638_s2 + $0x168] sm:$0xff] }
 0x60b   :  { %v3060_v17 = vmul.f32 -1.442695, %v1970_v7  ;;  %vm2075_vm10 = vcmp.eq.s32.totalorder %v2074_v42, 1 }
 0x60c   :  { %v3061_v55 = vmul.f32 -1.442695, %v1972_v13  ;;  %v3062_v29 = vmul.f32 -1.442695, %v2043_v26 }
 0x60d   :  { %4289 = vpow2.f32 %v3060_v17 }
 0x60e   :  { %4291 = vpow2.f32 %v3061_v55 }
 0x60f   :  { %4293 = vpow2.f32 %v3062_v29 }
 0x610   :  { %4295 = vtanh.f32 %v2041_v30  ;;  %v3058_v30 = vld [vmem:[%s5638_s2 + $0x170] sm:$0xff] }
 0x617   :  { %v4290_v1 = vpop.eup %4289 }
 0x618   :  { %v4292_v3 = vpop.eup %4291  ;;  %v2048_v41 = vadd.f32 1.0, %v4290_v1 }
 0x619   :  { %v2054_v58 = vadd.f32 1.0, %v4292_v3  ;;  %v4294_v18 = vpop.eup %4293 }
 0x61a   :  { %4297 = vrcp.f32 %v2048_v41  ;;  %v4296_v5 = vpop.eup %4295  ;;  %v2061_v25 = vadd.f32 1.0, %v4294_v18 }
 0x61b   :  { %4299 = vrcp.f32 %v2054_v58 }
 0x61c   :  { %4301 = vrcp.f32 %v2061_v25 }
 0x624   :  { %v4298_v62 = vpop.eup %4297 }
 0x625   :  { %v4300_v45 = vpop.eup %4299  ;;  %v2065_v46 = vmul.f32 %v4298_v62, %v4296_v5 }
 0x626   :  { %v2064_v56 = vmul.f32 %v4300_v45, %v5313_v36  ;;  %v4302_v1 = vpop.eup %4301 }
 0x628   :  { %v2066_v21 = vadd.f32 %v2065_v46, %v2064_v56  ;;  %v2144_v6 = vpop.f32.mrb[22].mxu0  ;;  %v2215_v7 = vpop.f32.mrb[22].mxu1 }
 0x629   :  { %v2145_v12 = vadd.f32 %v3056_v33, %v2144_v6  ;;  %v2146_v43 = vpop.f32.mrb[23].mxu0  ;;  %v2217_v13 = vpop.f32.mrb[23].mxu1  ;;  %v2216_v58 = vadd.f32 %v3058_v30, %v2215_v7 }
 0x62a   :  { %v2147_v17 = vadd.f32 %v3057_v14, %v2146_v43  ;;  %4303 = vtanh.f32 %v2066_v21  ;;  %v5427_v55 = vsel %vm2075_vm10, %v2066_v21, %v5313_v36  ;;  %v2218_v29 = vadd.f32 %v3059_v23, %v2217_v13  ;;  %v2248_v6 = vpop.permute.xlu1 %2247 }
 0x62b   :  { %v3064_v63 = vmul.f32 -1.442695, %v2145_v12  ;;  %vm2249_vm11 = vcmp.eq.s32.totalorder %v2248_v6, 1 }
 0x62c   :  { %v3065_v26 = vmul.f32 -1.442695, %v2147_v17  ;;  %v3066_v41 = vmul.f32 -1.442695, %v2218_v29 }
 0x62d   :  { %4305 = vpow2.f32 %v3064_v63  ;;  %v3069_v63 = vld [vmem:[%s5638_s2 + $0x188] sm:$0xff] }
 0x62e   :  { %4307 = vpow2.f32 %v3065_v26 }
 0x62f   :  { %4309 = vpow2.f32 %v3066_v41 }
 0x630   :  { %4311 = vtanh.f32 %v2216_v58 }
 0x634   :  { %v4304_v3 = vpop.eup %4303 }
 0x635   :  { %v2068_v18 = vmul.f32 %v4304_v3, %v4302_v1 }
 0x637   :  { %v4306_v36 = vpop.eup %4305  ;;  %v5437_v5 = vsel %vm2075_vm10, %v2068_v18, %v5323_v37  ;;  %v3070_v18 = vld [vmem:[%s5638_s2 + $0x190] sm:$0xff] }
 0x638   :  { %v4308_v62 = vpop.eup %4307  ;;  %v2223_v45 = vadd.f32 1.0, %v4306_v36  ;;  %2327 = vmatmul.mubr.f32.vlgmr.msra.gmra.mrb[24].mxu0 %v5437_v5  ;;  %2398 = vmatmul.mubr.f32.vlgmr.msra.gmra.mrb[24].mxu1 %v5437_v5 }
 0x639   :  { %v2229_v46 = vadd.f32 1.0, %v4308_v62  ;;  %3935 = vmatpush1.bf16.msra.mxu0 %v4444_v9  ;;  %3967 = vmatpush1.bf16.msra.mxu1 %v4495_v27  ;;  %v4310_v37 = vpop.eup %4309 }
 0x63a   :  { %4313 = vrcp.f32 %v2223_v45  ;;  %3937 = vmatprep.subr.bf16.mxu0 %v4446_v10  ;;  %3969 = vmatprep.subr.bf16.mxu1 %v4520_v35  ;;  %v4312_v25 = vpop.eup %4311  ;;  %v2236_v14 = vadd.f32 1.0, %v4310_v37 }
 0x63b   :  { %4315 = vrcp.f32 %v2229_v46  ;;  %2501 = vmatprep.mubr.f32.mxu0 %v4386_v8  ;;  %2572 = vmatprep.mubr.f32.mxu1 %v4386_v8 }
 0x63c   :  { %4317 = vrcp.f32 %v2236_v14 }
 0x63d   :  { %3939 = vmatpush1.bf16.msra.mxu0 %v4464_v16  ;;  %3971 = vmatpush1.bf16.msra.mxu1 %v4531_v39 }
 0x63e   :  { %3941 = vmatprep.subr.bf16.mxu0 %v4473_v19  ;;  %3973 = vmatprep.subr.bf16.mxu1 %v4555_v47 }
 0x641   :  { %3943 = vmatpush1.bf16.msra.mxu0 %v4498_v28  ;;  %3975 = vmatpush1.bf16.msra.mxu1 %v4564_v50 }
 0x642   :  { %3945 = vmatprep.subr.bf16.mxu0 %v4511_v32  ;;  %3977 = vmatprep.subr.bf16.mxu1 %v4576_v54 }
 0x644   :  { %v4314_v56 = vpop.eup %4313 }
 0x645   :  { %v4316_v33 = vpop.eup %4315  ;;  %v2240_v42 = vmul.f32 %v4314_v56, %v4312_v25  ;;  %3947 = vmatpush1.bf16.msra.mxu0 %v4547_v44  ;;  %3979 = vmatpush1.bf16.msra.mxu1 %v4606_v0 }
 0x646   :  { %v2239_v21 = vmul.f32 %v4316_v33, %v5352_v53  ;;  %3949 = vmatprep.subr.bf16.mxu0 %v4558_v48  ;;  %3981 = vmatprep.subr.bf16.mxu1 %v4612_v2  ;;  %v4318_v43 = vpop.eup %4317 }
 0x648   :  { %v2241_v7 = vadd.f32 %v2240_v42, %v2239_v21 }
 0x649   :  { %3951 = vmatpush1.bf16.msra.mxu0 %v4585_v57  ;;  %3983 = vmatpush1.bf16.msra.mxu1 %v4645_v20 }
 0x64a   :  { %3953 = vmatprep.subr.bf16.mxu0 %v4594_v60  ;;  %3985 = vmatprep.subr.bf16.mxu1 %v4651_v22  ;;  %4319 = vtanh.f32 %v2241_v7  ;;  %v5466_v12 = vsel %vm2249_vm11, %v2241_v7, %v5352_v53 }
 0x64d   :  { %3955 = vmatpush1.bf16.msra.mxu0 %v4627_v11  ;;  %3987 = vmatpush1.bf16.msra.mxu1 %v4688_v38 }
 0x64e   :  { %3957 = vmatprep.subr.bf16.mxu0 %v4636_v15  ;;  %3989 = vmatprep.subr.bf16.mxu1 %v4691_v40 }
 0x651   :  { %3959 = vmatpush1.bf16.msra.mxu0 %v4674_v31  ;;  %3991 = vmatpush1.bf16.msra.mxu1 %v4712_v51 }
 0x652   :  { %3961 = vmatprep.subr.bf16.mxu0 %v4679_v34  ;;  %3993 = vmatprep.subr.bf16.mxu1 %v4715_v52 }
 0x654   :  { %v4320_v13 = vpop.eup %4319 }
 0x655   :  { %3963 = vmatpush1.bf16.msra.mxu0 %v4707_v49  ;;  %3995 = vmatpush1.bf16.msra.mxu1 %v4733_v59  ;;  %v2243_v53 = vmul.f32 %v4320_v13, %v4318_v43  ;;  %v3072_v43 = vld [vmem:[%s5638_s2 + $0x1a0] sm:$0xff]  ;;  %v2433_v13 = vpop.permute.xlu0 %2432 }
 0x656   :  { %3997 = vmatprep.subr.bf16.mxu0 %v4431_v4  ;;  %4029 = vmatprep.subr.bf16.mxu1 %v4487_v24  ;;  %vm2434_vm12 = vcmp.eq.s32.totalorder %v2433_v13, 1 }
 0x657   :  { %v5482_v17 = vsel %vm2249_vm11, %v2243_v53, %v5368_v61  ;;  %v3068_v61 = vld [vmem:[%s5638_s2 + $0x180] sm:$0xff]  ;;  %v3073_v53 = vld [vmem:[%s5638_s2 + $0x1a8] sm:$0xff] }
 0x658   :  { %2502 = vmatmul.mubr.f32.vlgmr.msra.gmra.mrb[26].mxu0 %v5482_v17  ;;  %2573 = vmatmul.mubr.f32.vlgmr.msra.gmra.mrb[26].mxu1 %v5482_v17 }
 0x659   :  { %3999 = vmatpush1.bf16.msra.mxu0 %v4444_v9  ;;  %4031 = vmatpush1.bf16.msra.mxu1 %v4495_v27  ;;  %v2792_v13 = vpop.permute.xlu0 %2791 }
 0x65a   :  { %4001 = vmatprep.subr.bf16.mxu0 %v4446_v10  ;;  %4033 = vmatprep.subr.bf16.mxu1 %v4520_v35  ;;  %vm2793_vm14 = vcmp.eq.s32.totalorder %v2792_v13, 1 }
 0x65b   :  { %2685 = vmatprep.mubr.f32.mxu0 %v4386_v8  ;;  %2756 = vmatprep.mubr.f32.mxu1 %v4386_v8 }
 0x65d   :  { %4003 = vmatpush1.bf16.msra.mxu0 %v4464_v16  ;;  %4035 = vmatpush1.bf16.msra.mxu1 %v4531_v39 }
 0x65e   :  { %4005 = vmatprep.subr.bf16.mxu0 %v4473_v19  ;;  %4037 = vmatprep.subr.bf16.mxu1 %v4555_v47 }
 0x661   :  { %4007 = vmatpush1.bf16.msra.mxu0 %v4498_v28  ;;  %4039 = vmatpush1.bf16.msra.mxu1 %v4564_v50 }
 0x662   :  { %4009 = vmatprep.subr.bf16.mxu0 %v4511_v32  ;;  %4041 = vmatprep.subr.bf16.mxu1 %v4576_v54 }
 0x665   :  { %4011 = vmatpush1.bf16.msra.mxu0 %v4547_v44  ;;  %4043 = vmatpush1.bf16.msra.mxu1 %v4606_v0 }
 0x666   :  { %4013 = vmatprep.subr.bf16.mxu0 %v4558_v48  ;;  %4045 = vmatprep.subr.bf16.mxu1 %v4612_v2 }
 0x669   :  { %4015 = vmatpush1.bf16.msra.mxu0 %v4585_v57  ;;  %4047 = vmatpush1.bf16.msra.mxu1 %v4645_v20 }
 0x66a   :  { %4017 = vmatprep.subr.bf16.mxu0 %v4594_v60  ;;  %4049 = vmatprep.subr.bf16.mxu1 %v4651_v22 }
 0x66d   :  { %4019 = vmatpush1.bf16.msra.mxu0 %v4627_v11  ;;  %4051 = vmatpush1.bf16.msra.mxu1 %v4688_v38 }
 0x66e   :  { %4021 = vmatprep.subr.bf16.mxu0 %v4636_v15  ;;  %4053 = vmatprep.subr.bf16.mxu1 %v4691_v40 }
 0x671   :  { %4023 = vmatpush1.bf16.msra.mxu0 %v4674_v31  ;;  %4055 = vmatpush1.bf16.msra.mxu1 %v4712_v51 }
 0x672   :  { %4025 = vmatprep.subr.bf16.mxu0 %v4679_v34  ;;  %4057 = vmatprep.subr.bf16.mxu1 %v4715_v52 }
 0x675   :  { %4027 = vmatpush1.bf16.msra.mxu0 %v4707_v49  ;;  %4059 = vmatpush1.bf16.msra.mxu1 %v4733_v59 }
 0x676   :  { %4061 = vmatprep.subr.bf16.mxu0 %v4431_v4  ;;  %4093 = vmatprep.subr.bf16.mxu1 %v4487_v24  ;;  %v3071_v4 = vld [vmem:[%s5638_s2 + $0x198] sm:$0xff] }
 0x70b   :  { %v2328_v26 = vpop.f32.mrb[24].mxu0  ;;  %v2399_v23 = vpop.f32.mrb[24].mxu1 }
 0x70c   :  { %v2329_v29 = vadd.f32 %v3068_v61, %v2328_v26  ;;  %v2330_v30 = vpop.f32.mrb[25].mxu0  ;;  %v2401_v1 = vpop.f32.mrb[25].mxu1  ;;  %v2400_v62 = vadd.f32 %v3070_v18, %v2399_v23  ;;  %v3074_v18 = vld [vmem:[%s5638_s2 + $0x1b0] sm:$0xff] }
 0x70d   :  { %v2331_v3 = vadd.f32 %v3069_v63, %v2330_v30  ;;  %v2402_v24 = vadd.f32 %v3071_v4, %v2401_v1  ;;  %v3075_v4 = vld [vmem:[%s5638_s2 + $0x1b8] sm:$0xff] }
 0x70e   :  { %v3076_v41 = vmul.f32 -1.442695, %v2329_v29 }
 0x70f   :  { %v3077_v58 = vmul.f32 -1.442695, %v2331_v3  ;;  %v3078_v36 = vmul.f32 -1.442695, %v2402_v24 }
 0x710   :  { %4321 = vpow2.f32 %v3076_v41 }
 0x711   :  { %4323 = vpow2.f32 %v3077_v58 }
 0x712   :  { %4325 = vpow2.f32 %v3078_v36 }
 0x713   :  { %4327 = vtanh.f32 %v2400_v62 }
 0x71a   :  { %v4322_v45 = vpop.eup %4321 }
 0x71b   :  { %v4324_v46 = vpop.eup %4323  ;;  %v2407_v37 = vadd.f32 1.0, %v4322_v45 }
 0x71c   :  { %v2413_v25 = vadd.f32 1.0, %v4324_v46  ;;  %v4326_v56 = vpop.eup %4325 }
 0x71d   :  { %4329 = vrcp.f32 %v2407_v37  ;;  %v4328_v33 = vpop.eup %4327  ;;  %v2420_v6 = vadd.f32 1.0, %v4326_v56 }
 0x71e   :  { %4331 = vrcp.f32 %v2413_v25 }
 0x71f   :  { %4333 = vrcp.f32 %v2420_v6 }
 0x727   :  { %v4330_v42 = vpop.eup %4329 }
 0x728   :  { %v4332_v14 = vpop.eup %4331  ;;  %v2424_v21 = vmul.f32 %v4330_v42, %v4328_v33 }
 0x729   :  { %v2423_v7 = vmul.f32 %v4332_v14, %v5427_v55  ;;  %v4334_v36 = vpop.eup %4333 }
 0x72b   :  { %v2425_v61 = vadd.f32 %v2424_v21, %v2423_v7  ;;  %v2503_v63 = vpop.f32.mrb[26].mxu0  ;;  %v2574_v26 = vpop.f32.mrb[26].mxu1 }
 0x72c   :  { %v2504_v23 = vadd.f32 %v3072_v43, %v2503_v63  ;;  %v2505_v29 = vpop.f32.mrb[27].mxu0  ;;  %v2576_v30 = vpop.f32.mrb[27].mxu1  ;;  %v2575_v46 = vadd.f32 %v3074_v18, %v2574_v26  ;;  %v3089_v63 = vld [vmem:[%s5638_s2 + $0x1e8] sm:$0xff] }
 0x72d   :  { %v2506_v1 = vadd.f32 %v3073_v53, %v2505_v29  ;;  %4335 = vtanh.f32 %v2425_v61  ;;  %v5541_v3 = vsel %vm2434_vm12, %v2425_v61, %v5427_v55  ;;  %v2577_v24 = vadd.f32 %v3075_v4, %v2576_v30  ;;  %v3088_v61 = vld [vmem:[%s5638_s2 + $0x1e0] sm:$0xff] }
 0x72e   :  { %v3080_v41 = vmul.f32 -1.442695, %v2504_v23 }
 0x72f   :  { %v3081_v58 = vmul.f32 -1.442695, %v2506_v1  ;;  %v3082_v45 = vmul.f32 -1.442695, %v2577_v24 }
 0x730   :  { %4337 = vpow2.f32 %v3080_v41 }
 0x731   :  { %4339 = vpow2.f32 %v3081_v58 }
 0x732   :  { %4341 = vpow2.f32 %v3082_v45  ;;  %v3090_v45 = vld [vmem:[%s5638_s2 + $0x1f0] sm:$0xff] }
 0x733   :  { %4343 = vtanh.f32 %v2575_v46 }
 0x737   :  { %v4336_v62 = vpop.eup %4335 }
 0x738   :  { %v2427_v37 = vmul.f32 %v4336_v62, %v4334_v36  ;;  %v3091_v36 = vld [vmem:[%s5638_s2 + $0x1f8] sm:$0xff] }
 0x73a   :  { %v4338_v55 = vpop.eup %4337  ;;  %v5551_v25 = vsel %vm2434_vm12, %v2427_v37, %v5437_v5 }
 0x73b   :  { %v4340_v56 = vpop.eup %4339  ;;  %v2582_v33 = vadd.f32 1.0, %v4338_v55  ;;  %2686 = vmatmul.mubr.f32.vlgmr.msra.gmra.mrb[28].mxu0 %v5551_v25  ;;  %2757 = vmatmul.mubr.f32.vlgmr.msra.gmra.mrb[28].mxu1 %v5551_v25 }
 0x73c   :  { %v2588_v42 = vadd.f32 1.0, %v4340_v56  ;;  %4063 = vmatpush1.bf16.msra.mxu0 %v4444_v9  ;;  %4095 = vmatpush1.bf16.msra.mxu1 %v4495_v27  ;;  %v4342_v9 = vpop.eup %4341 }
 0x73d   :  { %4345 = vrcp.f32 %v2582_v33  ;;  %4065 = vmatprep.subr.bf16.mxu0 %v4446_v10  ;;  %4097 = vmatprep.subr.bf16.mxu1 %v4520_v35  ;;  %v4344_v10 = vpop.eup %4343 }
 0x73e   :  { %4347 = vrcp.f32 %v2588_v42  ;;  %2860 = vmatprep.mubr.f32.mxu0 %v4386_v8  ;;  %2931 = vmatprep.mubr.f32.mxu1 %v4386_v8 }
 0x740   :  { %4067 = vmatpush1.bf16.msra.mxu0 %v4464_v16  ;;  %4099 = vmatpush1.bf16.msra.mxu1 %v4531_v39  ;;  %v2595_v16 = vadd.f32 1.0, %v4342_v9 }
 0x741   :  { %4069 = vmatprep.subr.bf16.mxu0 %v4473_v19  ;;  %4101 = vmatprep.subr.bf16.mxu1 %v4555_v47 }
 0x742   :  { %4349 = vrcp.f32 %v2595_v16 }
 0x744   :  { %4071 = vmatpush1.bf16.msra.mxu0 %v4498_v28  ;;  %4103 = vmatpush1.bf16.msra.mxu1 %v4564_v50  ;;  %v2607_v28 = vpop.permute.xlu1 %2606 }
 0x745   :  { %4073 = vmatprep.subr.bf16.mxu0 %v4511_v32  ;;  %4105 = vmatprep.subr.bf16.mxu1 %v4576_v54  ;;  %vm2608_vm13 = vcmp.eq.s32.totalorder %v2607_v28, 1  ;;  %v3084_v54 = vld [vmem:[%s5638_s2 + $0x1c0] sm:$0xff] }
 0x747   :  { %v4346_v27 = vpop.eup %4345 }
 0x748   :  { %v4348_v8 = vpop.eup %4347  ;;  %v2599_v35 = vmul.f32 %v4346_v27, %v4344_v10  ;;  %4075 = vmatpush1.bf16.msra.mxu0 %v4547_v44  ;;  %4107 = vmatpush1.bf16.msra.mxu1 %v4606_v0 }
 0x749   :  { %v2598_v19 = vmul.f32 %v4348_v8, %v5466_v12  ;;  %4077 = vmatprep.subr.bf16.mxu0 %v4558_v48  ;;  %4109 = vmatprep.subr.bf16.mxu1 %v4612_v2 }
 0x74b   :  { %v2600_v39 = vadd.f32 %v2599_v35, %v2598_v19 }
 0x74c   :  { %4079 = vmatpush1.bf16.msra.mxu0 %v4585_v57  ;;  %4111 = vmatpush1.bf16.msra.mxu1 %v4645_v20  ;;  %v4350_v44 = vpop.eup %4349  ;;  %v3085_v57 = vld [vmem:[%s5638_s2 + $0x1c8] sm:$0xff] }
 0x74d   :  { %4081 = vmatprep.subr.bf16.mxu0 %v4594_v60  ;;  %4113 = vmatprep.subr.bf16.mxu1 %v4651_v22  ;;  %4351 = vtanh.f32 %v2600_v39  ;;  %v5580_v32 = vsel %vm2608_vm13, %v2600_v39, %v5466_v12 }
 0x750   :  { %4083 = vmatpush1.bf16.msra.mxu0 %v4627_v11  ;;  %4115 = vmatpush1.bf16.msra.mxu1 %v4688_v38 }
 0x751   :  { %4085 = vmatprep.subr.bf16.mxu0 %v4636_v15  ;;  %4117 = vmatprep.subr.bf16.mxu1 %v4691_v40  ;;  %v3086_v40 = vld [vmem:[%s5638_s2 + $0x1d0] sm:$0xff] }
 0x754   :  { %4087 = vmatpush1.bf16.msra.mxu0 %v4674_v31  ;;  %4119 = vmatpush1.bf16.msra.mxu1 %v4712_v51 }
 0x755   :  { %4089 = vmatprep.subr.bf16.mxu0 %v4679_v34  ;;  %4121 = vmatprep.subr.bf16.mxu1 %v4715_v52  ;;  %v3087_v34 = vld [vmem:[%s5638_s2 + $0x1d8] sm:$0xff] }
 0x757   :  { %v4352_v47 = vpop.eup %4351 }
 0x758   :  { %4091 = vmatpush1.bf16.msra.mxu0 %v4707_v49  ;;  %4123 = vmatpush1.bf16.msra.mxu1 %v4733_v59  ;;  %v2602_v48 = vmul.f32 %v4352_v47, %v4350_v44  ;;  %v2966_v44 = vpop.permute.xlu1 %2965 }
 0x759   :  { %vm2967_vm15 = vcmp.eq.s32.totalorder %v2966_v44, 1 }
 0x75a   :  { %v5594_v50 = vsel %vm2608_vm13, %v2602_v48, %v5482_v17 }
 0x75b   :  { %2861 = vmatmul.mubr.f32.vlgmr.msra.gmra.mrb[30].mxu0 %v5594_v50  ;;  %2932 = vmatmul.mubr.f32.vlgmr.msra.gmra.mrb[30].mxu1 %v5594_v50 }
 0x80e   :  { %v2687_v60 = vpop.f32.mrb[28].mxu0  ;;  %v2758_v0 = vpop.f32.mrb[28].mxu1 }
 0x80f   :  { %v2688_v2 = vadd.f32 %v3084_v54, %v2687_v60  ;;  %v2689_v11 = vpop.f32.mrb[29].mxu0  ;;  %v2760_v15 = vpop.f32.mrb[29].mxu1  ;;  %v2759_v51 = vadd.f32 %v3086_v40, %v2758_v0 }
 0x810   :  { %v2690_v20 = vadd.f32 %v3085_v57, %v2689_v11  ;;  %v2761_v38 = vadd.f32 %v3087_v34, %v2760_v15 }
 0x811   :  { %v3092_v22 = vmul.f32 -1.442695, %v2688_v2 }
 0x812   :  { %v3093_v31 = vmul.f32 -1.442695, %v2690_v20  ;;  %v3094_v49 = vmul.f32 -1.442695, %v2761_v38 }
 0x813   :  { %4353 = vpow2.f32 %v3092_v22 }
 0x814   :  { %4355 = vpow2.f32 %v3093_v31 }
 0x815   :  { %4357 = vpow2.f32 %v3094_v49 }
 0x816   :  { %4359 = vtanh.f32 %v2759_v51 }
 0x81d   :  { %v4354_v52 = vpop.eup %4353 }
 0x81e   :  { %v4356_v59 = vpop.eup %4355  ;;  %v2766_v5 = vadd.f32 1.0, %v4354_v52 }
 0x81f   :  { %v2772_v12 = vadd.f32 1.0, %v4356_v59  ;;  %v4358_v17 = vpop.eup %4357 }
 0x820   :  { %4361 = vrcp.f32 %v2766_v5  ;;  %v4360_v14 = vpop.eup %4359  ;;  %v2779_v43 = vadd.f32 1.0, %v4358_v17 }
 0x821   :  { %4363 = vrcp.f32 %v2772_v12 }
 0x822   :  { %4365 = vrcp.f32 %v2779_v43 }
 0x82a   :  { %v4362_v21 = vpop.eup %4361 }
 0x82b   :  { %v4364_v6 = vpop.eup %4363  ;;  %v2783_v7 = vmul.f32 %v4362_v21, %v4360_v14 }
 0x82c   :  { %v2782_v53 = vmul.f32 %v4364_v6, %v5541_v3  ;;  %v4366_v46 = vpop.eup %4365 }
 0x82e   :  { %v2784_v26 = vadd.f32 %v2783_v7, %v2782_v53  ;;  %v2862_v23 = vpop.f32.mrb[30].mxu0  ;;  %v2933_v29 = vpop.f32.mrb[30].mxu1 }
 0x82f   :  { %v2863_v30 = vadd.f32 %v3088_v61, %v2862_v23  ;;  %v2864_v1 = vpop.f32.mrb[31].mxu0  ;;  %v2935_v41 = vpop.f32.mrb[31].mxu1 }
 0x830   :  { %4367 = vtanh.f32 %v2784_v26  ;;  %v2795_v58 = vsel %vm2793_vm14, %v2784_v26, %v5541_v3  ;;  %v2865_v4 = vadd.f32 %v3089_v63, %v2864_v1  ;;  %v2936_v62 = vadd.f32 %v3091_v36, %v2935_v41 }
 0x831   :  { %2972 = vst [vmem:[#allocation2] sm:$0xff] %v2795_v58  ;;  %v3096_v24 = vmul.f32 -1.442695, %v2863_v30  ;;  %v2934_v3 = vadd.f32 %v3090_v45, %v2933_v29 }
 0x832   :  { %v3097_v18 = vmul.f32 -1.442695, %v2865_v4  ;;  %v3098_v55 = vmul.f32 -1.442695, %v2936_v62 }
 0x833   :  { %4369 = vpow2.f32 %v3096_v24 }
 0x834   :  { %4371 = vpow2.f32 %v3097_v18 }
 0x835   :  { %4373 = vpow2.f32 %v3098_v55 }
 0x836   :  { %4375 = vtanh.f32 %v2934_v3 }
 0x83a   :  { %v4368_v37 = vpop.eup %4367 }
 0x83b   :  { %v2786_v56 = vmul.f32 %v4368_v37, %v4366_v46 }
 0x83d   :  { %v4370_v33 = vpop.eup %4369  ;;  %v2794_v42 = vsel %vm2793_vm14, %v2786_v56, %v5551_v25 }
 0x83e   :  { %v4372_v9 = vpop.eup %4371  ;;  %2970 = vst [vmem:[%s5640_s4] sm:$0xff] %v2794_v42  ;;  %v2941_v10 = vadd.f32 1.0, %v4370_v33 }
 0x83f   :  { %v2947_v27 = vadd.f32 1.0, %v4372_v9  ;;  %v4374_v8 = vpop.eup %4373 }
 0x840   :  { %4377 = vrcp.f32 %v2941_v10  ;;  %v4376_v35 = vpop.eup %4375  ;;  %v2954_v39 = vadd.f32 1.0, %v4374_v8 }
 0x841   :  { %4379 = vrcp.f32 %v2947_v27 }
 0x842   :  { %4381 = vrcp.f32 %v2954_v39 }
 0x84a   :  { %v4378_v16 = vpop.eup %4377 }
 0x84b   :  { %v4380_v19 = vpop.eup %4379  ;;  %v2958_v28 = vmul.f32 %v4378_v16, %v4376_v35 }
 0x84c   :  { %v2957_v25 = vmul.f32 %v4380_v19, %v5580_v32  ;;  %v4382_v54 = vpop.eup %4381 }
 0x84e   :  { %v2959_v47 = vadd.f32 %v2958_v28, %v2957_v25 }
 0x850   :  { %4383 = vtanh.f32 %v2959_v47  ;;  %v2969_v48 = vsel %vm2967_vm15, %v2959_v47, %v5580_v32 }
 0x851   :  { %2973 = vst [vmem:[#allocation2 + $0x8] sm:$0xff] %v2969_v48 }
 0x85a   :  { %v4384_v57 = vpop.eup %4383 }
 0x85b   :  { %v2961_v60 = vmul.f32 %v4384_v57, %v4382_v54 }
 0x85d   :  { %v2968_v0 = vsel %vm2967_vm15, %v2961_v60, %v5594_v50 }
 0x85e   :  { %2971 = vst [vmem:[%s5640_s4 + $0x8] sm:$0xff] %v2968_v0 }
 0x85f PF:  {}

</bundles_post_ra>
